<compile_context>
chip_gen: v7x
topology: tpu7x:2x2x1
jax: 0.10.0
libtpu: 0.0.40
codegen_flags: <defaults>
</compile_context>

<pallas_src>
import functools
import math

import numpy as np
import jax
import jax.numpy as jnp
from jax.experimental import pallas as pl
from jax.experimental.pallas import tpu as pltpu


# ---------------------------------------------------------------------------
# Fused kernel: embed -> num_layers x encoder layer -> fc_out
# ---------------------------------------------------------------------------
def _fused_kernel(x_ref, pos_ref, emb_w_ref, emb_b_ref,
                  wqkv_ref, bqkv_ref, wo_ref, bo_ref,
                  ln1w_ref, ln1b_ref, w1_ref, b1_ref, w2_ref, b2_ref,
                  ln2w_ref, ln2b_ref, fc_w_ref, fc_b_ref,
                  o_ref, attn_scratch,
                  *, num_heads, num_layers, batch, seq, eps=1e-5):
    H = emb_w_ref.shape[1]
    hd = H // num_heads
    scale = 1.0 / math.sqrt(hd)

    def layer_norm(y, w, b):
        mu = jnp.mean(y, axis=-1, keepdims=True)
        var = jnp.mean((y - mu) ** 2, axis=-1, keepdims=True)
        return (y - mu) * jax.lax.rsqrt(var + eps) * w + b

    # --- embedding + positional encoding over all N*L token rows at once ---
    x = jnp.dot(x_ref[...], emb_w_ref[...], preferred_element_type=jnp.float32)
    x = x + emb_b_ref[...] + pos_ref[...]                       # (N*L, H) f32
    # TODO(synk): nn.Dropout layers are identity here (inference / eval mode).

    for li in range(num_layers):                                 # static unroll
        # ---------------- multi-head self attention -------------------------
        qkv = jnp.dot(x.astype(jnp.bfloat16), wqkv_ref[li],
                      preferred_element_type=jnp.float32) + bqkv_ref[li]
        q = qkv[:, :H]
        k = qkv[:, H:2 * H]
        v = qkv[:, 2 * H:]

        # Per-(batch, head) softmax attention.  Head outputs go straight into
        # a VMEM scratch at static offsets (no jnp.concatenate relayout).
        for n in range(batch):
            r0 = n * seq
            for h in range(num_heads):
                c0 = h * hd
                qh = q[r0:r0 + seq, c0:c0 + hd]
                kh = k[r0:r0 + seq, c0:c0 + hd]
                vh = v[r0:r0 + seq, c0:c0 + hd]
                s = jnp.dot(qh, kh.T,
                            preferred_element_type=jnp.float32) * scale
                s = s - jnp.max(s, axis=-1, keepdims=True)
                p = jnp.exp(s)
                p = p * pl.reciprocal(jnp.sum(p, axis=-1, keepdims=True),
                                      approx=True)
                attn_scratch[pl.ds(r0, seq), pl.ds(c0, hd)] = jnp.dot(
                    p, vh, preferred_element_type=jnp.float32)

        attn = jnp.dot(attn_scratch[...].astype(jnp.bfloat16), wo_ref[li],
                       preferred_element_type=jnp.float32) + bo_ref[li]

        # ---------------- residual + LayerNorm 1 ----------------------------
        x = layer_norm(x + attn, ln1w_ref[li], ln1b_ref[li])

        # ---------------- feed-forward (ReLU) + residual + LayerNorm 2 -------
        ff = jnp.dot(x.astype(jnp.bfloat16), w1_ref[li],
                     preferred_element_type=jnp.float32) + b1_ref[li]
        ff = jnp.maximum(ff, 0.0)
        ff = jnp.dot(ff.astype(jnp.bfloat16), w2_ref[li],
                     preferred_element_type=jnp.float32) + b2_ref[li]
        x = layer_norm(x + ff, ln2w_ref[li], ln2b_ref[li])

    # ---------------- output projection --------------------------------------
    o_ref[...] = jnp.dot(x, fc_w_ref[...],
                         preferred_element_type=jnp.float32) + fc_b_ref[...]


# ---------------------------------------------------------------------------
# Wrapper
# ---------------------------------------------------------------------------
def forward(x_lnd, params, num_heads, num_layers):
    """x_lnd: (L, N, input_dim), exactly as the PyTorch module receives it."""
    L, N, Din = x_lnd.shape
    H = params["emb_w"].shape[1]
    Dout = params["fc_w"].shape[1]

    # Fold batch into the matmul row dimension: (N*L, Din).
    x_tok = jnp.transpose(x_lnd, (1, 0, 2)).reshape(N * L, Din)
    # pos_encoder[:, :x.size(1), :]  -> indexed by batch, broadcast over seq.
    pos = params["pos"][0, :N, :]                                   # (N, H)
    pos_tok = jnp.broadcast_to(pos[:, None, :], (N, L, H)).reshape(N * L, H)

    kernel = functools.partial(_fused_kernel, num_heads=num_heads,
                               num_layers=num_layers, batch=N, seq=L)
    out_tok = pl.pallas_call(
        kernel,
        out_shape=jax.ShapeDtypeStruct((N * L, Dout), jnp.float32),
        scratch_shapes=[pltpu.VMEM((N * L, H), jnp.float32)],
    )(x_tok, pos_tok,
      params["emb_w"], params["emb_b"],
      params["wqkv"], params["bqkv"], params["wo"], params["bo"],
      params["ln1w"], params["ln1b"], params["w1"], params["b1"],
      params["w2"], params["b2"], params["ln2w"], params["ln2b"],
      params["fc_w"], params["fc_b"])

    return jnp.transpose(out_tok.reshape(N, L, Dout), (1, 0, 2))   # (L, N, Dout)


# ---------------------------------------------------------------------------
# Pure-JAX reference (f32 math, bf16 weights upcast) for a correctness check
# ---------------------------------------------------------------------------
def ref_forward(x_lnd, params, num_heads, num_layers):
    L, N, Din = x_lnd.shape
    H = params["emb_w"].shape[1]
    hd = H // num_heads
    f32 = lambda a: a.astype(jnp.float32)

    def ln(y, w, b):
        mu = y.mean(-1, keepdims=True)
        var = ((y - mu) ** 2).mean(-1, keepdims=True)
        return (y - mu) / jnp.sqrt(var + 1e-5) * w + b

    x = jnp.transpose(x_lnd, (1, 0, 2))                     # (N, L, Din)
    x = x @ params["emb_w"] + params["emb_b"]
    x = x + params["pos"][0, :N, :][:, None, :]
    for li in range(num_layers):
        wqkv, bqkv = f32(params["wqkv"][li]), params["bqkv"][li]
        wo, bo = f32(params["wo"][li]), params["bo"][li]
        w1, b1 = f32(params["w1"][li]), params["b1"][li]
        w2, b2 = f32(params["w2"][li]), params["b2"][li]
        qkv = x @ wqkv + bqkv
        q, k, v = qkv[..., :H], qkv[..., H:2 * H], qkv[..., 2 * H:]
        outs = []
        for h in range(num_heads):
            qh = q[..., h * hd:(h + 1) * hd]
            kh = k[..., h * hd:(h + 1) * hd]
            vh = v[..., h * hd:(h + 1) * hd]
            s = jnp.einsum("nld,nmd->nlm", qh, kh) / jnp.sqrt(hd)
            outs.append(jnp.einsum("nlm,nmd->nld", jax.nn.softmax(s, -1), vh))
        attn = jnp.concatenate(outs, -1) @ wo + bo
        x = ln(x + attn, params["ln1w"][li], params["ln1b"][li])
        ff = jax.nn.relu(x @ w1 + b1) @ w2 + b2
        x = ln(x + ff, params["ln2w"][li], params["ln2b"][li])
    x = x @ params["fc_w"] + params["fc_b"]
    return jnp.transpose(x, (1, 0, 2))


# ---------------------------------------------------------------------------
# Deterministic synthetic parameters (weights stored as (in, out); per-layer
# weights stacked along a leading num_layers axis; matmul weights in bf16)
# ---------------------------------------------------------------------------
def init_params(key, input_dim, output_dim, hidden_dim, ff_dim, num_layers):
    ks = jax.random.split(key, 16)
    H, F = hidden_dim, ff_dim
    bf16 = jnp.bfloat16

    def w(k, shape, scale=0.02, dtype=jnp.float32):
        return (scale * jax.random.normal(k, shape)).astype(dtype)

    return {
        "emb_w": w(ks[0], (input_dim, H)),
        "emb_b": w(ks[1], (1, H)),
        "pos": jax.random.normal(ks[2], (1, 100, H), dtype=jnp.float32),
        "fc_w": w(ks[3], (H, output_dim)),
        "fc_b": w(ks[4], (1, output_dim)),
        "wqkv": w(ks[5], (num_layers, H, 3 * H), dtype=bf16),
        "bqkv": w(ks[6], (num_layers, 1, 3 * H)),
        "wo": w(ks[7], (num_layers, H, H), dtype=bf16),
        "bo": w(ks[8], (num_layers, 1, H)),
        "ln1w": 1.0 + w(ks[9], (num_layers, 1, H), scale=0.1),
        "ln1b": w(ks[10], (num_layers, 1, H)),
        "w1": w(ks[11], (num_layers, H, F), dtype=bf16),
        "b1": w(ks[12], (num_layers, 1, F)),
        "w2": w(ks[13], (num_layers, F, H), dtype=bf16),
        "b2": w(ks[14], (num_layers, 1, H)),
        "ln2w": 1.0 + w(ks[15], (num_layers, 1, H), scale=0.1),
        "ln2b": jnp.zeros((num_layers, 1, H), jnp.float32),
    }


if __name__ == "__main__":
    # Small shapes: seq(L)=8, batch(N)=2, input_dim=16, hidden=32, heads=4,
    # layers=2, output_dim=8.  dim_feedforward keeps PyTorch's default 2048.
    L, N = 8, 2
    input_dim, output_dim, hidden_dim = 16, 8, 32
    num_heads, num_layers, ff_dim = 4, 2, 2048

    key = jax.random.PRNGKey(0)
    k_x, k_p = jax.random.split(key)
    x = jax.random.normal(k_x, (L, N, input_dim), dtype=jnp.float32)
    params = init_params(k_p, input_dim, output_dim, hidden_dim, ff_dim,
                         num_layers)

    out = jax.block_until_ready(forward(x, params, num_heads, num_layers))
    ref = jax.block_until_ready(ref_forward(x, params, num_heads, num_layers))

    assert out.shape == (L, N, output_dim), out.shape
    max_err = float(np.max(np.abs(np.asarray(out) - np.asarray(ref))))
    assert np.allclose(np.asarray(out), np.asarray(ref), atol=1e-2, rtol=1e-2), \
        f"Pallas output does not match reference (max_err={max_err})"

    print("KERNEL_OK")
</pallas_src>

<mosaic_0001>
module attributes {stable_mosaic.version = 11 : i64} {
  func.func @_fused_kernel(%arg0: memref<16x16xf32, #tpu.memory_space<vmem>>, %arg1: memref<16x32xf32, #tpu.memory_space<vmem>>, %arg2: memref<16x32xf32, #tpu.memory_space<vmem>>, %arg3: memref<1x32xf32, #tpu.memory_space<vmem>>, %arg4: memref<2x32x96xbf16, #tpu.memory_space<vmem>>, %arg5: memref<2x1x96xf32, #tpu.memory_space<vmem>>, %arg6: memref<2x32x32xbf16, #tpu.memory_space<vmem>>, %arg7: memref<2x1x32xf32, #tpu.memory_space<vmem>>, %arg8: memref<2x1x32xf32, #tpu.memory_space<vmem>>, %arg9: memref<2x1x32xf32, #tpu.memory_space<vmem>>, %arg10: memref<2x32x2048xbf16, #tpu.memory_space<vmem>>, %arg11: memref<2x1x2048xf32, #tpu.memory_space<vmem>>, %arg12: memref<2x2048x32xbf16, #tpu.memory_space<vmem>>, %arg13: memref<2x1x32xf32, #tpu.memory_space<vmem>>, %arg14: memref<2x1x32xf32, #tpu.memory_space<vmem>>, %arg15: memref<2x1x32xf32, #tpu.memory_space<vmem>>, %arg16: memref<32x8xf32, #tpu.memory_space<vmem>>, %arg17: memref<1x8xf32, #tpu.memory_space<vmem>>, %arg18: memref<16x8xf32, #tpu.memory_space<vmem>>, %arg19: memref<16x32xf32, #tpu.memory_space<vmem>>) attributes {dimension_semantics = [], scalar_prefetch = 0 : i64, scratch_operands = 1 : i64, tpu.core_type = #tpu.core_type<tc>} {
    %c0 = arith.constant 0 : index
    %c0_0 = arith.constant 0 : index
    %0 = vector.load %arg0[%c0, %c0_0] : memref<16x16xf32, #tpu.memory_space<vmem>>, vector<16x16xf32>
    %c0_1 = arith.constant 0 : index
    %c0_2 = arith.constant 0 : index
    %1 = vector.load %arg2[%c0_1, %c0_2] : memref<16x32xf32, #tpu.memory_space<vmem>>, vector<16x32xf32>
    %cst = arith.constant dense<0.000000e+00> : vector<16x32xf32>
    %2 = tpu.matmul %0, %1, %cst {dimension_numbers = #tpu.dot_dimension_numbers<[1], [0], [0], [1], [0, 0, 1, 1], [], []>} : vector<16x16xf32>, vector<16x32xf32>, vector<16x32xf32> -> vector<16x32xf32>
    %c0_3 = arith.constant 0 : index
    %c0_4 = arith.constant 0 : index
    %3 = vector.load %arg3[%c0_3, %c0_4] : memref<1x32xf32, #tpu.memory_space<vmem>>, vector<1x32xf32>
    %4 = vector.broadcast %3 : vector<1x32xf32> to vector<16x32xf32>
    %5 = arith.addf %2, %4 : vector<16x32xf32>
    %c0_5 = arith.constant 0 : index
    %c0_6 = arith.constant 0 : index
    %6 = vector.load %arg1[%c0_5, %c0_6] : memref<16x32xf32, #tpu.memory_space<vmem>>, vector<16x32xf32>
    %7 = arith.addf %5, %6 : vector<16x32xf32>
    %8 = arith.truncf %7 : vector<16x32xf32> to vector<16x32xbf16>
    %c0_7 = arith.constant 0 : index
    %c0_8 = arith.constant 0 : index
    %c0_9 = arith.constant 0 : index
    %9 = vector.load %arg4[%c0_7, %c0_8, %c0_9] : memref<2x32x96xbf16, #tpu.memory_space<vmem>>, vector<1x32x96xbf16>
    %10 = vector.shape_cast %9 : vector<1x32x96xbf16> to vector<32x96xbf16>
    %cst_10 = arith.constant dense<0.000000e+00> : vector<16x96xf32>
    %11 = tpu.matmul %8, %10, %cst_10 {dimension_numbers = #tpu.dot_dimension_numbers<[1], [0], [0], [1], [0, 0, 1, 1], [], []>} : vector<16x32xbf16>, vector<32x96xbf16>, vector<16x96xf32> -> vector<16x96xf32>
    %c0_11 = arith.constant 0 : index
    %c0_12 = arith.constant 0 : index
    %c0_13 = arith.constant 0 : index
    %12 = vector.load %arg5[%c0_11, %c0_12, %c0_13] : memref<2x1x96xf32, #tpu.memory_space<vmem>>, vector<1x1x96xf32>
    %13 = vector.shape_cast %12 : vector<1x1x96xf32> to vector<1x96xf32>
    %14 = vector.broadcast %13 : vector<1x96xf32> to vector<16x96xf32>
    %15 = arith.addf %11, %14 : vector<16x96xf32>
    %16 = vector.extract_strided_slice %15 {offsets = [0, 0], sizes = [16, 32], strides = [1, 1]} : vector<16x96xf32> to vector<16x32xf32>
    %17 = vector.extract_strided_slice %15 {offsets = [0, 32], sizes = [16, 32], strides = [1, 1]} : vector<16x96xf32> to vector<16x32xf32>
    %18 = vector.extract_strided_slice %15 {offsets = [0, 64], sizes = [16, 32], strides = [1, 1]} : vector<16x96xf32> to vector<16x32xf32>
    %19 = vector.extract_strided_slice %16 {offsets = [0, 0], sizes = [8, 8], strides = [1, 1]} : vector<16x32xf32> to vector<8x8xf32>
    %20 = vector.extract_strided_slice %17 {offsets = [0, 0], sizes = [8, 8], strides = [1, 1]} : vector<16x32xf32> to vector<8x8xf32>
    %21 = vector.extract_strided_slice %18 {offsets = [0, 0], sizes = [8, 8], strides = [1, 1]} : vector<16x32xf32> to vector<8x8xf32>
    %22 = tpu.transpose %20, [1, 0] : vector<8x8xf32> -> vector<8x8xf32>
    %cst_14 = arith.constant dense<0.000000e+00> : vector<8x8xf32>
    %23 = tpu.matmul %19, %22, %cst_14 {dimension_numbers = #tpu.dot_dimension_numbers<[1], [0], [0], [1], [0, 0, 1, 1], [], []>} : vector<8x8xf32>, vector<8x8xf32>, vector<8x8xf32> -> vector<8x8xf32>
    %cst_15 = arith.constant 0.353553385 : f32
    %24 = vector.broadcast %cst_15 : f32 to vector<8x8xf32>
    %25 = arith.mulf %23, %24 : vector<8x8xf32>
    %cst_16 = arith.constant dense<0xFF800000> : vector<8xf32>
    %26 = vector.multi_reduction <maximumf>, %25, %cst_16 [1] : vector<8x8xf32> to vector<8xf32>
    %27 = vector.shape_cast %26 : vector<8xf32> to vector<8x1xf32>
    %28 = vector.broadcast %27 : vector<8x1xf32> to vector<8x8xf32>
    %29 = arith.subf %25, %28 : vector<8x8xf32>
    %30 = math.exp %29 : vector<8x8xf32>
    %cst_17 = arith.constant dense<0.000000e+00> : vector<8xf32>
    %31 = vector.multi_reduction <add>, %30, %cst_17 [1] : vector<8x8xf32> to vector<8xf32>
    %32 = vector.shape_cast %31 : vector<8xf32> to vector<8x1xf32>
    %33 = tpu.reciprocal %32 {approx = true} : vector<8x1xf32> -> vector<8x1xf32>
    %34 = vector.broadcast %33 : vector<8x1xf32> to vector<8x8xf32>
    %35 = arith.mulf %30, %34 : vector<8x8xf32>
    %cst_18 = arith.constant dense<0.000000e+00> : vector<8x8xf32>
    %36 = tpu.matmul %35, %21, %cst_18 {dimension_numbers = #tpu.dot_dimension_numbers<[1], [0], [0], [1], [0, 0, 1, 1], [], []>} : vector<8x8xf32>, vector<8x8xf32>, vector<8x8xf32> -> vector<8x8xf32>
    %c0_19 = arith.constant 0 : index
    %c0_20 = arith.constant 0 : index
    %37 = vector.load %arg19[%c0_19, %c0_20] : memref<16x32xf32, #tpu.memory_space<vmem>>, vector<8x8xf32>
    tpu.vector_store %arg19[%c0_19, %c0_20], %36 {strides = array<i32>} : memref<16x32xf32, #tpu.memory_space<vmem>>, vector<8x8xf32>,
    %38 = vector.extract_strided_slice %16 {offsets = [0, 8], sizes = [8, 8], strides = [1, 1]} : vector<16x32xf32> to vector<8x8xf32>
    %39 = vector.extract_strided_slice %17 {offsets = [0, 8], sizes = [8, 8], strides = [1, 1]} : vector<16x32xf32> to vector<8x8xf32>
    %40 = vector.extract_strided_slice %18 {offsets = [0, 8], sizes = [8, 8], strides = [1, 1]} : vector<16x32xf32> to vector<8x8xf32>
    %41 = tpu.transpose %39, [1, 0] : vector<8x8xf32> -> vector<8x8xf32>
    %cst_21 = arith.constant dense<0.000000e+00> : vector<8x8xf32>
    %42 = tpu.matmul %38, %41, %cst_21 {dimension_numbers = #tpu.dot_dimension_numbers<[1], [0], [0], [1], [0, 0, 1, 1], [], []>} : vector<8x8xf32>, vector<8x8xf32>, vector<8x8xf32> -> vector<8x8xf32>
    %cst_22 = arith.constant 0.353553385 : f32
    %43 = vector.broadcast %cst_22 : f32 to vector<8x8xf32>
    %44 = arith.mulf %42, %43 : vector<8x8xf32>
    %cst_23 = arith.constant dense<0xFF800000> : vector<8xf32>
    %45 = vector.multi_reduction <maximumf>, %44, %cst_23 [1] : vector<8x8xf32> to vector<8xf32>
    %46 = vector.shape_cast %45 : vector<8xf32> to vector<8x1xf32>
    %47 = vector.broadcast %46 : vector<8x1xf32> to vector<8x8xf32>
    %48 = arith.subf %44, %47 : vector<8x8xf32>
    %49 = math.exp %48 : vector<8x8xf32>
    %cst_24 = arith.constant dense<0.000000e+00> : vector<8xf32>
    %50 = vector.multi_reduction <add>, %49, %cst_24 [1] : vector<8x8xf32> to vector<8xf32>
    %51 = vector.shape_cast %50 : vector<8xf32> to vector<8x1xf32>
    %52 = tpu.reciprocal %51 {approx = true} : vector<8x1xf32> -> vector<8x1xf32>
    %53 = vector.broadcast %52 : vector<8x1xf32> to vector<8x8xf32>
    %54 = arith.mulf %49, %53 : vector<8x8xf32>
    %cst_25 = arith.constant dense<0.000000e+00> : vector<8x8xf32>
    %55 = tpu.matmul %54, %40, %cst_25 {dimension_numbers = #tpu.dot_dimension_numbers<[1], [0], [0], [1], [0, 0, 1, 1], [], []>} : vector<8x8xf32>, vector<8x8xf32>, vector<8x8xf32> -> vector<8x8xf32>
    %c0_26 = arith.constant 0 : index
    %c8 = arith.constant 8 : index
    %56 = vector.load %arg19[%c0_26, %c8] : memref<16x32xf32, #tpu.memory_space<vmem>>, vector<8x8xf32>
    tpu.vector_store %arg19[%c0_26, %c8], %55 {strides = array<i32>} : memref<16x32xf32, #tpu.memory_space<vmem>>, vector<8x8xf32>,
    %57 = vector.extract_strided_slice %16 {offsets = [0, 16], sizes = [8, 8], strides = [1, 1]} : vector<16x32xf32> to vector<8x8xf32>
    %58 = vector.extract_strided_slice %17 {offsets = [0, 16], sizes = [8, 8], strides = [1, 1]} : vector<16x32xf32> to vector<8x8xf32>
    %59 = vector.extract_strided_slice %18 {offsets = [0, 16], sizes = [8, 8], strides = [1, 1]} : vector<16x32xf32> to vector<8x8xf32>
    %60 = tpu.transpose %58, [1, 0] : vector<8x8xf32> -> vector<8x8xf32>
    %cst_27 = arith.constant dense<0.000000e+00> : vector<8x8xf32>
    %61 = tpu.matmul %57, %60, %cst_27 {dimension_numbers = #tpu.dot_dimension_numbers<[1], [0], [0], [1], [0, 0, 1, 1], [], []>} : vector<8x8xf32>, vector<8x8xf32>, vector<8x8xf32> -> vector<8x8xf32>
    %cst_28 = arith.constant 0.353553385 : f32
    %62 = vector.broadcast %cst_28 : f32 to vector<8x8xf32>
    %63 = arith.mulf %61, %62 : vector<8x8xf32>
    %cst_29 = arith.constant dense<0xFF800000> : vector<8xf32>
    %64 = vector.multi_reduction <maximumf>, %63, %cst_29 [1] : vector<8x8xf32> to vector<8xf32>
    %65 = vector.shape_cast %64 : vector<8xf32> to vector<8x1xf32>
    %66 = vector.broadcast %65 : vector<8x1xf32> to vector<8x8xf32>
    %67 = arith.subf %63, %66 : vector<8x8xf32>
    %68 = math.exp %67 : vector<8x8xf32>
    %cst_30 = arith.constant dense<0.000000e+00> : vector<8xf32>
    %69 = vector.multi_reduction <add>, %68, %cst_30 [1] : vector<8x8xf32> to vector<8xf32>
    %70 = vector.shape_cast %69 : vector<8xf32> to vector<8x1xf32>
    %71 = tpu.reciprocal %70 {approx = true} : vector<8x1xf32> -> vector<8x1xf32>
    %72 = vector.broadcast %71 : vector<8x1xf32> to vector<8x8xf32>
    %73 = arith.mulf %68, %72 : vector<8x8xf32>
    %cst_31 = arith.constant dense<0.000000e+00> : vector<8x8xf32>
    %74 = tpu.matmul %73, %59, %cst_31 {dimension_numbers = #tpu.dot_dimension_numbers<[1], [0], [0], [1], [0, 0, 1, 1], [], []>} : vector<8x8xf32>, vector<8x8xf32>, vector<8x8xf32> -> vector<8x8xf32>
    %c0_32 = arith.constant 0 : index
    %c16 = arith.constant 16 : index
    %75 = vector.load %arg19[%c0_32, %c16] : memref<16x32xf32, #tpu.memory_space<vmem>>, vector<8x8xf32>
    tpu.vector_store %arg19[%c0_32, %c16], %74 {strides = array<i32>} : memref<16x32xf32, #tpu.memory_space<vmem>>, vector<8x8xf32>,
    %76 = vector.extract_strided_slice %16 {offsets = [0, 24], sizes = [8, 8], strides = [1, 1]} : vector<16x32xf32> to vector<8x8xf32>
    %77 = vector.extract_strided_slice %17 {offsets = [0, 24], sizes = [8, 8], strides = [1, 1]} : vector<16x32xf32> to vector<8x8xf32>
    %78 = vector.extract_strided_slice %18 {offsets = [0, 24], sizes = [8, 8], strides = [1, 1]} : vector<16x32xf32> to vector<8x8xf32>
    %79 = tpu.transpose %77, [1, 0] : vector<8x8xf32> -> vector<8x8xf32>
    %cst_33 = arith.constant dense<0.000000e+00> : vector<8x8xf32>
    %80 = tpu.matmul %76, %79, %cst_33 {dimension_numbers = #tpu.dot_dimension_numbers<[1], [0], [0], [1], [0, 0, 1, 1], [], []>} : vector<8x8xf32>, vector<8x8xf32>, vector<8x8xf32> -> vector<8x8xf32>
    %cst_34 = arith.constant 0.353553385 : f32
    %81 = vector.broadcast %cst_34 : f32 to vector<8x8xf32>
    %82 = arith.mulf %80, %81 : vector<8x8xf32>
    %cst_35 = arith.constant dense<0xFF800000> : vector<8xf32>
    %83 = vector.multi_reduction <maximumf>, %82, %cst_35 [1] : vector<8x8xf32> to vector<8xf32>
    %84 = vector.shape_cast %83 : vector<8xf32> to vector<8x1xf32>
    %85 = vector.broadcast %84 : vector<8x1xf32> to vector<8x8xf32>
    %86 = arith.subf %82, %85 : vector<8x8xf32>
    %87 = math.exp %86 : vector<8x8xf32>
    %cst_36 = arith.constant dense<0.000000e+00> : vector<8xf32>
    %88 = vector.multi_reduction <add>, %87, %cst_36 [1] : vector<8x8xf32> to vector<8xf32>
    %89 = vector.shape_cast %88 : vector<8xf32> to vector<8x1xf32>
    %90 = tpu.reciprocal %89 {approx = true} : vector<8x1xf32> -> vector<8x1xf32>
    %91 = vector.broadcast %90 : vector<8x1xf32> to vector<8x8xf32>
    %92 = arith.mulf %87, %91 : vector<8x8xf32>
    %cst_37 = arith.constant dense<0.000000e+00> : vector<8x8xf32>
    %93 = tpu.matmul %92, %78, %cst_37 {dimension_numbers = #tpu.dot_dimension_numbers<[1], [0], [0], [1], [0, 0, 1, 1], [], []>} : vector<8x8xf32>, vector<8x8xf32>, vector<8x8xf32> -> vector<8x8xf32>
    %c0_38 = arith.constant 0 : index
    %c24 = arith.constant 24 : index
    %94 = vector.load %arg19[%c0_38, %c24] : memref<16x32xf32, #tpu.memory_space<vmem>>, vector<8x8xf32>
    tpu.vector_store %arg19[%c0_38, %c24], %93 {strides = array<i32>} : memref<16x32xf32, #tpu.memory_space<vmem>>, vector<8x8xf32>,
    %95 = vector.extract_strided_slice %16 {offsets = [8, 0], sizes = [8, 8], strides = [1, 1]} : vector<16x32xf32> to vector<8x8xf32>
    %96 = vector.extract_strided_slice %17 {offsets = [8, 0], sizes = [8, 8], strides = [1, 1]} : vector<16x32xf32> to vector<8x8xf32>
    %97 = vector.extract_strided_slice %18 {offsets = [8, 0], sizes = [8, 8], strides = [1, 1]} : vector<16x32xf32> to vector<8x8xf32>
    %98 = tpu.transpose %96, [1, 0] : vector<8x8xf32> -> vector<8x8xf32>
    %cst_39 = arith.constant dense<0.000000e+00> : vector<8x8xf32>
    %99 = tpu.matmul %95, %98, %cst_39 {dimension_numbers = #tpu.dot_dimension_numbers<[1], [0], [0], [1], [0, 0, 1, 1], [], []>} : vector<8x8xf32>, vector<8x8xf32>, vector<8x8xf32> -> vector<8x8xf32>
    %cst_40 = arith.constant 0.353553385 : f32
    %100 = vector.broadcast %cst_40 : f32 to vector<8x8xf32>
    %101 = arith.mulf %99, %100 : vector<8x8xf32>
    %cst_41 = arith.constant dense<0xFF800000> : vector<8xf32>
    %102 = vector.multi_reduction <maximumf>, %101, %cst_41 [1] : vector<8x8xf32> to vector<8xf32>
    %103 = vector.shape_cast %102 : vector<8xf32> to vector<8x1xf32>
    %104 = vector.broadcast %103 : vector<8x1xf32> to vector<8x8xf32>
    %105 = arith.subf %101, %104 : vector<8x8xf32>
    %106 = math.exp %105 : vector<8x8xf32>
    %cst_42 = arith.constant dense<0.000000e+00> : vector<8xf32>
    %107 = vector.multi_reduction <add>, %106, %cst_42 [1] : vector<8x8xf32> to vector<8xf32>
    %108 = vector.shape_cast %107 : vector<8xf32> to vector<8x1xf32>
    %109 = tpu.reciprocal %108 {approx = true} : vector<8x1xf32> -> vector<8x1xf32>
    %110 = vector.broadcast %109 : vector<8x1xf32> to vector<8x8xf32>
    %111 = arith.mulf %106, %110 : vector<8x8xf32>
    %cst_43 = arith.constant dense<0.000000e+00> : vector<8x8xf32>
    %112 = tpu.matmul %111, %97, %cst_43 {dimension_numbers = #tpu.dot_dimension_numbers<[1], [0], [0], [1], [0, 0, 1, 1], [], []>} : vector<8x8xf32>, vector<8x8xf32>, vector<8x8xf32> -> vector<8x8xf32>
    %c8_44 = arith.constant 8 : index
    %c0_45 = arith.constant 0 : index
    %113 = vector.load %arg19[%c8_44, %c0_45] : memref<16x32xf32, #tpu.memory_space<vmem>>, vector<8x8xf32>
    tpu.vector_store %arg19[%c8_44, %c0_45], %112 {strides = array<i32>} : memref<16x32xf32, #tpu.memory_space<vmem>>, vector<8x8xf32>,
    %114 = vector.extract_strided_slice %16 {offsets = [8, 8], sizes = [8, 8], strides = [1, 1]} : vector<16x32xf32> to vector<8x8xf32>
    %115 = vector.extract_strided_slice %17 {offsets = [8, 8], sizes = [8, 8], strides = [1, 1]} : vector<16x32xf32> to vector<8x8xf32>
    %116 = vector.extract_strided_slice %18 {offsets = [8, 8], sizes = [8, 8], strides = [1, 1]} : vector<16x32xf32> to vector<8x8xf32>
    %117 = tpu.transpose %115, [1, 0] : vector<8x8xf32> -> vector<8x8xf32>
    %cst_46 = arith.constant dense<0.000000e+00> : vector<8x8xf32>
    %118 = tpu.matmul %114, %117, %cst_46 {dimension_numbers = #tpu.dot_dimension_numbers<[1], [0], [0], [1], [0, 0, 1, 1], [], []>} : vector<8x8xf32>, vector<8x8xf32>, vector<8x8xf32> -> vector<8x8xf32>
    %cst_47 = arith.constant 0.353553385 : f32
    %119 = vector.broadcast %cst_47 : f32 to vector<8x8xf32>
    %120 = arith.mulf %118, %119 : vector<8x8xf32>
    %cst_48 = arith.constant dense<0xFF800000> : vector<8xf32>
    %121 = vector.multi_reduction <maximumf>, %120, %cst_48 [1] : vector<8x8xf32> to vector<8xf32>
    %122 = vector.shape_cast %121 : vector<8xf32> to vector<8x1xf32>
    %123 = vector.broadcast %122 : vector<8x1xf32> to vector<8x8xf32>
    %124 = arith.subf %120, %123 : vector<8x8xf32>
    %125 = math.exp %124 : vector<8x8xf32>
    %cst_49 = arith.constant dense<0.000000e+00> : vector<8xf32>
    %126 = vector.multi_reduction <add>, %125, %cst_49 [1] : vector<8x8xf32> to vector<8xf32>
    %127 = vector.shape_cast %126 : vector<8xf32> to vector<8x1xf32>
    %128 = tpu.reciprocal %127 {approx = true} : vector<8x1xf32> -> vector<8x1xf32>
    %129 = vector.broadcast %128 : vector<8x1xf32> to vector<8x8xf32>
    %130 = arith.mulf %125, %129 : vector<8x8xf32>
    %cst_50 = arith.constant dense<0.000000e+00> : vector<8x8xf32>
    %131 = tpu.matmul %130, %116, %cst_50 {dimension_numbers = #tpu.dot_dimension_numbers<[1], [0], [0], [1], [0, 0, 1, 1], [], []>} : vector<8x8xf32>, vector<8x8xf32>, vector<8x8xf32> -> vector<8x8xf32>
    %c8_51 = arith.constant 8 : index
    %c8_52 = arith.constant 8 : index
    %132 = vector.load %arg19[%c8_51, %c8_52] : memref<16x32xf32, #tpu.memory_space<vmem>>, vector<8x8xf32>
    tpu.vector_store %arg19[%c8_51, %c8_52], %131 {strides = array<i32>} : memref<16x32xf32, #tpu.memory_space<vmem>>, vector<8x8xf32>,
    %133 = vector.extract_strided_slice %16 {offsets = [8, 16], sizes = [8, 8], strides = [1, 1]} : vector<16x32xf32> to vector<8x8xf32>
    %134 = vector.extract_strided_slice %17 {offsets = [8, 16], sizes = [8, 8], strides = [1, 1]} : vector<16x32xf32> to vector<8x8xf32>
    %135 = vector.extract_strided_slice %18 {offsets = [8, 16], sizes = [8, 8], strides = [1, 1]} : vector<16x32xf32> to vector<8x8xf32>
    %136 = tpu.transpose %134, [1, 0] : vector<8x8xf32> -> vector<8x8xf32>
    %cst_53 = arith.constant dense<0.000000e+00> : vector<8x8xf32>
    %137 = tpu.matmul %133, %136, %cst_53 {dimension_numbers = #tpu.dot_dimension_numbers<[1], [0], [0], [1], [0, 0, 1, 1], [], []>} : vector<8x8xf32>, vector<8x8xf32>, vector<8x8xf32> -> vector<8x8xf32>
    %cst_54 = arith.constant 0.353553385 : f32
    %138 = vector.broadcast %cst_54 : f32 to vector<8x8xf32>
    %139 = arith.mulf %137, %138 : vector<8x8xf32>
    %cst_55 = arith.constant dense<0xFF800000> : vector<8xf32>
    %140 = vector.multi_reduction <maximumf>, %139, %cst_55 [1] : vector<8x8xf32> to vector<8xf32>
    %141 = vector.shape_cast %140 : vector<8xf32> to vector<8x1xf32>
    %142 = vector.broadcast %141 : vector<8x1xf32> to vector<8x8xf32>
    %143 = arith.subf %139, %142 : vector<8x8xf32>
    %144 = math.exp %143 : vector<8x8xf32>
    %cst_56 = arith.constant dense<0.000000e+00> : vector<8xf32>
    %145 = vector.multi_reduction <add>, %144, %cst_56 [1] : vector<8x8xf32> to vector<8xf32>
    %146 = vector.shape_cast %145 : vector<8xf32> to vector<8x1xf32>
    %147 = tpu.reciprocal %146 {approx = true} : vector<8x1xf32> -> vector<8x1xf32>
    %148 = vector.broadcast %147 : vector<8x1xf32> to vector<8x8xf32>
    %149 = arith.mulf %144, %148 : vector<8x8xf32>
    %cst_57 = arith.constant dense<0.000000e+00> : vector<8x8xf32>
    %150 = tpu.matmul %149, %135, %cst_57 {dimension_numbers = #tpu.dot_dimension_numbers<[1], [0], [0], [1], [0, 0, 1, 1], [], []>} : vector<8x8xf32>, vector<8x8xf32>, vector<8x8xf32> -> vector<8x8xf32>
    %c8_58 = arith.constant 8 : index
    %c16_59 = arith.constant 16 : index
    %151 = vector.load %arg19[%c8_58, %c16_59] : memref<16x32xf32, #tpu.memory_space<vmem>>, vector<8x8xf32>
    tpu.vector_store %arg19[%c8_58, %c16_59], %150 {strides = array<i32>} : memref<16x32xf32, #tpu.memory_space<vmem>>, vector<8x8xf32>,
    %152 = vector.extract_strided_slice %16 {offsets = [8, 24], sizes = [8, 8], strides = [1, 1]} : vector<16x32xf32> to vector<8x8xf32>
    %153 = vector.extract_strided_slice %17 {offsets = [8, 24], sizes = [8, 8], strides = [1, 1]} : vector<16x32xf32> to vector<8x8xf32>
    %154 = vector.extract_strided_slice %18 {offsets = [8, 24], sizes = [8, 8], strides = [1, 1]} : vector<16x32xf32> to vector<8x8xf32>
    %155 = tpu.transpose %153, [1, 0] : vector<8x8xf32> -> vector<8x8xf32>
    %cst_60 = arith.constant dense<0.000000e+00> : vector<8x8xf32>
    %156 = tpu.matmul %152, %155, %cst_60 {dimension_numbers = #tpu.dot_dimension_numbers<[1], [0], [0], [1], [0, 0, 1, 1], [], []>} : vector<8x8xf32>, vector<8x8xf32>, vector<8x8xf32> -> vector<8x8xf32>
    %cst_61 = arith.constant 0.353553385 : f32
    %157 = vector.broadcast %cst_61 : f32 to vector<8x8xf32>
    %158 = arith.mulf %156, %157 : vector<8x8xf32>
    %cst_62 = arith.constant dense<0xFF800000> : vector<8xf32>
    %159 = vector.multi_reduction <maximumf>, %158, %cst_62 [1] : vector<8x8xf32> to vector<8xf32>
    %160 = vector.shape_cast %159 : vector<8xf32> to vector<8x1xf32>
    %161 = vector.broadcast %160 : vector<8x1xf32> to vector<8x8xf32>
    %162 = arith.subf %158, %161 : vector<8x8xf32>
    %163 = math.exp %162 : vector<8x8xf32>
    %cst_63 = arith.constant dense<0.000000e+00> : vector<8xf32>
    %164 = vector.multi_reduction <add>, %163, %cst_63 [1] : vector<8x8xf32> to vector<8xf32>
    %165 = vector.shape_cast %164 : vector<8xf32> to vector<8x1xf32>
    %166 = tpu.reciprocal %165 {approx = true} : vector<8x1xf32> -> vector<8x1xf32>
    %167 = vector.broadcast %166 : vector<8x1xf32> to vector<8x8xf32>
    %168 = arith.mulf %163, %167 : vector<8x8xf32>
    %cst_64 = arith.constant dense<0.000000e+00> : vector<8x8xf32>
    %169 = tpu.matmul %168, %154, %cst_64 {dimension_numbers = #tpu.dot_dimension_numbers<[1], [0], [0], [1], [0, 0, 1, 1], [], []>} : vector<8x8xf32>, vector<8x8xf32>, vector<8x8xf32> -> vector<8x8xf32>
    %c8_65 = arith.constant 8 : index
    %c24_66 = arith.constant 24 : index
    %170 = vector.load %arg19[%c8_65, %c24_66] : memref<16x32xf32, #tpu.memory_space<vmem>>, vector<8x8xf32>
    tpu.vector_store %arg19[%c8_65, %c24_66], %169 {strides = array<i32>} : memref<16x32xf32, #tpu.memory_space<vmem>>, vector<8x8xf32>,
    %c0_67 = arith.constant 0 : index
    %c0_68 = arith.constant 0 : index
    %171 = vector.load %arg19[%c0_67, %c0_68] : memref<16x32xf32, #tpu.memory_space<vmem>>, vector<16x32xf32>
    %172 = arith.truncf %171 : vector<16x32xf32> to vector<16x32xbf16>
    %c0_69 = arith.constant 0 : index
    %c0_70 = arith.constant 0 : index
    %c0_71 = arith.constant 0 : index
    %173 = vector.load %arg6[%c0_69, %c0_70, %c0_71] : memref<2x32x32xbf16, #tpu.memory_space<vmem>>, vector<1x32x32xbf16>
    %174 = vector.shape_cast %173 : vector<1x32x32xbf16> to vector<32x32xbf16>
    %cst_72 = arith.constant dense<0.000000e+00> : vector<16x32xf32>
    %175 = tpu.matmul %172, %174, %cst_72 {dimension_numbers = #tpu.dot_dimension_numbers<[1], [0], [0], [1], [0, 0, 1, 1], [], []>} : vector<16x32xbf16>, vector<32x32xbf16>, vector<16x32xf32> -> vector<16x32xf32>
    %c0_73 = arith.constant 0 : index
    %c0_74 = arith.constant 0 : index
    %c0_75 = arith.constant 0 : index
    %176 = vector.load %arg7[%c0_73, %c0_74, %c0_75] : memref<2x1x32xf32, #tpu.memory_space<vmem>>, vector<1x1x32xf32>
    %177 = vector.shape_cast %176 : vector<1x1x32xf32> to vector<1x32xf32>
    %178 = vector.broadcast %177 : vector<1x32xf32> to vector<16x32xf32>
    %179 = arith.addf %175, %178 : vector<16x32xf32>
    %180 = arith.addf %7, %179 : vector<16x32xf32>
    %c0_76 = arith.constant 0 : index
    %c0_77 = arith.constant 0 : index
    %c0_78 = arith.constant 0 : index
    %181 = vector.load %arg8[%c0_76, %c0_77, %c0_78] : memref<2x1x32xf32, #tpu.memory_space<vmem>>, vector<1x1x32xf32>
    %182 = vector.shape_cast %181 : vector<1x1x32xf32> to vector<1x32xf32>
    %c0_79 = arith.constant 0 : index
    %c0_80 = arith.constant 0 : index
    %c0_81 = arith.constant 0 : index
    %183 = vector.load %arg9[%c0_79, %c0_80, %c0_81] : memref<2x1x32xf32, #tpu.memory_space<vmem>>, vector<1x1x32xf32>
    %184 = vector.shape_cast %183 : vector<1x1x32xf32> to vector<1x32xf32>
    %cst_82 = arith.constant dense<0.000000e+00> : vector<16xf32>
    %185 = vector.multi_reduction <add>, %180, %cst_82 [1] : vector<16x32xf32> to vector<16xf32>
    %186 = vector.shape_cast %185 : vector<16xf32> to vector<16x1xf32>
    %cst_83 = arith.constant 3.200000e+01 : f32
    %187 = vector.broadcast %cst_83 : f32 to vector<16x1xf32>
    %188 = arith.divf %186, %187 : vector<16x1xf32>
    %189 = vector.broadcast %188 : vector<16x1xf32> to vector<16x32xf32>
    %190 = arith.subf %180, %189 : vector<16x32xf32>
    %191 = arith.mulf %190, %190 : vector<16x32xf32>
    %cst_84 = arith.constant dense<0.000000e+00> : vector<16xf32>
    %192 = vector.multi_reduction <add>, %191, %cst_84 [1] : vector<16x32xf32> to vector<16xf32>
    %193 = vector.shape_cast %192 : vector<16xf32> to vector<16x1xf32>
    %cst_85 = arith.constant 3.200000e+01 : f32
    %194 = vector.broadcast %cst_85 : f32 to vector<16x1xf32>
    %195 = arith.divf %193, %194 : vector<16x1xf32>
    %196 = vector.broadcast %188 : vector<16x1xf32> to vector<16x32xf32>
    %197 = arith.subf %180, %196 : vector<16x32xf32>
    %cst_86 = arith.constant 9.99999974E-6 : f32
    %198 = vector.broadcast %cst_86 : f32 to vector<16x1xf32>
    %199 = arith.addf %195, %198 : vector<16x1xf32>
    %200 = math.rsqrt %199 : vector<16x1xf32>
    %201 = vector.broadcast %200 : vector<16x1xf32> to vector<16x32xf32>
    %202 = arith.mulf %197, %201 : vector<16x32xf32>
    %203 = vector.broadcast %182 : vector<1x32xf32> to vector<16x32xf32>
    %204 = arith.mulf %202, %203 : vector<16x32xf32>
    %205 = vector.broadcast %184 : vector<1x32xf32> to vector<16x32xf32>
    %206 = arith.addf %204, %205 : vector<16x32xf32>
    %207 = arith.truncf %206 : vector<16x32xf32> to vector<16x32xbf16>
    %c0_87 = arith.constant 0 : index
    %c0_88 = arith.constant 0 : index
    %c0_89 = arith.constant 0 : index
    %208 = vector.load %arg10[%c0_87, %c0_88, %c0_89] : memref<2x32x2048xbf16, #tpu.memory_space<vmem>>, vector<1x32x2048xbf16>
    %209 = vector.shape_cast %208 : vector<1x32x2048xbf16> to vector<32x2048xbf16>
    %cst_90 = arith.constant dense<0.000000e+00> : vector<16x2048xf32>
    %210 = tpu.matmul %207, %209, %cst_90 {dimension_numbers = #tpu.dot_dimension_numbers<[1], [0], [0], [1], [0, 0, 1, 1], [], []>} : vector<16x32xbf16>, vector<32x2048xbf16>, vector<16x2048xf32> -> vector<16x2048xf32>
    %c0_91 = arith.constant 0 : index
    %c0_92 = arith.constant 0 : index
    %c0_93 = arith.constant 0 : index
    %211 = vector.load %arg11[%c0_91, %c0_92, %c0_93] : memref<2x1x2048xf32, #tpu.memory_space<vmem>>, vector<1x1x2048xf32>
    %212 = vector.shape_cast %211 : vector<1x1x2048xf32> to vector<1x2048xf32>
    %213 = vector.broadcast %212 : vector<1x2048xf32> to vector<16x2048xf32>
    %214 = arith.addf %210, %213 : vector<16x2048xf32>
    %cst_94 = arith.constant 0.000000e+00 : f32
    %215 = vector.broadcast %cst_94 : f32 to vector<16x2048xf32>
    %216 = arith.maximumf %214, %215 : vector<16x2048xf32>
    %217 = arith.truncf %216 : vector<16x2048xf32> to vector<16x2048xbf16>
    %c0_95 = arith.constant 0 : index
    %c0_96 = arith.constant 0 : index
    %c0_97 = arith.constant 0 : index
    %218 = vector.load %arg12[%c0_95, %c0_96, %c0_97] : memref<2x2048x32xbf16, #tpu.memory_space<vmem>>, vector<1x2048x32xbf16>
    %219 = vector.shape_cast %218 : vector<1x2048x32xbf16> to vector<2048x32xbf16>
    %cst_98 = arith.constant dense<0.000000e+00> : vector<16x32xf32>
    %220 = tpu.matmul %217, %219, %cst_98 {dimension_numbers = #tpu.dot_dimension_numbers<[1], [0], [0], [1], [0, 0, 1, 1], [], []>} : vector<16x2048xbf16>, vector<2048x32xbf16>, vector<16x32xf32> -> vector<16x32xf32>
    %c0_99 = arith.constant 0 : index
    %c0_100 = arith.constant 0 : index
    %c0_101 = arith.constant 0 : index
    %221 = vector.load %arg13[%c0_99, %c0_100, %c0_101] : memref<2x1x32xf32, #tpu.memory_space<vmem>>, vector<1x1x32xf32>
    %222 = vector.shape_cast %221 : vector<1x1x32xf32> to vector<1x32xf32>
    %223 = vector.broadcast %222 : vector<1x32xf32> to vector<16x32xf32>
    %224 = arith.addf %220, %223 : vector<16x32xf32>
    %225 = arith.addf %206, %224 : vector<16x32xf32>
    %c0_102 = arith.constant 0 : index
    %c0_103 = arith.constant 0 : index
    %c0_104 = arith.constant 0 : index
    %226 = vector.load %arg14[%c0_102, %c0_103, %c0_104] : memref<2x1x32xf32, #tpu.memory_space<vmem>>, vector<1x1x32xf32>
    %227 = vector.shape_cast %226 : vector<1x1x32xf32> to vector<1x32xf32>
    %c0_105 = arith.constant 0 : index
    %c0_106 = arith.constant 0 : index
    %c0_107 = arith.constant 0 : index
    %228 = vector.load %arg15[%c0_105, %c0_106, %c0_107] : memref<2x1x32xf32, #tpu.memory_space<vmem>>, vector<1x1x32xf32>
    %229 = vector.shape_cast %228 : vector<1x1x32xf32> to vector<1x32xf32>
    %cst_108 = arith.constant dense<0.000000e+00> : vector<16xf32>
    %230 = vector.multi_reduction <add>, %225, %cst_108 [1] : vector<16x32xf32> to vector<16xf32>
    %231 = vector.shape_cast %230 : vector<16xf32> to vector<16x1xf32>
    %cst_109 = arith.constant 3.200000e+01 : f32
    %232 = vector.broadcast %cst_109 : f32 to vector<16x1xf32>
    %233 = arith.divf %231, %232 : vector<16x1xf32>
    %234 = vector.broadcast %233 : vector<16x1xf32> to vector<16x32xf32>
    %235 = arith.subf %225, %234 : vector<16x32xf32>
    %236 = arith.mulf %235, %235 : vector<16x32xf32>
    %cst_110 = arith.constant dense<0.000000e+00> : vector<16xf32>
    %237 = vector.multi_reduction <add>, %236, %cst_110 [1] : vector<16x32xf32> to vector<16xf32>
    %238 = vector.shape_cast %237 : vector<16xf32> to vector<16x1xf32>
    %cst_111 = arith.constant 3.200000e+01 : f32
    %239 = vector.broadcast %cst_111 : f32 to vector<16x1xf32>
    %240 = arith.divf %238, %239 : vector<16x1xf32>
    %241 = vector.broadcast %233 : vector<16x1xf32> to vector<16x32xf32>
    %242 = arith.subf %225, %241 : vector<16x32xf32>
    %cst_112 = arith.constant 9.99999974E-6 : f32
    %243 = vector.broadcast %cst_112 : f32 to vector<16x1xf32>
    %244 = arith.addf %240, %243 : vector<16x1xf32>
    %245 = math.rsqrt %244 : vector<16x1xf32>
    %246 = vector.broadcast %245 : vector<16x1xf32> to vector<16x32xf32>
    %247 = arith.mulf %242, %246 : vector<16x32xf32>
    %248 = vector.broadcast %227 : vector<1x32xf32> to vector<16x32xf32>
    %249 = arith.mulf %247, %248 : vector<16x32xf32>
    %250 = vector.broadcast %229 : vector<1x32xf32> to vector<16x32xf32>
    %251 = arith.addf %249, %250 : vector<16x32xf32>
    %252 = arith.truncf %251 : vector<16x32xf32> to vector<16x32xbf16>
    %c1 = arith.constant 1 : index
    %c0_113 = arith.constant 0 : index
    %c0_114 = arith.constant 0 : index
    %253 = vector.load %arg4[%c1, %c0_113, %c0_114] : memref<2x32x96xbf16, #tpu.memory_space<vmem>>, vector<1x32x96xbf16>
    %254 = vector.shape_cast %253 : vector<1x32x96xbf16> to vector<32x96xbf16>
    %cst_115 = arith.constant dense<0.000000e+00> : vector<16x96xf32>
    %255 = tpu.matmul %252, %254, %cst_115 {dimension_numbers = #tpu.dot_dimension_numbers<[1], [0], [0], [1], [0, 0, 1, 1], [], []>} : vector<16x32xbf16>, vector<32x96xbf16>, vector<16x96xf32> -> vector<16x96xf32>
    %c1_116 = arith.constant 1 : index
    %c0_117 = arith.constant 0 : index
    %c0_118 = arith.constant 0 : index
    %256 = vector.load %arg5[%c1_116, %c0_117, %c0_118] : memref<2x1x96xf32, #tpu.memory_space<vmem>>, vector<1x1x96xf32>
    %257 = vector.shape_cast %256 : vector<1x1x96xf32> to vector<1x96xf32>
    %258 = vector.broadcast %257 : vector<1x96xf32> to vector<16x96xf32>
    %259 = arith.addf %255, %258 : vector<16x96xf32>
    %260 = vector.extract_strided_slice %259 {offsets = [0, 0], sizes = [16, 32], strides = [1, 1]} : vector<16x96xf32> to vector<16x32xf32>
    %261 = vector.extract_strided_slice %259 {offsets = [0, 32], sizes = [16, 32], strides = [1, 1]} : vector<16x96xf32> to vector<16x32xf32>
    %262 = vector.extract_strided_slice %259 {offsets = [0, 64], sizes = [16, 32], strides = [1, 1]} : vector<16x96xf32> to vector<16x32xf32>
    %263 = vector.extract_strided_slice %260 {offsets = [0, 0], sizes = [8, 8], strides = [1, 1]} : vector<16x32xf32> to vector<8x8xf32>
    %264 = vector.extract_strided_slice %261 {offsets = [0, 0], sizes = [8, 8], strides = [1, 1]} : vector<16x32xf32> to vector<8x8xf32>
    %265 = vector.extract_strided_slice %262 {offsets = [0, 0], sizes = [8, 8], strides = [1, 1]} : vector<16x32xf32> to vector<8x8xf32>
    %266 = tpu.transpose %264, [1, 0] : vector<8x8xf32> -> vector<8x8xf32>
    %cst_119 = arith.constant dense<0.000000e+00> : vector<8x8xf32>
    %267 = tpu.matmul %263, %266, %cst_119 {dimension_numbers = #tpu.dot_dimension_numbers<[1], [0], [0], [1], [0, 0, 1, 1], [], []>} : vector<8x8xf32>, vector<8x8xf32>, vector<8x8xf32> -> vector<8x8xf32>
    %cst_120 = arith.constant 0.353553385 : f32
    %268 = vector.broadcast %cst_120 : f32 to vector<8x8xf32>
    %269 = arith.mulf %267, %268 : vector<8x8xf32>
    %cst_121 = arith.constant dense<0xFF800000> : vector<8xf32>
    %270 = vector.multi_reduction <maximumf>, %269, %cst_121 [1] : vector<8x8xf32> to vector<8xf32>
    %271 = vector.shape_cast %270 : vector<8xf32> to vector<8x1xf32>
    %272 = vector.broadcast %271 : vector<8x1xf32> to vector<8x8xf32>
    %273 = arith.subf %269, %272 : vector<8x8xf32>
    %274 = math.exp %273 : vector<8x8xf32>
    %cst_122 = arith.constant dense<0.000000e+00> : vector<8xf32>
    %275 = vector.multi_reduction <add>, %274, %cst_122 [1] : vector<8x8xf32> to vector<8xf32>
    %276 = vector.shape_cast %275 : vector<8xf32> to vector<8x1xf32>
    %277 = tpu.reciprocal %276 {approx = true} : vector<8x1xf32> -> vector<8x1xf32>
    %278 = vector.broadcast %277 : vector<8x1xf32> to vector<8x8xf32>
    %279 = arith.mulf %274, %278 : vector<8x8xf32>
    %cst_123 = arith.constant dense<0.000000e+00> : vector<8x8xf32>
    %280 = tpu.matmul %279, %265, %cst_123 {dimension_numbers = #tpu.dot_dimension_numbers<[1], [0], [0], [1], [0, 0, 1, 1], [], []>} : vector<8x8xf32>, vector<8x8xf32>, vector<8x8xf32> -> vector<8x8xf32>
    %c0_124 = arith.constant 0 : index
    %c0_125 = arith.constant 0 : index
    %281 = vector.load %arg19[%c0_124, %c0_125] : memref<16x32xf32, #tpu.memory_space<vmem>>, vector<8x8xf32>
    tpu.vector_store %arg19[%c0_124, %c0_125], %280 {strides = array<i32>} : memref<16x32xf32, #tpu.memory_space<vmem>>, vector<8x8xf32>,
    %282 = vector.extract_strided_slice %260 {offsets = [0, 8], sizes = [8, 8], strides = [1, 1]} : vector<16x32xf32> to vector<8x8xf32>
    %283 = vector.extract_strided_slice %261 {offsets = [0, 8], sizes = [8, 8], strides = [1, 1]} : vector<16x32xf32> to vector<8x8xf32>
    %284 = vector.extract_strided_slice %262 {offsets = [0, 8], sizes = [8, 8], strides = [1, 1]} : vector<16x32xf32> to vector<8x8xf32>
    %285 = tpu.transpose %283, [1, 0] : vector<8x8xf32> -> vector<8x8xf32>
    %cst_126 = arith.constant dense<0.000000e+00> : vector<8x8xf32>
    %286 = tpu.matmul %282, %285, %cst_126 {dimension_numbers = #tpu.dot_dimension_numbers<[1], [0], [0], [1], [0, 0, 1, 1], [], []>} : vector<8x8xf32>, vector<8x8xf32>, vector<8x8xf32> -> vector<8x8xf32>
    %cst_127 = arith.constant 0.353553385 : f32
    %287 = vector.broadcast %cst_127 : f32 to vector<8x8xf32>
    %288 = arith.mulf %286, %287 : vector<8x8xf32>
    %cst_128 = arith.constant dense<0xFF800000> : vector<8xf32>
    %289 = vector.multi_reduction <maximumf>, %288, %cst_128 [1] : vector<8x8xf32> to vector<8xf32>
    %290 = vector.shape_cast %289 : vector<8xf32> to vector<8x1xf32>
    %291 = vector.broadcast %290 : vector<8x1xf32> to vector<8x8xf32>
    %292 = arith.subf %288, %291 : vector<8x8xf32>
    %293 = math.exp %292 : vector<8x8xf32>
    %cst_129 = arith.constant dense<0.000000e+00> : vector<8xf32>
    %294 = vector.multi_reduction <add>, %293, %cst_129 [1] : vector<8x8xf32> to vector<8xf32>
    %295 = vector.shape_cast %294 : vector<8xf32> to vector<8x1xf32>
    %296 = tpu.reciprocal %295 {approx = true} : vector<8x1xf32> -> vector<8x1xf32>
    %297 = vector.broadcast %296 : vector<8x1xf32> to vector<8x8xf32>
    %298 = arith.mulf %293, %297 : vector<8x8xf32>
    %cst_130 = arith.constant dense<0.000000e+00> : vector<8x8xf32>
    %299 = tpu.matmul %298, %284, %cst_130 {dimension_numbers = #tpu.dot_dimension_numbers<[1], [0], [0], [1], [0, 0, 1, 1], [], []>} : vector<8x8xf32>, vector<8x8xf32>, vector<8x8xf32> -> vector<8x8xf32>
    %c0_131 = arith.constant 0 : index
    %c8_132 = arith.constant 8 : index
    %300 = vector.load %arg19[%c0_131, %c8_132] : memref<16x32xf32, #tpu.memory_space<vmem>>, vector<8x8xf32>
    tpu.vector_store %arg19[%c0_131, %c8_132], %299 {strides = array<i32>} : memref<16x32xf32, #tpu.memory_space<vmem>>, vector<8x8xf32>,
    %301 = vector.extract_strided_slice %260 {offsets = [0, 16], sizes = [8, 8], strides = [1, 1]} : vector<16x32xf32> to vector<8x8xf32>
    %302 = vector.extract_strided_slice %261 {offsets = [0, 16], sizes = [8, 8], strides = [1, 1]} : vector<16x32xf32> to vector<8x8xf32>
    %303 = vector.extract_strided_slice %262 {offsets = [0, 16], sizes = [8, 8], strides = [1, 1]} : vector<16x32xf32> to vector<8x8xf32>
    %304 = tpu.transpose %302, [1, 0] : vector<8x8xf32> -> vector<8x8xf32>
    %cst_133 = arith.constant dense<0.000000e+00> : vector<8x8xf32>
    %305 = tpu.matmul %301, %304, %cst_133 {dimension_numbers = #tpu.dot_dimension_numbers<[1], [0], [0], [1], [0, 0, 1, 1], [], []>} : vector<8x8xf32>, vector<8x8xf32>, vector<8x8xf32> -> vector<8x8xf32>
    %cst_134 = arith.constant 0.353553385 : f32
    %306 = vector.broadcast %cst_134 : f32 to vector<8x8xf32>
    %307 = arith.mulf %305, %306 : vector<8x8xf32>
    %cst_135 = arith.constant dense<0xFF800000> : vector<8xf32>
    %308 = vector.multi_reduction <maximumf>, %307, %cst_135 [1] : vector<8x8xf32> to vector<8xf32>
    %309 = vector.shape_cast %308 : vector<8xf32> to vector<8x1xf32>
    %310 = vector.broadcast %309 : vector<8x1xf32> to vector<8x8xf32>
    %311 = arith.subf %307, %310 : vector<8x8xf32>
    %312 = math.exp %311 : vector<8x8xf32>
    %cst_136 = arith.constant dense<0.000000e+00> : vector<8xf32>
    %313 = vector.multi_reduction <add>, %312, %cst_136 [1] : vector<8x8xf32> to vector<8xf32>
    %314 = vector.shape_cast %313 : vector<8xf32> to vector<8x1xf32>
    %315 = tpu.reciprocal %314 {approx = true} : vector<8x1xf32> -> vector<8x1xf32>
    %316 = vector.broadcast %315 : vector<8x1xf32> to vector<8x8xf32>
    %317 = arith.mulf %312, %316 : vector<8x8xf32>
    %cst_137 = arith.constant dense<0.000000e+00> : vector<8x8xf32>
    %318 = tpu.matmul %317, %303, %cst_137 {dimension_numbers = #tpu.dot_dimension_numbers<[1], [0], [0], [1], [0, 0, 1, 1], [], []>} : vector<8x8xf32>, vector<8x8xf32>, vector<8x8xf32> -> vector<8x8xf32>
    %c0_138 = arith.constant 0 : index
    %c16_139 = arith.constant 16 : index
    %319 = vector.load %arg19[%c0_138, %c16_139] : memref<16x32xf32, #tpu.memory_space<vmem>>, vector<8x8xf32>
    tpu.vector_store %arg19[%c0_138, %c16_139], %318 {strides = array<i32>} : memref<16x32xf32, #tpu.memory_space<vmem>>, vector<8x8xf32>,
    %320 = vector.extract_strided_slice %260 {offsets = [0, 24], sizes = [8, 8], strides = [1, 1]} : vector<16x32xf32> to vector<8x8xf32>
    %321 = vector.extract_strided_slice %261 {offsets = [0, 24], sizes = [8, 8], strides = [1, 1]} : vector<16x32xf32> to vector<8x8xf32>
    %322 = vector.extract_strided_slice %262 {offsets = [0, 24], sizes = [8, 8], strides = [1, 1]} : vector<16x32xf32> to vector<8x8xf32>
    %323 = tpu.transpose %321, [1, 0] : vector<8x8xf32> -> vector<8x8xf32>
    %cst_140 = arith.constant dense<0.000000e+00> : vector<8x8xf32>
    %324 = tpu.matmul %320, %323, %cst_140 {dimension_numbers = #tpu.dot_dimension_numbers<[1], [0], [0], [1], [0, 0, 1, 1], [], []>} : vector<8x8xf32>, vector<8x8xf32>, vector<8x8xf32> -> vector<8x8xf32>
    %cst_141 = arith.constant 0.353553385 : f32
    %325 = vector.broadcast %cst_141 : f32 to vector<8x8xf32>
    %326 = arith.mulf %324, %325 : vector<8x8xf32>
    %cst_142 = arith.constant dense<0xFF800000> : vector<8xf32>
    %327 = vector.multi_reduction <maximumf>, %326, %cst_142 [1] : vector<8x8xf32> to vector<8xf32>
    %328 = vector.shape_cast %327 : vector<8xf32> to vector<8x1xf32>
    %329 = vector.broadcast %328 : vector<8x1xf32> to vector<8x8xf32>
    %330 = arith.subf %326, %329 : vector<8x8xf32>
    %331 = math.exp %330 : vector<8x8xf32>
    %cst_143 = arith.constant dense<0.000000e+00> : vector<8xf32>
    %332 = vector.multi_reduction <add>, %331, %cst_143 [1] : vector<8x8xf32> to vector<8xf32>
    %333 = vector.shape_cast %332 : vector<8xf32> to vector<8x1xf32>
    %334 = tpu.reciprocal %333 {approx = true} : vector<8x1xf32> -> vector<8x1xf32>
    %335 = vector.broadcast %334 : vector<8x1xf32> to vector<8x8xf32>
    %336 = arith.mulf %331, %335 : vector<8x8xf32>
    %cst_144 = arith.constant dense<0.000000e+00> : vector<8x8xf32>
    %337 = tpu.matmul %336, %322, %cst_144 {dimension_numbers = #tpu.dot_dimension_numbers<[1], [0], [0], [1], [0, 0, 1, 1], [], []>} : vector<8x8xf32>, vector<8x8xf32>, vector<8x8xf32> -> vector<8x8xf32>
    %c0_145 = arith.constant 0 : index
    %c24_146 = arith.constant 24 : index
    %338 = vector.load %arg19[%c0_145, %c24_146] : memref<16x32xf32, #tpu.memory_space<vmem>>, vector<8x8xf32>
    tpu.vector_store %arg19[%c0_145, %c24_146], %337 {strides = array<i32>} : memref<16x32xf32, #tpu.memory_space<vmem>>, vector<8x8xf32>,
    %339 = vector.extract_strided_slice %260 {offsets = [8, 0], sizes = [8, 8], strides = [1, 1]} : vector<16x32xf32> to vector<8x8xf32>
    %340 = vector.extract_strided_slice %261 {offsets = [8, 0], sizes = [8, 8], strides = [1, 1]} : vector<16x32xf32> to vector<8x8xf32>
    %341 = vector.extract_strided_slice %262 {offsets = [8, 0], sizes = [8, 8], strides = [1, 1]} : vector<16x32xf32> to vector<8x8xf32>
    %342 = tpu.transpose %340, [1, 0] : vector<8x8xf32> -> vector<8x8xf32>
    %cst_147 = arith.constant dense<0.000000e+00> : vector<8x8xf32>
    %343 = tpu.matmul %339, %342, %cst_147 {dimension_numbers = #tpu.dot_dimension_numbers<[1], [0], [0], [1], [0, 0, 1, 1], [], []>} : vector<8x8xf32>, vector<8x8xf32>, vector<8x8xf32> -> vector<8x8xf32>
    %cst_148 = arith.constant 0.353553385 : f32
    %344 = vector.broadcast %cst_148 : f32 to vector<8x8xf32>
    %345 = arith.mulf %343, %344 : vector<8x8xf32>
    %cst_149 = arith.constant dense<0xFF800000> : vector<8xf32>
    %346 = vector.multi_reduction <maximumf>, %345, %cst_149 [1] : vector<8x8xf32> to vector<8xf32>
    %347 = vector.shape_cast %346 : vector<8xf32> to vector<8x1xf32>
    %348 = vector.broadcast %347 : vector<8x1xf32> to vector<8x8xf32>
    %349 = arith.subf %345, %348 : vector<8x8xf32>
    %350 = math.exp %349 : vector<8x8xf32>
    %cst_150 = arith.constant dense<0.000000e+00> : vector<8xf32>
    %351 = vector.multi_reduction <add>, %350, %cst_150 [1] : vector<8x8xf32> to vector<8xf32>
    %352 = vector.shape_cast %351 : vector<8xf32> to vector<8x1xf32>
    %353 = tpu.reciprocal %352 {approx = true} : vector<8x1xf32> -> vector<8x1xf32>
    %354 = vector.broadcast %353 : vector<8x1xf32> to vector<8x8xf32>
    %355 = arith.mulf %350, %354 : vector<8x8xf32>
    %cst_151 = arith.constant dense<0.000000e+00> : vector<8x8xf32>
    %356 = tpu.matmul %355, %341, %cst_151 {dimension_numbers = #tpu.dot_dimension_numbers<[1], [0], [0], [1], [0, 0, 1, 1], [], []>} : vector<8x8xf32>, vector<8x8xf32>, vector<8x8xf32> -> vector<8x8xf32>
    %c8_152 = arith.constant 8 : index
    %c0_153 = arith.constant 0 : index
    %357 = vector.load %arg19[%c8_152, %c0_153] : memref<16x32xf32, #tpu.memory_space<vmem>>, vector<8x8xf32>
    tpu.vector_store %arg19[%c8_152, %c0_153], %356 {strides = array<i32>} : memref<16x32xf32, #tpu.memory_space<vmem>>, vector<8x8xf32>,
    %358 = vector.extract_strided_slice %260 {offsets = [8, 8], sizes = [8, 8], strides = [1, 1]} : vector<16x32xf32> to vector<8x8xf32>
    %359 = vector.extract_strided_slice %261 {offsets = [8, 8], sizes = [8, 8], strides = [1, 1]} : vector<16x32xf32> to vector<8x8xf32>
    %360 = vector.extract_strided_slice %262 {offsets = [8, 8], sizes = [8, 8], strides = [1, 1]} : vector<16x32xf32> to vector<8x8xf32>
    %361 = tpu.transpose %359, [1, 0] : vector<8x8xf32> -> vector<8x8xf32>
    %cst_154 = arith.constant dense<0.000000e+00> : vector<8x8xf32>
    %362 = tpu.matmul %358, %361, %cst_154 {dimension_numbers = #tpu.dot_dimension_numbers<[1], [0], [0], [1], [0, 0, 1, 1], [], []>} : vector<8x8xf32>, vector<8x8xf32>, vector<8x8xf32> -> vector<8x8xf32>
    %cst_155 = arith.constant 0.353553385 : f32
    %363 = vector.broadcast %cst_155 : f32 to vector<8x8xf32>
    %364 = arith.mulf %362, %363 : vector<8x8xf32>
    %cst_156 = arith.constant dense<0xFF800000> : vector<8xf32>
    %365 = vector.multi_reduction <maximumf>, %364, %cst_156 [1] : vector<8x8xf32> to vector<8xf32>
    %366 = vector.shape_cast %365 : vector<8xf32> to vector<8x1xf32>
    %367 = vector.broadcast %366 : vector<8x1xf32> to vector<8x8xf32>
    %368 = arith.subf %364, %367 : vector<8x8xf32>
    %369 = math.exp %368 : vector<8x8xf32>
    %cst_157 = arith.constant dense<0.000000e+00> : vector<8xf32>
    %370 = vector.multi_reduction <add>, %369, %cst_157 [1] : vector<8x8xf32> to vector<8xf32>
    %371 = vector.shape_cast %370 : vector<8xf32> to vector<8x1xf32>
    %372 = tpu.reciprocal %371 {approx = true} : vector<8x1xf32> -> vector<8x1xf32>
    %373 = vector.broadcast %372 : vector<8x1xf32> to vector<8x8xf32>
    %374 = arith.mulf %369, %373 : vector<8x8xf32>
    %cst_158 = arith.constant dense<0.000000e+00> : vector<8x8xf32>
    %375 = tpu.matmul %374, %360, %cst_158 {dimension_numbers = #tpu.dot_dimension_numbers<[1], [0], [0], [1], [0, 0, 1, 1], [], []>} : vector<8x8xf32>, vector<8x8xf32>, vector<8x8xf32> -> vector<8x8xf32>
    %c8_159 = arith.constant 8 : index
    %c8_160 = arith.constant 8 : index
    %376 = vector.load %arg19[%c8_159, %c8_160] : memref<16x32xf32, #tpu.memory_space<vmem>>, vector<8x8xf32>
    tpu.vector_store %arg19[%c8_159, %c8_160], %375 {strides = array<i32>} : memref<16x32xf32, #tpu.memory_space<vmem>>, vector<8x8xf32>,
    %377 = vector.extract_strided_slice %260 {offsets = [8, 16], sizes = [8, 8], strides = [1, 1]} : vector<16x32xf32> to vector<8x8xf32>
    %378 = vector.extract_strided_slice %261 {offsets = [8, 16], sizes = [8, 8], strides = [1, 1]} : vector<16x32xf32> to vector<8x8xf32>
    %379 = vector.extract_strided_slice %262 {offsets = [8, 16], sizes = [8, 8], strides = [1, 1]} : vector<16x32xf32> to vector<8x8xf32>
    %380 = tpu.transpose %378, [1, 0] : vector<8x8xf32> -> vector<8x8xf32>
    %cst_161 = arith.constant dense<0.000000e+00> : vector<8x8xf32>
    %381 = tpu.matmul %377, %380, %cst_161 {dimension_numbers = #tpu.dot_dimension_numbers<[1], [0], [0], [1], [0, 0, 1, 1], [], []>} : vector<8x8xf32>, vector<8x8xf32>, vector<8x8xf32> -> vector<8x8xf32>
    %cst_162 = arith.constant 0.353553385 : f32
    %382 = vector.broadcast %cst_162 : f32 to vector<8x8xf32>
    %383 = arith.mulf %381, %382 : vector<8x8xf32>
    %cst_163 = arith.constant dense<0xFF800000> : vector<8xf32>
    %384 = vector.multi_reduction <maximumf>, %383, %cst_163 [1] : vector<8x8xf32> to vector<8xf32>
    %385 = vector.shape_cast %384 : vector<8xf32> to vector<8x1xf32>
    %386 = vector.broadcast %385 : vector<8x1xf32> to vector<8x8xf32>
    %387 = arith.subf %383, %386 : vector<8x8xf32>
    %388 = math.exp %387 : vector<8x8xf32>
    %cst_164 = arith.constant dense<0.000000e+00> : vector<8xf32>
    %389 = vector.multi_reduction <add>, %388, %cst_164 [1] : vector<8x8xf32> to vector<8xf32>
    %390 = vector.shape_cast %389 : vector<8xf32> to vector<8x1xf32>
    %391 = tpu.reciprocal %390 {approx = true} : vector<8x1xf32> -> vector<8x1xf32>
    %392 = vector.broadcast %391 : vector<8x1xf32> to vector<8x8xf32>
    %393 = arith.mulf %388, %392 : vector<8x8xf32>
    %cst_165 = arith.constant dense<0.000000e+00> : vector<8x8xf32>
    %394 = tpu.matmul %393, %379, %cst_165 {dimension_numbers = #tpu.dot_dimension_numbers<[1], [0], [0], [1], [0, 0, 1, 1], [], []>} : vector<8x8xf32>, vector<8x8xf32>, vector<8x8xf32> -> vector<8x8xf32>
    %c8_166 = arith.constant 8 : index
    %c16_167 = arith.constant 16 : index
    %395 = vector.load %arg19[%c8_166, %c16_167] : memref<16x32xf32, #tpu.memory_space<vmem>>, vector<8x8xf32>
    tpu.vector_store %arg19[%c8_166, %c16_167], %394 {strides = array<i32>} : memref<16x32xf32, #tpu.memory_space<vmem>>, vector<8x8xf32>,
    %396 = vector.extract_strided_slice %260 {offsets = [8, 24], sizes = [8, 8], strides = [1, 1]} : vector<16x32xf32> to vector<8x8xf32>
    %397 = vector.extract_strided_slice %261 {offsets = [8, 24], sizes = [8, 8], strides = [1, 1]} : vector<16x32xf32> to vector<8x8xf32>
    %398 = vector.extract_strided_slice %262 {offsets = [8, 24], sizes = [8, 8], strides = [1, 1]} : vector<16x32xf32> to vector<8x8xf32>
    %399 = tpu.transpose %397, [1, 0] : vector<8x8xf32> -> vector<8x8xf32>
    %cst_168 = arith.constant dense<0.000000e+00> : vector<8x8xf32>
    %400 = tpu.matmul %396, %399, %cst_168 {dimension_numbers = #tpu.dot_dimension_numbers<[1], [0], [0], [1], [0, 0, 1, 1], [], []>} : vector<8x8xf32>, vector<8x8xf32>, vector<8x8xf32> -> vector<8x8xf32>
    %cst_169 = arith.constant 0.353553385 : f32
    %401 = vector.broadcast %cst_169 : f32 to vector<8x8xf32>
    %402 = arith.mulf %400, %401 : vector<8x8xf32>
    %cst_170 = arith.constant dense<0xFF800000> : vector<8xf32>
    %403 = vector.multi_reduction <maximumf>, %402, %cst_170 [1] : vector<8x8xf32> to vector<8xf32>
    %404 = vector.shape_cast %403 : vector<8xf32> to vector<8x1xf32>
    %405 = vector.broadcast %404 : vector<8x1xf32> to vector<8x8xf32>
    %406 = arith.subf %402, %405 : vector<8x8xf32>
    %407 = math.exp %406 : vector<8x8xf32>
    %cst_171 = arith.constant dense<0.000000e+00> : vector<8xf32>
    %408 = vector.multi_reduction <add>, %407, %cst_171 [1] : vector<8x8xf32> to vector<8xf32>
    %409 = vector.shape_cast %408 : vector<8xf32> to vector<8x1xf32>
    %410 = tpu.reciprocal %409 {approx = true} : vector<8x1xf32> -> vector<8x1xf32>
    %411 = vector.broadcast %410 : vector<8x1xf32> to vector<8x8xf32>
    %412 = arith.mulf %407, %411 : vector<8x8xf32>
    %cst_172 = arith.constant dense<0.000000e+00> : vector<8x8xf32>
    %413 = tpu.matmul %412, %398, %cst_172 {dimension_numbers = #tpu.dot_dimension_numbers<[1], [0], [0], [1], [0, 0, 1, 1], [], []>} : vector<8x8xf32>, vector<8x8xf32>, vector<8x8xf32> -> vector<8x8xf32>
    %c8_173 = arith.constant 8 : index
    %c24_174 = arith.constant 24 : index
    %414 = vector.load %arg19[%c8_173, %c24_174] : memref<16x32xf32, #tpu.memory_space<vmem>>, vector<8x8xf32>
    tpu.vector_store %arg19[%c8_173, %c24_174], %413 {strides = array<i32>} : memref<16x32xf32, #tpu.memory_space<vmem>>, vector<8x8xf32>,
    %c0_175 = arith.constant 0 : index
    %c0_176 = arith.constant 0 : index
    %415 = vector.load %arg19[%c0_175, %c0_176] : memref<16x32xf32, #tpu.memory_space<vmem>>, vector<16x32xf32>
    %416 = arith.truncf %415 : vector<16x32xf32> to vector<16x32xbf16>
    %c1_177 = arith.constant 1 : index
    %c0_178 = arith.constant 0 : index
    %c0_179 = arith.constant 0 : index
    %417 = vector.load %arg6[%c1_177, %c0_178, %c0_179] : memref<2x32x32xbf16, #tpu.memory_space<vmem>>, vector<1x32x32xbf16>
    %418 = vector.shape_cast %417 : vector<1x32x32xbf16> to vector<32x32xbf16>
    %cst_180 = arith.constant dense<0.000000e+00> : vector<16x32xf32>
    %419 = tpu.matmul %416, %418, %cst_180 {dimension_numbers = #tpu.dot_dimension_numbers<[1], [0], [0], [1], [0, 0, 1, 1], [], []>} : vector<16x32xbf16>, vector<32x32xbf16>, vector<16x32xf32> -> vector<16x32xf32>
    %c1_181 = arith.constant 1 : index
    %c0_182 = arith.constant 0 : index
    %c0_183 = arith.constant 0 : index
    %420 = vector.load %arg7[%c1_181, %c0_182, %c0_183] : memref<2x1x32xf32, #tpu.memory_space<vmem>>, vector<1x1x32xf32>
    %421 = vector.shape_cast %420 : vector<1x1x32xf32> to vector<1x32xf32>
    %422 = vector.broadcast %421 : vector<1x32xf32> to vector<16x32xf32>
    %423 = arith.addf %419, %422 : vector<16x32xf32>
    %424 = arith.addf %251, %423 : vector<16x32xf32>
    %c1_184 = arith.constant 1 : index
    %c0_185 = arith.constant 0 : index
    %c0_186 = arith.constant 0 : index
    %425 = vector.load %arg8[%c1_184, %c0_185, %c0_186] : memref<2x1x32xf32, #tpu.memory_space<vmem>>, vector<1x1x32xf32>
    %426 = vector.shape_cast %425 : vector<1x1x32xf32> to vector<1x32xf32>
    %c1_187 = arith.constant 1 : index
    %c0_188 = arith.constant 0 : index
    %c0_189 = arith.constant 0 : index
    %427 = vector.load %arg9[%c1_187, %c0_188, %c0_189] : memref<2x1x32xf32, #tpu.memory_space<vmem>>, vector<1x1x32xf32>
    %428 = vector.shape_cast %427 : vector<1x1x32xf32> to vector<1x32xf32>
    %cst_190 = arith.constant dense<0.000000e+00> : vector<16xf32>
    %429 = vector.multi_reduction <add>, %424, %cst_190 [1] : vector<16x32xf32> to vector<16xf32>
    %430 = vector.shape_cast %429 : vector<16xf32> to vector<16x1xf32>
    %cst_191 = arith.constant 3.200000e+01 : f32
    %431 = vector.broadcast %cst_191 : f32 to vector<16x1xf32>
    %432 = arith.divf %430, %431 : vector<16x1xf32>
    %433 = vector.broadcast %432 : vector<16x1xf32> to vector<16x32xf32>
    %434 = arith.subf %424, %433 : vector<16x32xf32>
    %435 = arith.mulf %434, %434 : vector<16x32xf32>
    %cst_192 = arith.constant dense<0.000000e+00> : vector<16xf32>
    %436 = vector.multi_reduction <add>, %435, %cst_192 [1] : vector<16x32xf32> to vector<16xf32>
    %437 = vector.shape_cast %436 : vector<16xf32> to vector<16x1xf32>
    %cst_193 = arith.constant 3.200000e+01 : f32
    %438 = vector.broadcast %cst_193 : f32 to vector<16x1xf32>
    %439 = arith.divf %437, %438 : vector<16x1xf32>
    %440 = vector.broadcast %432 : vector<16x1xf32> to vector<16x32xf32>
    %441 = arith.subf %424, %440 : vector<16x32xf32>
    %cst_194 = arith.constant 9.99999974E-6 : f32
    %442 = vector.broadcast %cst_194 : f32 to vector<16x1xf32>
    %443 = arith.addf %439, %442 : vector<16x1xf32>
    %444 = math.rsqrt %443 : vector<16x1xf32>
    %445 = vector.broadcast %444 : vector<16x1xf32> to vector<16x32xf32>
    %446 = arith.mulf %441, %445 : vector<16x32xf32>
    %447 = vector.broadcast %426 : vector<1x32xf32> to vector<16x32xf32>
    %448 = arith.mulf %446, %447 : vector<16x32xf32>
    %449 = vector.broadcast %428 : vector<1x32xf32> to vector<16x32xf32>
    %450 = arith.addf %448, %449 : vector<16x32xf32>
    %451 = arith.truncf %450 : vector<16x32xf32> to vector<16x32xbf16>
    %c1_195 = arith.constant 1 : index
    %c0_196 = arith.constant 0 : index
    %c0_197 = arith.constant 0 : index
    %452 = vector.load %arg10[%c1_195, %c0_196, %c0_197] : memref<2x32x2048xbf16, #tpu.memory_space<vmem>>, vector<1x32x2048xbf16>
    %453 = vector.shape_cast %452 : vector<1x32x2048xbf16> to vector<32x2048xbf16>
    %cst_198 = arith.constant dense<0.000000e+00> : vector<16x2048xf32>
    %454 = tpu.matmul %451, %453, %cst_198 {dimension_numbers = #tpu.dot_dimension_numbers<[1], [0], [0], [1], [0, 0, 1, 1], [], []>} : vector<16x32xbf16>, vector<32x2048xbf16>, vector<16x2048xf32> -> vector<16x2048xf32>
    %c1_199 = arith.constant 1 : index
    %c0_200 = arith.constant 0 : index
    %c0_201 = arith.constant 0 : index
    %455 = vector.load %arg11[%c1_199, %c0_200, %c0_201] : memref<2x1x2048xf32, #tpu.memory_space<vmem>>, vector<1x1x2048xf32>
    %456 = vector.shape_cast %455 : vector<1x1x2048xf32> to vector<1x2048xf32>
    %457 = vector.broadcast %456 : vector<1x2048xf32> to vector<16x2048xf32>
    %458 = arith.addf %454, %457 : vector<16x2048xf32>
    %cst_202 = arith.constant 0.000000e+00 : f32
    %459 = vector.broadcast %cst_202 : f32 to vector<16x2048xf32>
    %460 = arith.maximumf %458, %459 : vector<16x2048xf32>
    %461 = arith.truncf %460 : vector<16x2048xf32> to vector<16x2048xbf16>
    %c1_203 = arith.constant 1 : index
    %c0_204 = arith.constant 0 : index
    %c0_205 = arith.constant 0 : index
    %462 = vector.load %arg12[%c1_203, %c0_204, %c0_205] : memref<2x2048x32xbf16, #tpu.memory_space<vmem>>, vector<1x2048x32xbf16>
    %463 = vector.shape_cast %462 : vector<1x2048x32xbf16> to vector<2048x32xbf16>
    %cst_206 = arith.constant dense<0.000000e+00> : vector<16x32xf32>
    %464 = tpu.matmul %461, %463, %cst_206 {dimension_numbers = #tpu.dot_dimension_numbers<[1], [0], [0], [1], [0, 0, 1, 1], [], []>} : vector<16x2048xbf16>, vector<2048x32xbf16>, vector<16x32xf32> -> vector<16x32xf32>
    %c1_207 = arith.constant 1 : index
    %c0_208 = arith.constant 0 : index
    %c0_209 = arith.constant 0 : index
    %465 = vector.load %arg13[%c1_207, %c0_208, %c0_209] : memref<2x1x32xf32, #tpu.memory_space<vmem>>, vector<1x1x32xf32>
    %466 = vector.shape_cast %465 : vector<1x1x32xf32> to vector<1x32xf32>
    %467 = vector.broadcast %466 : vector<1x32xf32> to vector<16x32xf32>
    %468 = arith.addf %464, %467 : vector<16x32xf32>
    %469 = arith.addf %450, %468 : vector<16x32xf32>
    %c1_210 = arith.constant 1 : index
    %c0_211 = arith.constant 0 : index
    %c0_212 = arith.constant 0 : index
    %470 = vector.load %arg14[%c1_210, %c0_211, %c0_212] : memref<2x1x32xf32, #tpu.memory_space<vmem>>, vector<1x1x32xf32>
    %471 = vector.shape_cast %470 : vector<1x1x32xf32> to vector<1x32xf32>
    %c1_213 = arith.constant 1 : index
    %c0_214 = arith.constant 0 : index
    %c0_215 = arith.constant 0 : index
    %472 = vector.load %arg15[%c1_213, %c0_214, %c0_215] : memref<2x1x32xf32, #tpu.memory_space<vmem>>, vector<1x1x32xf32>
    %473 = vector.shape_cast %472 : vector<1x1x32xf32> to vector<1x32xf32>
    %cst_216 = arith.constant dense<0.000000e+00> : vector<16xf32>
    %474 = vector.multi_reduction <add>, %469, %cst_216 [1] : vector<16x32xf32> to vector<16xf32>
    %475 = vector.shape_cast %474 : vector<16xf32> to vector<16x1xf32>
    %cst_217 = arith.constant 3.200000e+01 : f32
    %476 = vector.broadcast %cst_217 : f32 to vector<16x1xf32>
    %477 = arith.divf %475, %476 : vector<16x1xf32>
    %478 = vector.broadcast %477 : vector<16x1xf32> to vector<16x32xf32>
    %479 = arith.subf %469, %478 : vector<16x32xf32>
    %480 = arith.mulf %479, %479 : vector<16x32xf32>
    %cst_218 = arith.constant dense<0.000000e+00> : vector<16xf32>
    %481 = vector.multi_reduction <add>, %480, %cst_218 [1] : vector<16x32xf32> to vector<16xf32>
    %482 = vector.shape_cast %481 : vector<16xf32> to vector<16x1xf32>
    %cst_219 = arith.constant 3.200000e+01 : f32
    %483 = vector.broadcast %cst_219 : f32 to vector<16x1xf32>
    %484 = arith.divf %482, %483 : vector<16x1xf32>
    %485 = vector.broadcast %477 : vector<16x1xf32> to vector<16x32xf32>
    %486 = arith.subf %469, %485 : vector<16x32xf32>
    %cst_220 = arith.constant 9.99999974E-6 : f32
    %487 = vector.broadcast %cst_220 : f32 to vector<16x1xf32>
    %488 = arith.addf %484, %487 : vector<16x1xf32>
    %489 = math.rsqrt %488 : vector<16x1xf32>
    %490 = vector.broadcast %489 : vector<16x1xf32> to vector<16x32xf32>
    %491 = arith.mulf %486, %490 : vector<16x32xf32>
    %492 = vector.broadcast %471 : vector<1x32xf32> to vector<16x32xf32>
    %493 = arith.mulf %491, %492 : vector<16x32xf32>
    %494 = vector.broadcast %473 : vector<1x32xf32> to vector<16x32xf32>
    %495 = arith.addf %493, %494 : vector<16x32xf32>
    %c0_221 = arith.constant 0 : index
    %c0_222 = arith.constant 0 : index
    %496 = vector.load %arg16[%c0_221, %c0_222] : memref<32x8xf32, #tpu.memory_space<vmem>>, vector<32x8xf32>
    %cst_223 = arith.constant dense<0.000000e+00> : vector<16x8xf32>
    %497 = tpu.matmul %495, %496, %cst_223 {dimension_numbers = #tpu.dot_dimension_numbers<[1], [0], [0], [1], [0, 0, 1, 1], [], []>} : vector<16x32xf32>, vector<32x8xf32>, vector<16x8xf32> -> vector<16x8xf32>
    %c0_224 = arith.constant 0 : index
    %c0_225 = arith.constant 0 : index
    %498 = vector.load %arg17[%c0_224, %c0_225] : memref<1x8xf32, #tpu.memory_space<vmem>>, vector<1x8xf32>
    %499 = vector.broadcast %498 : vector<1x8xf32> to vector<16x8xf32>
    %500 = arith.addf %497, %499 : vector<16x8xf32>
    %c0_226 = arith.constant 0 : index
    %c0_227 = arith.constant 0 : index
    %501 = vector.load %arg18[%c0_226, %c0_227] : memref<16x8xf32, #tpu.memory_space<vmem>>, vector<16x8xf32>
    tpu.vector_store %arg18[%c0_226, %c0_227], %500 {strides = array<i32>} : memref<16x8xf32, #tpu.memory_space<vmem>>, vector<16x8xf32>,
    return
  }
}

</mosaic_0001>

<bundles_post_ra>
// kernel: tpu_custom_call.1
= control target key start
LH: loop header
LB: loop body
LE: loop exit
PB: predicated region body
PF: predicated region fallthrough
CT: control target
= control target key end

     0   :  { %vm71_vm0 = vcmask 130048   ;;  %v9253_v6 = vmov 0.0   ;;  %vm9254_vm1 = vmmov 0   ;;  %vm181_vm2 = vcmask 261120   ;;  %s9257_s21 = smov 88   ;;  %s9258_s22 = smov 120   ;;  %s11024_s2 = inlined_call_operand.vmem [shape: f32[16,32], index: 2, kind: input, shape index: {}]   ;;  %s11025_s0 = inlined_call_operand.vmem [shape: f32[16,16], index: 0, kind: input, shape index: {}]   ;;  %s11026_s4 = inlined_call_operand.vmem [shape: bf16[2,32,96], index: 4, kind: input, shape index: {}]   ;;  %s11027_s3 = inlined_call_operand.vmem [shape: f32[1,32], index: 3, kind: input, shape index: {}]   ;;  %s11028_s1 = inlined_call_operand.vmem [shape: f32[16,32], index: 1, kind: input, shape index: {}]   ;;  %s11029_s5 = inlined_call_operand.vmem [shape: f32[2,1,96], index: 5, kind: input, shape index: {}]   ;;  %s11030_s6 = inlined_call_operand.vmem [shape: bf16[2,32,32], index: 6, kind: input, shape index: {}]   ;;  %s11031_s7 = inlined_call_operand.vmem [shape: f32[2,1,32], index: 7, kind: input, shape index: {}]   ;;  %s11032_s10 = inlined_call_operand.vmem [shape: bf16[2,32,2048], index: 10, kind: input, shape index: {}]   ;;  %s11033_s12 = inlined_call_operand.vmem [shape: bf16[2,2048,32], index: 12, kind: input, shape index: {}]   ;;  %s11034_s8 = inlined_call_operand.vmem [shape: f32[2,1,32], index: 8, kind: input, shape index: {}]   ;;  %s11035_s9 = inlined_call_operand.vmem [shape: f32[2,1,32], index: 9, kind: input, shape index: {}]   ;;  %s11036_s11 = inlined_call_operand.vmem [shape: f32[2,1,2048], index: 11, kind: input, shape index: {}]   ;;  %s11037_s13 = inlined_call_operand.vmem [shape: f32[2,1,32], index: 13, kind: input, shape index: {}]   ;;  %s11038_s14 = inlined_call_operand.vmem [shape: f32[2,1,32], index: 14, kind: input, shape index: {}]   ;;  %s11039_s15 = inlined_call_operand.vmem [shape: f32[2,1,32], index: 15, kind: input, shape index: {}]   ;;  %s11040_s16 = inlined_call_operand.vmem [shape: f32[32,8], index: 16, kind: input, shape index: {}]   ;;  %s11041_s17 = inlined_call_operand.vmem [shape: f32[1,8], index: 17, kind: input, shape index: {}]   ;;  %s11042_s18 = inlined_call_operand.vmem [shape: f32[16,8], index: 18, kind: output, shape index: {}]  }
   0x1   :  { %11062 = sst [smem:[#allocation3_spill]] %s11024_s2  ;;  %8677 = vmatprep.subr.bf16.mxu1 %v9253_v6  ;;  %8681 = vmatprep.mubr.msk.bf16.mxu1 %vm9254_vm1, %v9253_v6  ;;  %v7511_v8 = vld [vmem:[%s11027_s3] ss:$0 sm:$0xff]  ;;  %v154_v10 = vld [vmem:[%s11028_s1 + $0x8] sm:$0xff]  ;;  %s9260_s23 = smov 112   ;;  %vm229_vm3 = vcmask 64512  }
   0x2   :  { %11063 = sst [smem:[#allocation4_spill]] %s11025_s0  ;;  %s11065_s29 = sld [smem:[#allocation3_spill]]  ;;  %v153_v13 = vld [vmem:[%s11028_s1] sm:$0xff]  ;;  %vm563_vm4 = vcmask 130112   ;;  %vm735_vm5 = vcmask 195712   ;;  %vm907_vm6 = vcmask 261312  }
   0x3   :  { %11064 = sst [smem:[#allocation5_spill]] %s11026_s4  ;;  %s11066_s20 = sld [smem:[#allocation4_spill]]  ;;  %v7514_v18 = vld [vmem:[%s11029_s5] ss:$0 sm:$0xff] }
   0x4   :  { %s11067_s24 = sld [smem:[#allocation5_spill]]  ;;  %s11058_s1 = smov 64  }
   0x5   :  { %s9259_s4 = smov 80   ;;  %s9261_s25 = smov 104  }
   0x6   :  { %s11060_s26 = smov 72   ;;  %s11046_s27 = smov 48  }
   0x7   :  { %s11048_s28 = smov 40   ;;  %s11054_s30 = smov 8  }
   0x8   :  { %v62_v0 = vld [vmem:[%s11065_s29] sm:$0xff]  ;;  %v63_v1 = vld [vmem:[%s11065_s29 + $0x8] sm:$0xff]  ;;  %s11056_s29 = smov 56   ;;  %s11052_s2 = smov 16  }
   0x9   :  { %v60_v2 = vld [vmem:[%s11066_s20] sm:$0xff]  ;;  %v8880_v3 = vpack.c.bf16 %v63_v1, %v62_v0  ;;  %v61_v4 = vld [vmem:[%s11066_s20 + $0x8] sm:$0xff]  ;;  %s9256_s20 = smov 96   ;;  %s11050_s19 = smov 24  }
   0xa   :  { %8674 = vmatprep.mubr.msk.f32.mxu0 %vm71_vm0, %v60_v2  ;;  %v8909_v5 = vld [vmem:[%s11067_s24] sm:$0xff]   ;;  %v8910_v7 = vld [vmem:[%s11067_s24 + $0x8] sm:$0xff]  }
   0xb   :  { %8881 = vmatprep.subr.bf16.mxu0 %v8880_v3  ;;  %8678 = vmatpush3.bf16.msra.mxu1 %v8909_v5 }
   0xc   :  { %8883 = vmatpush3.bf16.msra.mxu0 %v8880_v3  ;;  %8679 = vmatprep.subr.bf16.mxu1 %v9253_v6 }
   0xd   :  { %8685 = vmatprep.subr.mxu0 %v9253_v6 }
   0xf   :  { %8675 = vmatmul.mubr.msk.f32.vlgmr.msra.gmra.mrb[0].mxu0 %vm71_vm0, %v61_v4  ;;  %8680 = vmatpush3.bf16.msra.mxu1 %v8910_v7 }
  0x10   :  { %8700 = vmatprep.subr.mxu1 %v9253_v6  ;;  %8687 = vmatprep.mubr.msk.f32.mxu0 %vm9254_vm1, %v9253_v6 }
  0xe2   :  { %v8676_v9 = vpop.f32.mrb[0].mxu0 }
  0xe3   :  { %v150_v11 = vadd.f32 %v8676_v9, %v7511_v8  ;;  %v144_v12 = vpop.f32.mrb[1].mxu0 }
  0xe4   :  { %v145_v14 = vadd.f32 %v7511_v8, %v144_v12 }
  0xe5   :  { %v9400_v15 = vadd.f32 %v154_v10, %v150_v11 }
  0xe6   :  { %v9402_v16 = vadd.f32 %v153_v13, %v145_v14 }
  0xe8   :  { %v157_v17 = vpack.c.bf16 %v9400_v15, %v9402_v16 }
  0xea   :  { %8682 = vmatmul.mubr.msk.bf16.vlgmr.msra.gmra.mrb[0].mxu1 %vm181_vm2, %v157_v17 }
  0xeb   :  { %8702 = vmatprep.mubr.msk.f32.mxu1 %vm9254_vm1, %v9253_v6 }
 0x1bd   :  { %v219_v19 = vpop.f32.mrb[0].mxu1 }
 0x1be   :  { %v9412_v20 = vadd.f32 %v7514_v18, %v219_v19  ;;  %v8683_v21 = vpop.f32.mrb[1].mxu1 }
 0x1bf   :  { %v222_v22 = vpop.f32.mrb[2].mxu1 }
 0x1c0   :  { %v9414_v23 = vadd.f32 %v7514_v18, %v222_v22  ;;  %316 = vrot.lane.b32.xlu1 %v9412_v20, %s11058_s1  ;;  %227 = vrot.lane.b32.xlu0 %v9412_v20, %s9256_s20  ;;  %v8684_v24 = vpop.f32.mrb[3].mxu1 }
 0x1c4   :  { %395 = vrot.lane.b32.xlu1 %v9412_v20, %s9257_s21 }
 0x1c8   :  { %393 = vrot.lane.b32.xlu1 %v9412_v20, %s9258_s22 }
 0x1cc   :  { %567 = vrot.lane.b32.xlu1 %v9412_v20, %s9259_s4 }
 0x1d0   :  { %565 = vrot.lane.b32.xlu1 %v9412_v20, %s9260_s23 }
 0x1d4   :  { %737 = vrot.lane.b32.xlu1 %v9412_v20, %s9261_s25 }
 0x232   :  { %v228_v25 = vpop.permute.xlu0 %227  ;;  %v317_v26 = vpop.permute.xlu1 %316 }
 0x233   :  { %8686 = vmatpush3.xpose.msk.msra.mxu0 %vm229_vm3, %v228_v25 }
 0x234   :  { %8690 = vmatprep.subr.mxu0 %v9253_v6 }
 0x236   :  { %8688 = vmatmul.mubr.msk.f32.vlgmr.msra.gmra.mrb[2].mxu0 %vm229_vm3, %v9412_v20  ;;  %v396_v36 = vpop.permute.xlu1 %395 }
 0x237   :  { %8691 = vmatpush3.msra.mxu0 %v317_v26  ;;  %8692 = vmatprep.mubr.msk.f32.mxu0 %vm9254_vm1, %v9253_v6 }
 0x238   :  { %8695 = vmatprep.subr.mxu0 %v9253_v6 }
 0x23a   :  { %v394_v37 = vpop.permute.xlu1 %393 }
 0x23e   :  { %v568_v38 = vpop.permute.xlu1 %567 }
 0x242   :  { %v566_v39 = vpop.permute.xlu1 %565 }
 0x246   :  { %v738_v40 = vpop.permute.xlu1 %737 }
 0x309   :  { %v300_v27 = vpop.f32.mrb[2].mxu0 }
 0x30a   :  { %v304_v28 = vmul.f32 0.35355338, %v300_v27  ;;  %v8689_v29 = vpop.f32.mrb[3].mxu0 }
 0x30c   :  { %v305_v30 = vsel %vm229_vm3, %v304_v28, -inf }
 0x30d   :  { %306 = vmax.xlane.f32.xlu0 %v305_v30 }
 0x323   :  { %739 = vrot.lane.b32.xlu0 %v9412_v20, %s11060_s26 }
 0x327   :  { %1246 = vrot.lane.b32.xlu0 %v9414_v23, %s9260_s23 }
 0x32b   :  { %1417 = vrot.lane.b32.xlu0 %v9414_v23, %s9261_s25 }
 0x39a   :  { %v307_v31 = vpop.xlane.xlu0 %306 }
 0x39b   :  { %v308_v32 = vsub.f32 %v304_v28, %v307_v31 }
 0x39d   :  { %v309_v33 = vmul.f32 1.442695, %v308_v32 }
 0x39e   :  { %v740_v46 = vpop.permute.xlu0 %739 }
 0x39f   :  { %9173 = vpow2.f32 %v309_v33 }
 0x3a2   :  { %v1247_v49 = vpop.permute.xlu0 %1246 }
 0x3a6   :  { %v1418_v51 = vpop.permute.xlu0 %1417 }
 0x3a9   :  { %v9174_v34 = vpop.eup %9173 }
 0x3aa   :  { %v311_v35 = vsel %vm229_vm3, %v9174_v34, 0.0 }
 0x3ab   :  { %312 = vadd.xlane.f32.xlu1 %v311_v35 }
 0x3bc   :  { %910 = vrot.lane.b32.xlu1 %v9414_v23, %s9256_s20 }
 0x3c0   :  { %1077 = vrot.lane.b32.xlu1 %v9414_v23, %s9257_s21 }
 0x3c4   :  { %1075 = vrot.lane.b32.xlu1 %v9414_v23, %s9258_s22 }
 0x3c8   :  { %1248 = vrot.lane.b32.xlu1 %v9414_v23, %s9259_s4 }
 0x3cc   :  { %1419 = vrot.lane.b32.xlu1 %v9414_v23, %s11060_s26 }
 0x438   :  { %v313_v41 = vpop.xlane.xlu1 %312 }
 0x439   :  { %9175 = vrcp.f32 %v313_v41 }
 0x43c   :  { %v911_v44 = vpop.permute.xlu1 %910 }
 0x440   :  { %v1078_v45 = vpop.permute.xlu1 %1077 }
 0x443   :  { %v9176_v42 = vpop.eup %9175 }
 0x444   :  { %v315_v43 = vmul.f32 %v9176_v42, %v9174_v34  ;;  %v1076_v47 = vpop.permute.xlu1 %1075 }
 0x446   :  { %8693 = vmatmul.mubr.msk.f32.vlgmr.msra.gmra.mrb[4].mxu0 %vm229_vm3, %v315_v43 }
 0x447   :  { %8696 = vmatpush3.xpose.msk.msra.mxu0 %vm229_vm3, %v396_v36  ;;  %8697 = vmatprep.mubr.msk.f32.mxu0 %vm9254_vm1, %v9253_v6 }
 0x448   :  { %8705 = vmatprep.subr.mxu0 %v9253_v6  ;;  %v1249_v48 = vpop.permute.xlu1 %1248 }
 0x44a   :  { %8698 = vmatmul.mubr.msk.f32.vlgmr.msra.gmra.mrb[6].mxu0 %vm229_vm3, %v394_v37 }
 0x44b   :  { %8706 = vmatpush3.xpose.msk.msra.mxu0 %vm229_vm3, %v568_v38  ;;  %8707 = vmatprep.mubr.msk.f32.mxu0 %vm9254_vm1, %v9253_v6 }
 0x44c   :  { %8715 = vmatprep.subr.mxu0 %v9253_v6  ;;  %v1420_v50 = vpop.permute.xlu1 %1419 }
 0x44e   :  { %8708 = vmatmul.mubr.msk.f32.vlgmr.msra.gmra.mrb[8].mxu0 %vm229_vm3, %v566_v39 }
 0x44f   :  { %8716 = vmatpush3.xpose.msk.msra.mxu0 %vm229_vm3, %v740_v46  ;;  %8717 = vmatprep.mubr.msk.f32.mxu0 %vm9254_vm1, %v9253_v6 }
 0x450   :  { %8725 = vmatprep.subr.mxu0 %v9253_v6 }
 0x452   :  { %8718 = vmatmul.mubr.msk.f32.vlgmr.msra.gmra.mrb[10].mxu0 %vm229_vm3, %v738_v40 }
 0x453   :  { %8726 = vmatpush3.xpose.msk.msra.mxu0 %vm229_vm3, %v911_v44  ;;  %8727 = vmatprep.mubr.msk.f32.mxu0 %vm9254_vm1, %v9253_v6 }
 0x454   :  { %8735 = vmatprep.subr.mxu0 %v9253_v6 }
 0x456   :  { %8728 = vmatmul.mubr.msk.f32.vlgmr.msra.gmra.mrb[12].mxu0 %vm229_vm3, %v9414_v23 }
 0x457   :  { %8736 = vmatpush3.xpose.msk.msra.mxu0 %vm229_vm3, %v1078_v45  ;;  %8737 = vmatprep.mubr.msk.f32.mxu0 %vm9254_vm1, %v9253_v6 }
 0x458   :  { %8745 = vmatprep.subr.mxu0 %v9253_v6 }
 0x45a   :  { %8738 = vmatmul.mubr.msk.f32.vlgmr.msra.gmra.mrb[14].mxu0 %vm229_vm3, %v1076_v47 }
 0x45b   :  { %8746 = vmatpush3.xpose.msk.msra.mxu0 %vm229_vm3, %v1249_v48  ;;  %8747 = vmatprep.mubr.msk.f32.mxu0 %vm9254_vm1, %v9253_v6 }
 0x45c   :  { %8755 = vmatprep.subr.mxu0 %v9253_v6 }
 0x45e   :  { %8748 = vmatmul.mubr.msk.f32.vlgmr.msra.gmra.mrb[16].mxu0 %vm229_vm3, %v1247_v49 }
 0x45f   :  { %8756 = vmatpush3.xpose.msk.msra.mxu0 %vm229_vm3, %v1420_v50  ;;  %8757 = vmatprep.mubr.msk.f32.mxu0 %vm9254_vm1, %v9253_v6 }
 0x460   :  { %8765 = vmatprep.subr.bf16.mxu0 %v9253_v6 }
 0x462   :  { %8758 = vmatmul.mubr.msk.f32.vlgmr.msra.gmra.mrb[18].mxu0 %vm229_vm3, %v1418_v51 }
 0x463   :  { %8769 = vmatprep.mubr.msk.bf16.mxu0 %vm9254_vm1, %v9253_v6 }
 0x519   :  { %v388_v52 = vpop.f32.mrb[4].mxu0 }
 0x51a   :  { %392 = vst.msk [vmem:[#allocation2] sm:$0xff] %vm229_vm3, %v388_v52  ;;  %v8694_v53 = vpop.f32.mrb[5].mxu0 }
 0x51d   :  { %v467_v54 = vpop.f32.mrb[6].mxu0 }
 0x51e   :  { %v471_v55 = vmul.f32 0.35355338, %v467_v54  ;;  %v8699_v56 = vpop.f32.mrb[7].mxu0 }
 0x520   :  { %v472_v57 = vsel %vm229_vm3, %v471_v55, -inf }
 0x521   :  { %v639_v58 = vpop.f32.mrb[8].mxu0  ;;  %473 = vmax.xlane.f32.xlu1 %v472_v57 }
 0x522   :  { %v643_v59 = vmul.f32 0.35355338, %v639_v58  ;;  %v8709_v60 = vpop.f32.mrb[9].mxu0 }
 0x524   :  { %v644_v61 = vsel %vm229_vm3, %v643_v59, -inf }
 0x525   :  { %v811_v62 = vpop.f32.mrb[10].mxu0  ;;  %645 = vmax.xlane.f32.xlu0 %v644_v61 }
 0x526   :  { %v815_v63 = vmul.f32 0.35355338, %v811_v62  ;;  %v8719_v0 = vpop.f32.mrb[11].mxu0 }
 0x528   :  { %v816_v1 = vsel %vm229_vm3, %v815_v63, -inf }
 0x529   :  { %817 = vmax.xlane.f32.xlu0 %v816_v1  ;;  %v982_v2 = vpop.f32.mrb[12].mxu0 }
 0x52a   :  { %v986_v3 = vmul.f32 0.35355338, %v982_v2  ;;  %v8729_v4 = vpop.f32.mrb[13].mxu0 }
 0x52c   :  { %v987_v5 = vsel %vm229_vm3, %v986_v3, -inf }
 0x52d   :  { %988 = vmax.xlane.f32.xlu1 %v987_v5  ;;  %v1149_v7 = vpop.f32.mrb[14].mxu0 }
 0x52e   :  { %v1153_v8 = vmul.f32 0.35355338, %v1149_v7  ;;  %v8739_v9 = vpop.f32.mrb[15].mxu0 }
 0x530   :  { %v1154_v10 = vsel %vm229_vm3, %v1153_v8, -inf }
 0x531   :  { %1155 = vmax.xlane.f32.xlu0 %v1154_v10  ;;  %v1320_v11 = vpop.f32.mrb[16].mxu0 }
 0x532   :  { %v1324_v12 = vmul.f32 0.35355338, %v1320_v11  ;;  %v8749_v13 = vpop.f32.mrb[17].mxu0 }
 0x534   :  { %v1325_v14 = vsel %vm229_vm3, %v1324_v12, -inf }
 0x535   :  { %1326 = vmax.xlane.f32.xlu1 %v1325_v14  ;;  %v1491_v17 = vpop.f32.mrb[18].mxu0 }
 0x536   :  { %v1495_v18 = vmul.f32 0.35355338, %v1491_v17  ;;  %v8759_v19 = vpop.f32.mrb[19].mxu0 }
 0x538   :  { %v1496_v21 = vsel %vm229_vm3, %v1495_v18, -inf }
 0x539   :  { %1497 = vmax.xlane.f32.xlu0 %v1496_v21 }
 0x546   :  { %655 = vrot.lane.b32.xlu1 %v9412_v20, %s11046_s27 }
 0x54a   :  { %827 = vrot.lane.b32.xlu1 %v9412_v20, %s11048_s28 }
 0x54f   :  { %483 = vrot.lane.b32.xlu0 %v9412_v20, %s11056_s29 }
 0x5ae   :  { %v474_v22 = vpop.xlane.xlu1 %473 }
 0x5af   :  { %v475_v24 = vsub.f32 %v471_v55, %v474_v22 }
 0x5b1   :  { %v476_v25 = vmul.f32 1.442695, %v475_v24 }
 0x5b2   :  { %v646_v26 = vpop.xlane.xlu0 %645 }
 0x5b3   :  { %9177 = vpow2.f32 %v476_v25  ;;  %v647_v27 = vsub.f32 %v643_v59, %v646_v26 }
 0x5b5   :  { %v648_v28 = vmul.f32 1.442695, %v647_v27 }
 0x5b6   :  { %v818_v30 = vpop.xlane.xlu0 %817 }
 0x5b7   :  { %9179 = vpow2.f32 %v648_v28  ;;  %v819_v36 = vsub.f32 %v815_v63, %v818_v30 }
 0x5b9   :  { %v820_v39 = vmul.f32 1.442695, %v819_v36 }
 0x5ba   :  { %v989_v37 = vpop.xlane.xlu1 %988 }
 0x5bb   :  { %v990_v38 = vsub.f32 %v986_v3, %v989_v37  ;;  %9181 = vpow2.f32 %v820_v39 }
 0x5bd   :  { %v9178_v29 = vpop.eup %9177  ;;  %v991_v42 = vmul.f32 1.442695, %v990_v38 }
 0x5be   :  { %v478_v31 = vsel %vm229_vm3, %v9178_v29, 0.0  ;;  %v1156_v33 = vpop.xlane.xlu0 %1155 }
 0x5bf   :  { %479 = vadd.xlane.f32.xlu1 %v478_v31  ;;  %v1157_v40 = vsub.f32 %v1153_v8, %v1156_v33  ;;  %9183 = vpow2.f32 %v991_v42  ;;  %v8911_v33 = vld [vmem:[%s11030_s6] sm:$0xff]  }
 0x5c0   :  { %8766 = vmatpush3.bf16.msra.mxu0 %v8911_v33 }
 0x5c1   :  { %v9180_v32 = vpop.eup %9179  ;;  %v1158_v44 = vmul.f32 1.442695, %v1157_v40  ;;  %8767 = vmatprep.subr.bf16.mxu0 %v9253_v6 }
 0x5c2   :  { %v650_v34 = vsel %vm229_vm3, %v9180_v32, 0.0  ;;  %v1327_v41 = vpop.xlane.xlu1 %1326 }
 0x5c3   :  { %651 = vadd.xlane.f32.xlu0 %v650_v34  ;;  %v1328_v43 = vsub.f32 %v1324_v12, %v1327_v41  ;;  %9185 = vpow2.f32 %v1158_v44  ;;  %v8912_v34 = vld [vmem:[%s11030_s6 + $0x8] sm:$0xff]  }
 0x5c4   :  { %8768 = vmatpush3.bf16.msra.mxu0 %v8912_v34 }
 0x5c5   :  { %v1329_v46 = vmul.f32 1.442695, %v1328_v43  ;;  %v9182_v48 = vpop.eup %9181 }
 0x5c6   :  { %v1498_v35 = vpop.xlane.xlu0 %1497  ;;  %v822_v50 = vsel %vm229_vm3, %v9182_v48, 0.0  ;;  %v656_v58 = vpop.permute.xlu1 %655 }
 0x5c7   :  { %v1499_v45 = vsub.f32 %v1495_v18, %v1498_v35  ;;  %9187 = vpow2.f32 %v1329_v46 }
 0x5c9   :  { %v1500_v47 = vmul.f32 1.442695, %v1499_v45  ;;  %v9184_v49 = vpop.eup %9183 }
 0x5ca   :  { %v484_v20 = vpop.permute.xlu0 %483  ;;  %v993_v54 = vsel %vm229_vm3, %v9184_v49, 0.0  ;;  %v828_v59 = vpop.permute.xlu1 %827 }
 0x5cb   :  { %8701 = vmatpush3.msra.mxu1 %v484_v20  ;;  %9189 = vpow2.f32 %v1500_v47 }
 0x5cc   :  { %8710 = vmatprep.subr.mxu1 %v9253_v6 }
 0x5cd   :  { %v9186_v51 = vpop.eup %9185 }
 0x5ce   :  { %v1160_v53 = vsel %vm229_vm3, %v9186_v51, 0.0 }
 0x5d0   :  { %1165 = vrot.lane.b32.xlu1 %v9414_v23, %s11056_s29 }
 0x5d1   :  { %v9188_v52 = vpop.eup %9187 }
 0x5d2   :  { %v1331_v57 = vsel %vm229_vm3, %v9188_v52, 0.0 }
 0x5d5   :  { %v9518_v55 = vpop.eup %9189 }
 0x5d6   :  { %v1502_v56 = vsel %vm229_vm3, %v9518_v55, 0.0 }
 0x5d9   :  { %998 = vrot.lane.b32.xlu0 %v9414_v23, %s11058_s1 }
 0x5f4   :  { %823 = vadd.xlane.f32.xlu1 %v822_v50 }
 0x5f8   :  { %1161 = vadd.xlane.f32.xlu1 %v1160_v53  ;;  %994 = vadd.xlane.f32.xlu0 %v993_v54 }
 0x5fc   :  { %1503 = vadd.xlane.f32.xlu1 %v1502_v56  ;;  %1332 = vadd.xlane.f32.xlu0 %v1331_v57 }
 0x60d   :  { %1507 = vrot.lane.b32.xlu1 %v9414_v23, %s11048_s28 }
 0x612   :  { %1336 = vrot.lane.b32.xlu0 %v9414_v23, %s11046_s27 }
 0x64c   :  { %v480_v60 = vpop.xlane.xlu1 %479 }
 0x64d   :  { %9191 = vrcp.f32 %v480_v60 }
 0x650   :  { %v652_v61 = vpop.xlane.xlu0 %651  ;;  %v1166_v23 = vpop.permute.xlu1 %1165 }
 0x651   :  { %9193 = vrcp.f32 %v652_v61 }
 0x654   :  { %v999_v2 = vpop.permute.xlu0 %998 }
 0x657   :  { %v9192_v62 = vpop.eup %9191 }
 0x658   :  { %v482_v63 = vmul.f32 %v9192_v62, %v9178_v29 }
 0x65a   :  { %8703 = vmatmul.mubr.msk.f32.vlgmr.msra.gmra.mrb[4].mxu1 %vm229_vm3, %v482_v63 }
 0x65b   :  { %v9194_v0 = vpop.eup %9193  ;;  %8711 = vmatpush3.msra.mxu1 %v656_v58  ;;  %8712 = vmatprep.mubr.msk.f32.mxu1 %vm9254_vm1, %v9253_v6 }
 0x65c   :  { %v654_v1 = vmul.f32 %v9194_v0, %v9180_v32  ;;  %8720 = vmatprep.subr.mxu1 %v9253_v6 }
 0x65e   :  { %8713 = vmatmul.mubr.msk.f32.vlgmr.msra.gmra.mrb[6].mxu1 %vm229_vm3, %v654_v1 }
 0x65f   :  { %8721 = vmatpush3.msra.mxu1 %v828_v59  ;;  %8722 = vmatprep.mubr.msk.f32.mxu1 %vm9254_vm1, %v9253_v6 }
 0x660   :  { %8730 = vmatprep.subr.mxu1 %v9253_v6 }
 0x681   :  { %v824_v3 = vpop.xlane.xlu1 %823 }
 0x682   :  { %9195 = vrcp.f32 %v824_v3 }
 0x685   :  { %v995_v4 = vpop.xlane.xlu0 %994  ;;  %v1162_v5 = vpop.xlane.xlu1 %1161 }
 0x686   :  { %9197 = vrcp.f32 %v995_v4  ;;  %v1714_v4 = vld [vmem:[%s11032_s10 + $0x40] sm:$0xff] }
 0x687   :  { %9199 = vrcp.f32 %v1162_v5  ;;  %v1707_v5 = vld [vmem:[%s11032_s10 + $0x8] sm:$0xff] }
 0x689   :  { %v1333_v7 = vpop.xlane.xlu0 %1332  ;;  %v1504_v10 = vpop.xlane.xlu1 %1503 }
 0x68a   :  { %9201 = vrcp.f32 %v1333_v7 }
 0x68b   :  { %9203 = vrcp.f32 %v1504_v10 }
 0x68c   :  { %v9196_v8 = vpop.eup %9195 }
 0x68d   :  { %v826_v9 = vmul.f32 %v9196_v8, %v9182_v48  ;;  %v1337_v18 = vpop.permute.xlu0 %1336  ;;  %v1508_v22 = vpop.permute.xlu1 %1507  ;;  %v1715_v8 = vld [vmem:[%s11032_s10 + $0x48] sm:$0xff] }
 0x68e   :  { %v7550_v10 = vcombine.low %v1707_v5, %v1715_v8 }
 0x68f   :  { %8723 = vmatmul.mubr.msk.f32.vlgmr.msra.gmra.mrb[8].mxu1 %vm229_vm3, %v826_v9 }
 0x690   :  { %v9198_v11 = vpop.eup %9197  ;;  %8731 = vmatpush3.msra.mxu1 %v999_v2  ;;  %8732 = vmatprep.mubr.msk.f32.mxu1 %vm9254_vm1, %v9253_v6 }
 0x691   :  { %v997_v12 = vmul.f32 %v9198_v11, %v9184_v49  ;;  %8740 = vmatprep.subr.mxu1 %v9253_v6  ;;  %v9200_v13 = vpop.eup %9199  ;;  %v7542_v49 = vld [vmem:[%s11031_s7] ss:$0 sm:$0xff]  ;;  %v7551_v11 = vcombine.high %v1707_v5, %v1715_v8  ;;  %v1721_v5 = vld [vmem:[%s11032_s10 + $0x78] sm:$0xff] }
 0x692   :  { %v1164_v14 = vmul.f32 %v9200_v13, %v9186_v51  ;;  %v1730_v13 = vld [vmem:[%s11032_s10 + $0xc0] sm:$0xff] }
 0x693   :  { %8733 = vmatmul.mubr.msk.f32.vlgmr.msra.gmra.mrb[10].mxu1 %vm229_vm3, %v997_v12  ;;  %2028 = vmatprep.subr.bf16.mxu0 %v7551_v11  ;;  %v1722_v12 = vld [vmem:[%s11032_s10 + $0x80] sm:$0xff]  ;;  %v1728_v11 = vld [vmem:[%s11032_s10 + $0xb0] sm:$0xff] }
 0x694   :  { %8741 = vmatpush3.msra.mxu1 %v1166_v23  ;;  %8742 = vmatprep.mubr.msk.f32.mxu1 %vm9254_vm1, %v9253_v6  ;;  %v9202_v17 = vpop.eup %9201 }
 0x695   :  { %8750 = vmatprep.subr.mxu1 %v9253_v6  ;;  %v1335_v19 = vmul.f32 %v9202_v17, %v9188_v52  ;;  %v9204_v21 = vpop.eup %9203  ;;  %v7565_v17 = vcombine.high %v1722_v12, %v1730_v13 }
 0x696   :  { %v1506_v24 = vmul.f32 %v9204_v21, %v9518_v55 }
 0x697   :  { %8743 = vmatmul.mubr.msk.f32.vlgmr.msra.gmra.mrb[12].mxu1 %vm229_vm3, %v1164_v14  ;;  %v1723_v14 = vld [vmem:[%s11032_s10 + $0x88] sm:$0xff] }
 0x698   :  { %8751 = vmatpush3.msra.mxu1 %v1337_v18  ;;  %8752 = vmatprep.mubr.msk.f32.mxu1 %vm9254_vm1, %v9253_v6  ;;  %v1731_v18 = vld [vmem:[%s11032_s10 + $0xc8] sm:$0xff] }
 0x699   :  { %8760 = vmatprep.subr.mxu1 %v9253_v6  ;;  %v7566_v21 = vcombine.low %v1723_v14, %v1731_v18 }
 0x69b   :  { %8753 = vmatmul.mubr.msk.f32.vlgmr.msra.gmra.mrb[14].mxu1 %vm229_vm3, %v1335_v19  ;;  %v7564_v19 = vcombine.low %v1722_v12, %v1730_v13  ;;  %v1736_v12 = vld [vmem:[%s11032_s10 + $0xf0] sm:$0xff]  ;;  %v1729_v13 = vld [vmem:[%s11032_s10 + $0xb8] sm:$0xff] }
 0x69c   :  { %8761 = vmatpush3.msra.mxu1 %v1508_v22  ;;  %8762 = vmatprep.mubr.msk.f32.mxu1 %vm9254_vm1, %v9253_v6  ;;  %v7567_v22 = vcombine.high %v1723_v14, %v1731_v18  ;;  %v1737_v14 = vld [vmem:[%s11032_s10 + $0xf8] sm:$0xff] }
 0x69f   :  { %8763 = vmatmul.mubr.msk.f32.vlgmr.msra.gmra.mrb[16].mxu1 %vm229_vm3, %v1506_v24  ;;  %v1708_v24 = vld [vmem:[%s11032_s10 + $0x10] sm:$0xff] }
 0x72d   :  { %v555_v25 = vpop.f32.mrb[4].mxu1 }
 0x72e   :  { %560 = vrot.lane.b32.xlu0 %v555_v25, %s11054_s30  ;;  %v8704_v26 = vpop.f32.mrb[5].mxu1  ;;  %v1716_v25 = vld [vmem:[%s11032_s10 + $0x50] sm:$0xff] }
 0x72f   :  { %v1709_v26 = vld [vmem:[%s11032_s10 + $0x18] sm:$0xff] }
 0x731   :  { %v727_v27 = vpop.f32.mrb[6].mxu1 }
 0x732   :  { %732 = vrot.lane.b32.xlu0 %v727_v27, %s11052_s2  ;;  %v8714_v28 = vpop.f32.mrb[7].mxu1  ;;  %v9269_v27 = vmov 0  }
 0x733   :  { %2017 = vmatprep.mubr.bf16.mxu1 %v9269_v27  ;;  %v7553_v28 = vcombine.high %v1708_v24, %v1716_v25 }
 0x762   :  { %v899_v29 = vpop.f32.mrb[8].mxu1 }
 0x763   :  { %904 = vrot.lane.b32.xlu0 %v899_v29, %s11050_s19  ;;  %v8724_v30 = vpop.f32.mrb[9].mxu1  ;;  %v1717_v29 = vld [vmem:[%s11032_s10 + $0x58] sm:$0xff] }
 0x764   :  { %v7552_v30 = vcombine.low %v1708_v24, %v1716_v25  ;;  %v7579_v24 = vcombine.high %v1729_v13, %v1737_v14  ;;  %v8913_v25 = vld [vmem:[%s11033_s12 + $0x40] sm:$0xff]  }
 0x766   :  { %v1070_v31 = vpop.f32.mrb[10].mxu1 }
 0x767   :  { %1074 = vst.msk [vmem:[#allocation2 + $0x8] sm:$0xff] %vm229_vm3, %v1070_v31  ;;  %v8734_v32 = vpop.f32.mrb[11].mxu1  ;;  %v7554_v31 = vcombine.low %v1709_v26, %v1717_v29 }
 0x768   :  { %v7555_v32 = vcombine.high %v1709_v26, %v1717_v29  ;;  %v8914_v26 = vld [vmem:[%s11033_s12 + $0xc0] sm:$0xff]   ;;  %v7578_v29 = vcombine.low %v1729_v13, %v1737_v14 }
 0x76a   :  { %v1237_v35 = vpop.f32.mrb[12].mxu1 }
 0x76b   :  { %1242 = vrot.lane.b32.xlu1 %v1237_v35, %s11054_s30  ;;  %v8744_v20 = vpop.f32.mrb[13].mxu1 }
 0x76e   :  { %v1408_v36 = vpop.f32.mrb[14].mxu1 }
 0x76f   :  { %1413 = vrot.lane.b32.xlu1 %v1408_v36, %s11052_s2  ;;  %v8754_v37 = vpop.f32.mrb[15].mxu1 }
 0x772   :  { %v1579_v38 = vpop.f32.mrb[16].mxu1 }
 0x773   :  { %1584 = vrot.lane.b32.xlu1 %v1579_v38, %s11050_s19  ;;  %v8764_v39 = vpop.f32.mrb[17].mxu1  ;;  %s11069_s19 = smov 64  }
 0x774   :  { %v7546_v39 = vld [vmem:[%s11034_s8] ss:$0 sm:$0xff] }
 0x7a0   :  { %v561_v40 = vpop.permute.xlu0 %560 }
 0x7a1   :  { %564 = vst.msk [vmem:[#allocation2] sm:$0xff] %vm563_vm4, %v561_v40 }
 0x7a4   :  { %v733_v41 = vpop.permute.xlu0 %732 }
 0x7a5   :  { %736 = vst.msk [vmem:[#allocation2] sm:$0xff] %vm735_vm5, %v733_v41 }
 0x7d5   :  { %v905_v42 = vpop.permute.xlu0 %904 }
 0x7d6   :  { %908 = vst.msk [vmem:[#allocation2] sm:$0xff] %vm907_vm6, %v905_v42  ;;  %v7547_v42 = vld [vmem:[%s11035_s9] ss:$0 sm:$0xff] }
 0x7dd   :  { %v1243_v43 = vpop.permute.xlu1 %1242  ;;  %v1588_v46 = vld [vmem:[#allocation2] sm:$0xff] }
 0x7de   :  { %1245 = vst.msk [vmem:[#allocation2 + $0x8] sm:$0xff] %vm563_vm4, %v1243_v43 }
 0x7e1   :  { %v1414_v44 = vpop.permute.xlu1 %1413 }
 0x7e2   :  { %1416 = vst.msk [vmem:[#allocation2 + $0x8] sm:$0xff] %vm735_vm5, %v1414_v44 }
 0x7e5   :  { %v1585_v45 = vpop.permute.xlu1 %1584 }
 0x7e6   :  { %1587 = vst.msk [vmem:[#allocation2 + $0x8] sm:$0xff] %vm907_vm6, %v1585_v45  ;;  %v1724_v45 = vld [vmem:[%s11032_s10 + $0x90] sm:$0xff] }
 0x7ed   :  { %v1589_v47 = vld [vmem:[#allocation2 + $0x8] sm:$0xff] }
 0x7ee   :  { %v1590_v48 = vpack.c.bf16 %v1589_v47, %v1588_v46  ;;  %v1732_v46 = vld [vmem:[%s11032_s10 + $0xd0] sm:$0xff]  ;;  %v1725_v47 = vld [vmem:[%s11032_s10 + $0x98] sm:$0xff] }
 0x7f0   :  { %8770 = vmatmul.mubr.msk.bf16.vlgmr.msra.gmra.mrb[20].mxu0 %vm181_vm2, %v1590_v48  ;;  %v1733_v48 = vld [vmem:[%s11032_s10 + $0xd8] sm:$0xff] }
 0x7f1   :  { %2029 = vmatpush1.bf16.msra.mxu0 %v7550_v10  ;;  %2060 = vmatprep.mubr.bf16.mxu0 %v9269_v27 }
 0x7f2   :  { %2030 = vmatprep.subr.bf16.mxu0 %v7567_v22  ;;  %v7577_v22 = vcombine.high %v1728_v11, %v1736_v12 }
 0x7f5   :  { %2031 = vmatpush1.bf16.msra.mxu0 %v7566_v21 }
 0x7f6   :  { %2114 = vmatprep.subr.bf16.mxu0 %v7555_v32  ;;  %v8917_v32 = vld [vmem:[%s11033_s12 + $0x48] sm:$0xff]  }
 0x8c3   :  { %v1651_v50 = vpop.f32.mrb[20].mxu0 }
 0x8c4   :  { %v1652_v51 = vadd.f32 %v7542_v49, %v1651_v50  ;;  %v8771_v52 = vpop.f32.mrb[21].mxu0 }
 0x8c5   :  { %v1654_v53 = vpop.f32.mrb[22].mxu0  ;;  %v1710_v52 = vld [vmem:[%s11032_s10 + $0x20] sm:$0xff] }
 0x8c6   :  { %v1655_v54 = vadd.f32 %v7542_v49, %v1654_v53  ;;  %v8772_v55 = vpop.f32.mrb[23].mxu0  ;;  %v1658_v56 = vadd.f32 %v1652_v51, %v9402_v16  ;;  %v1718_v53 = vld [vmem:[%s11032_s10 + $0x60] sm:$0xff] }
 0x8c7   :  { %v1719_v55 = vld [vmem:[%s11032_s10 + $0x68] sm:$0xff] }
 0x8c8   :  { %v1662_v57 = vsel %vm181_vm2, %v1658_v56, 0.0  ;;  %v1659_v58 = vadd.f32 %v1655_v54, %v9400_v15  ;;  %v1706_v15 = vld [vmem:[%s11032_s10] sm:$0xff]  ;;  %v1711_v54 = vld [vmem:[%s11032_s10 + $0x28] sm:$0xff] }
 0x8c9   :  { %1663 = vadd.xlane.f32.xlu0 %v1662_v57  ;;  %v7549_v7 = vcombine.high %v1706_v15, %v1714_v4  ;;  %v7548_v9 = vcombine.low %v1706_v15, %v1714_v4  ;;  %v7569_v57 = vcombine.high %v1724_v45, %v1732_v46  ;;  %v1720_v15 = vld [vmem:[%s11032_s10 + $0x70] sm:$0xff]  ;;  %v1713_v4 = vld [vmem:[%s11032_s10 + $0x38] sm:$0xff] }
 0x8ca   :  { %v1665_v59 = vsel %vm181_vm2, %v1659_v58, 0.0  ;;  %v7563_v18 = vcombine.high %v1713_v4, %v1721_v5  ;;  %v7562_v21 = vcombine.low %v1713_v4, %v1721_v5 }
 0x8cb   :  { %1666 = vadd.xlane.f32.xlu1 %v1665_v59  ;;  %1985 = vmatprep.subr.bf16.mxu1 %v7549_v7  ;;  %v7568_v59 = vcombine.low %v1724_v45, %v1732_v46  ;;  %v8931_v45 = vld [vmem:[%s11033_s12 + $0x20] sm:$0xff]  }
 0x8cc   :  { %1986 = vmatpush1.bf16.msra.mxu1 %v7548_v9  ;;  %v8932_v46 = vld [vmem:[%s11033_s12 + $0xa0] sm:$0xff]  }
 0x8cd   :  { %1987 = vmatprep.subr.bf16.mxu1 %v7565_v17 }
 0x8d0   :  { %1988 = vmatpush1.bf16.msra.mxu1 %v7564_v19 }
 0x8d1   :  { %2071 = vmatprep.subr.bf16.mxu1 %v7553_v28  ;;  %v7576_v28 = vcombine.low %v1728_v11, %v1736_v12 }
 0x956   :  { %v1664_v60 = vpop.xlane.xlu0 %1663 }
 0x957   :  { %v1669_v61 = vmul.f32 0.03125, %v1664_v60  ;;  %v7570_v60 = vcombine.low %v1725_v47, %v1733_v48 }
 0x958   :  { %v1667_v62 = vpop.xlane.xlu1 %1666 }
 0x959   :  { %v1671_v63 = vsub.f32 %v1658_v56, %v1669_v61  ;;  %v1670_v0 = vmul.f32 0.03125, %v1667_v62  ;;  %v1726_v61 = vld [vmem:[%s11032_s10 + $0xa0] sm:$0xff] }
 0x95a   :  { %v1734_v62 = vld [vmem:[%s11032_s10 + $0xe0] sm:$0xff] }
 0x95b   :  { %v1672_v1 = vsub.f32 %v1659_v58, %v1670_v0  ;;  %v1673_v23 = vmul.f32 %v1671_v63, %v1671_v63  ;;  %v7571_v58 = vcombine.high %v1725_v47, %v1733_v48  ;;  %v1735_v0 = vld [vmem:[%s11032_s10 + $0xe8] sm:$0xff]  ;;  %v7573_v7 = vcombine.high %v1726_v61, %v1734_v62 }
 0x95c   :  { %v7572_v9 = vcombine.low %v1726_v61, %v1734_v62  ;;  %v8933_v47 = vld [vmem:[%s11033_s12 + $0x68] sm:$0xff]   ;;  %v8945_v61 = vld [vmem:[%s11033_s12 + $0x140] sm:$0xff]  }
 0x95d   :  { %v1675_v2 = vsel %vm181_vm2, %v1673_v23, 0.0  ;;  %v1674_v3 = vmul.f32 %v1672_v1, %v1672_v1  ;;  %v7559_v23 = vcombine.high %v1711_v54, %v1719_v55  ;;  %v8934_v48 = vld [vmem:[%s11033_s12 + $0xe8] sm:$0xff]   ;;  %v8946_v62 = vld [vmem:[%s11033_s12 + $0x1c0] sm:$0xff]  }
 0x95e   :  { %1676 = vadd.xlane.f32.xlu0 %v1675_v2  ;;  %v7556_v2 = vcombine.low %v1710_v52, %v1718_v53 }
 0x95f   :  { %v1678_v16 = vsel %vm181_vm2, %v1674_v3, 0.0  ;;  %v7558_v3 = vcombine.low %v1711_v54, %v1719_v55  ;;  %v8938_v54 = vld [vmem:[%s11033_s12 + $0xf0] sm:$0xff]  }
 0x960   :  { %v8939_v55 = vld [vmem:[%s11033_s12 + $0x30] sm:$0xff]  }
 0x962   :  { %1679 = vadd.xlane.f32.xlu0 %v1678_v16  ;;  %v1712_v16 = vld [vmem:[%s11032_s10 + $0x30] sm:$0xff] }
 0x963   :  { %v7561_v17 = vcombine.high %v1712_v16, %v1720_v15  ;;  %v7560_v19 = vcombine.low %v1712_v16, %v1720_v15 }
 0x9eb   :  { %v1677_v33 = vpop.xlane.xlu0 %1676 }
 0x9ec   :  { %v1681_v34 = vmul.f32 0.03125, %v1677_v33  ;;  %v8918_v33 = vld [vmem:[%s11033_s12 + $0xc8] sm:$0xff]  }
 0x9ee   :  { %v1683_v35 = vadd.f32 1e-05, %v1681_v34  ;;  %v8919_v34 = vld [vmem:[%s11033_s12 + $0x8] sm:$0xff]  }
 0x9ef   :  { %v1680_v20 = vpop.xlane.xlu0 %1679 }
 0x9f0   :  { %9205 = vrsqrt.f32 %v1683_v35  ;;  %v1682_v36 = vmul.f32 0.03125, %v1680_v20  ;;  %v8920_v35 = vld [vmem:[%s11033_s12 + $0x88] sm:$0xff]   ;;  %v8921_v20 = vld [vmem:[%s11033_s12 + $0x50] sm:$0xff]  }
 0x9f2   :  { %v1684_v37 = vadd.f32 1e-05, %v1682_v36  ;;  %v8922_v36 = vld [vmem:[%s11033_s12 + $0xd0] sm:$0xff]  }
 0x9f4   :  { %9207 = vrsqrt.f32 %v1684_v37  ;;  %v8923_v37 = vld [vmem:[%s11033_s12 + $0x10] sm:$0xff]  }
 0x9fa   :  { %v9206_v38 = vpop.eup %9205 }
 0x9fb   :  { %v1687_v40 = vmul.f32 %v9206_v38, %v1671_v63  ;;  %v1727_v63 = vld [vmem:[%s11032_s10 + $0xa8] sm:$0xff]  ;;  %v8924_v38 = vld [vmem:[%s11033_s12 + $0x90] sm:$0xff]  }
 0x9fc   :  { %v7575_v8 = vcombine.high %v1727_v63, %v1735_v0  ;;  %v7574_v10 = vcombine.low %v1727_v63, %v1735_v0  ;;  %v1742_v63 = vlaneseq }
 0x9fd   :  { %v1695_v43 = vmul.f32 %v7546_v39, %v1687_v40  ;;  %v8926_v40 = vld [vmem:[%s11033_s12 + $0xd8] sm:$0xff]  }
 0x9fe   :  { %v9208_v41 = vpop.eup %9207  ;;  %v1743_v0 = vshrl.u32 %v1742_v63, 7 }
 0x9ff   :  { %v1688_v44 = vmul.f32 %v9208_v41, %v1672_v1  ;;  %v9638_v50 = vadd.f32 %v7547_v42, %v1695_v43  ;;  %v7557_v1 = vcombine.high %v1710_v52, %v1718_v53  ;;  %v8927_v41 = vld [vmem:[%s11033_s12 + $0x18] sm:$0xff]   ;;  %v8929_v43 = vld [vmem:[%s11033_s12 + $0x60] sm:$0xff]   ;;  %v8936_v52 = vld [vmem:[%s11033_s12 + $0xa8] sm:$0xff]  }
 0xa00   :  { %v8937_v53 = vld [vmem:[%s11033_s12 + $0x70] sm:$0xff]   ;;  %v9827_v16 = vsub.s32 3, %v1743_v0  ;;  %v9837_v12 = vsub.s32 5, %v1743_v0  ;;  %v9839_v13 = vsub.s32 7, %v1743_v0 }
 0xa01   :  { %v1696_v49 = vmul.f32 %v7546_v39, %v1688_v44  ;;  %v8925_v39 = vld [vmem:[%s11033_s12 + $0x58] sm:$0xff]   ;;  %v8930_v44 = vld [vmem:[%s11033_s12 + $0xe0] sm:$0xff]  }
 0xa03   :  { %v9640_v51 = vadd.f32 %v7547_v42, %v1696_v49  ;;  %v8928_v42 = vld [vmem:[%s11033_s12 + $0x98] sm:$0xff]   ;;  %v8935_v49 = vld [vmem:[%s11033_s12 + $0x28] sm:$0xff]  }
 0xa05   :  { %v9656_v56 = vpack.c.bf16 %v9640_v51, %v9638_v50 }
 0xa07   :  { %7580 = vmatmul.mubr.msk.bf16.vlgmr.msra.gmra.mrb[20].mxu1 %vm181_vm2, %v9656_v56  ;;  %7581 = vmatmul.mubr.msk.bf16.vlgmr.msra.gmra.mrb[24].mxu0 %vm181_vm2, %v9656_v56 }
 0xa08   :  { %2072 = vmatpush1.bf16.msra.mxu1 %v7552_v30  ;;  %2115 = vmatpush1.bf16.msra.mxu0 %v7554_v31  ;;  %v8915_v30 = vld [vmem:[%s11033_s12] sm:$0xff]  }
 0xa09   :  { %2073 = vmatprep.subr.bf16.mxu1 %v7569_v57  ;;  %2116 = vmatprep.subr.bf16.mxu0 %v7571_v58  ;;  %v8916_v31 = vld [vmem:[%s11033_s12 + $0x80] sm:$0xff]   ;;  %v8941_v57 = vld [vmem:[%s11033_s12 + $0x78] sm:$0xff]  }
 0xa0a   :  { %2103 = vmatprep.mubr.bf16.mxu1 %v9269_v27  ;;  %2146 = vmatprep.mubr.bf16.mxu0 %v9269_v27  ;;  %v8942_v58 = vld [vmem:[%s11033_s12 + $0xf8] sm:$0xff]  }
 0xa0c   :  { %2074 = vmatpush1.bf16.msra.mxu1 %v7568_v59  ;;  %2117 = vmatpush1.bf16.msra.mxu0 %v7570_v60  ;;  %v8943_v59 = vld [vmem:[%s11033_s12 + $0x38] sm:$0xff]  }
 0xa0d   :  { %2157 = vmatprep.subr.bf16.mxu1 %v7557_v1  ;;  %2200 = vmatprep.subr.bf16.mxu0 %v7559_v23  ;;  %v8944_v60 = vld [vmem:[%s11033_s12 + $0xb8] sm:$0xff]   ;;  %v9818_v1 = vsub.s32 0, %v1743_v0  ;;  %v9820_v23 = vsub.s32 2, %v1743_v0 }
 0xa0f   :  { %7582 = vmatmul.mubr.msk.bf16.vlgmr.msra.gmra.mrb[24].mxu1 %vm181_vm2, %v9656_v56  ;;  %7583 = vmatmul.mubr.msk.bf16.vlgmr.msra.gmra.mrb[28].mxu0 %vm181_vm2, %v9656_v56 }
 0xa10   :  { %2158 = vmatpush1.bf16.msra.mxu1 %v7556_v2  ;;  %2201 = vmatpush1.bf16.msra.mxu0 %v7558_v3  ;;  %v1738_v2 = vld [vmem:[%s11036_s11] sm:$0xff]  ;;  %v9825_v3 = vsub.s32 1, %v1743_v0 }
 0xa11   :  { %2159 = vmatprep.subr.bf16.mxu1 %v7573_v7  ;;  %2202 = vmatprep.subr.bf16.mxu0 %v7575_v8  ;;  %v1745_v15 = vrot.slane %v1738_v2, %v9818_v1  ;;  %v1753_v4 = vrot.slane %v1738_v2, %v9820_v23  ;;  %v1757_v7 = vrot.slane %v1738_v2, %v9827_v16  ;;  %v9833_v8 = vsub.s32 4, %v1743_v0 }
 0xa12   :  { %2189 = vmatprep.mubr.bf16.mxu1 %v9269_v27  ;;  %2232 = vmatprep.mubr.bf16.mxu0 %v9269_v27  ;;  %v1749_v5 = vrot.slane %v1738_v2, %v9825_v3 }
 0xa14   :  { %2160 = vmatpush1.bf16.msra.mxu1 %v7572_v9  ;;  %2203 = vmatpush1.bf16.msra.mxu0 %v7574_v10  ;;  %v9835_v9 = vsub.s32 6, %v1743_v0 }
 0xa15   :  { %2243 = vmatprep.subr.bf16.mxu1 %v7561_v17  ;;  %2286 = vmatprep.subr.bf16.mxu0 %v7563_v18 }
 0xa17   :  { %7584 = vmatmul.mubr.msk.bf16.vlgmr.msra.gmra.mrb[28].mxu1 %vm181_vm2, %v9656_v56  ;;  %7585 = vmatmul.mubr.msk.bf16.vlgmr.msra.gmra.mrb[32].mxu0 %vm181_vm2, %v9656_v56 }
 0xa18   :  { %2244 = vmatpush1.bf16.msra.mxu1 %v7560_v19  ;;  %2287 = vmatpush1.bf16.msra.mxu0 %v7562_v21 }
 0xa19   :  { %2245 = vmatprep.subr.bf16.mxu1 %v7577_v22  ;;  %2288 = vmatprep.subr.bf16.mxu0 %v7579_v24 }
 0xa1a   :  { %2275 = vmatprep.mubr.bf16.mxu1 %v9269_v27  ;;  %2318 = vmatprep.mubr.bf16.mxu0 %v9269_v27 }
 0xa1c   :  { %2246 = vmatpush1.bf16.msra.mxu1 %v7576_v28  ;;  %2289 = vmatpush1.bf16.msra.mxu0 %v7578_v29 }
 0xa1d   :  { %8274 = vmatprep.subr.bf16.mxu1 %v8913_v25  ;;  %8296 = vmatprep.subr.bf16.mxu0 %v8914_v26 }
 0xa1f   :  { %7586 = vmatmul.mubr.msk.bf16.vlgmr.msra.gmra.mrb[32].mxu1 %vm181_vm2, %v9656_v56  ;;  %7587 = vmatmul.mubr.msk.bf16.vlgmr.msra.gmra.mrb[36].mxu0 %vm181_vm2, %v9656_v56  ;;  %v8940_v56 = vld [vmem:[%s11033_s12 + $0xb0] sm:$0xff]  }
 0xa20   :  { %8275 = vmatpush3.bf16.msra.mxu1 %v8915_v30  ;;  %8297 = vmatpush3.bf16.msra.mxu0 %v8916_v31  ;;  %v1761_v31 = vrot.slane %v1738_v2, %v9833_v8 }
 0xa21   :  { %8276 = vmatprep.subr.bf16.mxu1 %v8917_v32  ;;  %8298 = vmatprep.subr.bf16.mxu0 %v8918_v33  ;;  %v1769_v32 = vrot.slane %v1738_v2, %v9835_v9 }
 0xa24   :  { %8277 = vmatpush3.bf16.msra.mxu1 %v8919_v34  ;;  %8299 = vmatpush3.bf16.msra.mxu0 %v8920_v35  ;;  %v1765_v35 = vrot.slane %v1738_v2, %v9837_v12 }
 0xa25   :  { %8278 = vmatprep.subr.bf16.mxu1 %v8921_v20  ;;  %8300 = vmatprep.subr.bf16.mxu0 %v8922_v36  ;;  %v1773_v20 = vrot.slane %v1738_v2, %v9839_v13 }
 0xa28   :  { %8279 = vmatpush3.bf16.msra.mxu1 %v8923_v37  ;;  %8301 = vmatpush3.bf16.msra.mxu0 %v8924_v38 }
 0xa29   :  { %8280 = vmatprep.subr.bf16.mxu1 %v8925_v39  ;;  %8302 = vmatprep.subr.bf16.mxu0 %v8926_v40 }
 0xa2c   :  { %8281 = vmatpush3.bf16.msra.mxu1 %v8927_v41  ;;  %8303 = vmatpush3.bf16.msra.mxu0 %v8928_v42 }
 0xa2d   :  { %8282 = vmatprep.subr.bf16.mxu1 %v8929_v43  ;;  %8304 = vmatprep.subr.bf16.mxu0 %v8930_v44  ;;  %v9848_v44 = vld [vmem:[%s11036_s11 + $0x8] sm:$0xff] }
 0xa30   :  { %8283 = vmatpush3.bf16.msra.mxu1 %v8931_v45  ;;  %8305 = vmatpush3.bf16.msra.mxu0 %v8932_v46 }
 0xa31   :  { %8284 = vmatprep.subr.bf16.mxu1 %v8933_v47  ;;  %8306 = vmatprep.subr.bf16.mxu0 %v8934_v48 }
 0xa34   :  { %8285 = vmatpush3.bf16.msra.mxu1 %v8935_v49  ;;  %8307 = vmatpush3.bf16.msra.mxu0 %v8936_v52 }
 0xa35   :  { %8286 = vmatprep.subr.bf16.mxu1 %v8937_v53  ;;  %8308 = vmatprep.subr.bf16.mxu0 %v8938_v54  ;;  %v8947_v53 = vld [vmem:[%s11033_s12 + $0x100] sm:$0xff]  }
 0xa36   :  { %v8948_v54 = vld [vmem:[%s11033_s12 + $0x180] sm:$0xff]  }
 0xa38   :  { %8287 = vmatpush3.bf16.msra.mxu1 %v8939_v55  ;;  %8309 = vmatpush3.bf16.msra.mxu0 %v8940_v56 }
 0xa39   :  { %8288 = vmatprep.subr.bf16.mxu1 %v8941_v57  ;;  %8310 = vmatprep.subr.bf16.mxu0 %v8942_v58 }
 0xa3c   :  { %8289 = vmatpush3.bf16.msra.mxu1 %v8943_v59  ;;  %8311 = vmatpush3.bf16.msra.mxu0 %v8944_v60  ;;  %v8949_v59 = vld [vmem:[%s11033_s12 + $0x148] sm:$0xff]  }
 0xa3d   :  { %8318 = vmatprep.subr.bf16.mxu1 %v8945_v61  ;;  %8340 = vmatprep.subr.bf16.mxu0 %v8946_v62  ;;  %v8950_v60 = vld [vmem:[%s11033_s12 + $0x1c8] sm:$0xff]   ;;  %v1777_v61 = vrot.slane %v9848_v44, %v9818_v1 }
 0xada   :  { %v2019_v10 = vpop.f32.mrb[20].mxu1  ;;  %v2062_v11 = vpop.f32.mrb[24].mxu0 }
 0xadb   :  { %v2020_v14 = vadd.f32 %v2019_v10, %v1745_v15  ;;  %v2063_v17 = vadd.f32 %v2062_v11, %v1753_v4  ;;  %v2021_v18 = vpop.f32.mrb[21].mxu1  ;;  %v2064_v19 = vpop.f32.mrb[25].mxu0  ;;  %v1781_v11 = vrot.slane %v9848_v44, %v9825_v3 }
 0xadc   :  { %v2022_v21 = vadd.f32 %v2021_v18, %v1749_v5  ;;  %v2065_v22 = vadd.f32 %v2064_v19, %v1757_v7  ;;  %v2023_v24 = vpop.f32.mrb[22].mxu1  ;;  %v2066_v25 = vpop.f32.mrb[26].mxu0  ;;  %v8951_v18 = vld [vmem:[%s11033_s12 + $0x108] sm:$0xff]  }
 0xadd   :  { %v2024_v26 = vadd.f32 %v2023_v24, %v1745_v15  ;;  %v2067_v28 = vadd.f32 %v2066_v25, %v1753_v4  ;;  %v2025_v29 = vpop.f32.mrb[23].mxu1  ;;  %v2068_v30 = vpop.f32.mrb[27].mxu0  ;;  %v2329_v36 = vmax.f32 %v2020_v14, 0.0  ;;  %v2331_v37 = vmax.f32 %v2063_v17, 0.0  ;;  %v8952_v19 = vld [vmem:[%s11033_s12 + $0x188] sm:$0xff]  }
 0xade   :  { %v2026_v33 = vadd.f32 %v2025_v29, %v1749_v5  ;;  %v2069_v34 = vadd.f32 %v2068_v30, %v1757_v7  ;;  %v2330_v40 = vmax.f32 %v2022_v21, 0.0  ;;  %v2332_v41 = vmax.f32 %v2065_v22, 0.0  ;;  %v8954_v29 = vld [vmem:[%s11033_s12 + $0x1d0] sm:$0xff]  }
 0xadf   :  { %v2345_v38 = vmax.f32 %v2024_v26, 0.0  ;;  %v2347_v39 = vmax.f32 %v2067_v28, 0.0  ;;  %v1785_v15 = vrot.slane %v9848_v44, %v9820_v23  ;;  %v1789_v21 = vrot.slane %v9848_v44, %v9827_v16  ;;  %v8953_v28 = vld [vmem:[%s11033_s12 + $0x150] sm:$0xff]  }
 0xae0   :  { %v2346_v42 = vmax.f32 %v2026_v33, 0.0  ;;  %v2348_v43 = vmax.f32 %v2069_v34, 0.0 }
 0xae1   :  { %v2361_v45 = vpack.c.bf16 %v2345_v38, %v2329_v36  ;;  %v2363_v46 = vpack.c.bf16 %v2347_v39, %v2331_v37  ;;  %v8955_v39 = vld [vmem:[%s11033_s12 + $0x110] sm:$0xff]  }
 0xae2   :  { %v2362_v47 = vpack.c.bf16 %v2346_v42, %v2330_v40  ;;  %v2364_v48 = vpack.c.bf16 %v2348_v43, %v2332_v41  ;;  %v2105_v49 = vpop.f32.mrb[24].mxu1  ;;  %v2148_v52 = vpop.f32.mrb[28].mxu0  ;;  %v8956_v40 = vld [vmem:[%s11033_s12 + $0x190] sm:$0xff]  }
 0xae3   :  { %v2106_v55 = vadd.f32 %v2105_v49, %v1761_v31  ;;  %v2149_v56 = vadd.f32 %v2148_v52, %v1769_v32  ;;  %v2107_v57 = vpop.f32.mrb[25].mxu1  ;;  %v2150_v58 = vpop.f32.mrb[29].mxu0 }
 0xae4   :  { %v2108_v62 = vadd.f32 %v2107_v57, %v1765_v35  ;;  %v2151_v63 = vadd.f32 %v2150_v58, %v1773_v20  ;;  %v2109_v0 = vpop.f32.mrb[26].mxu1  ;;  %v2152_v2 = vpop.f32.mrb[30].mxu0  ;;  %3440 = vmatprep.mubr.bf16.mxu1 %v2362_v47  ;;  %3481 = vmatprep.mubr.bf16.mxu0 %v2364_v48  ;;  %v8958_v47 = vld [vmem:[%s11033_s12 + $0x1d8] sm:$0xff]  }
 0xae5   :  { %v2110_v4 = vadd.f32 %v2109_v0, %v1761_v31  ;;  %v2153_v5 = vadd.f32 %v2152_v2, %v1769_v32  ;;  %v2111_v7 = vpop.f32.mrb[27].mxu1  ;;  %v2154_v10 = vpop.f32.mrb[31].mxu0  ;;  %3441 = vmatmul.mubr.bf16.vlgmr.msra.gmra.mrb[36].mxu1 %v2361_v45  ;;  %3482 = vmatmul.mubr.bf16.vlgmr.msra.gmra.mrb[40].mxu0 %v2363_v46  ;;  %v2333_v22 = vmax.f32 %v2106_v55, 0.0  ;;  %v2335_v24 = vmax.f32 %v2149_v56, 0.0  ;;  %v8957_v46 = vld [vmem:[%s11033_s12 + $0x158] sm:$0xff]  }
 0xae6   :  { %v2112_v14 = vadd.f32 %v2111_v7, %v1765_v35  ;;  %v2155_v17 = vadd.f32 %v2154_v10, %v1773_v20  ;;  %8319 = vmatpush3.bf16.msra.mxu1 %v8947_v53  ;;  %8341 = vmatpush3.bf16.msra.mxu0 %v8948_v54  ;;  %v2334_v30 = vmax.f32 %v2108_v62, 0.0  ;;  %v2336_v31 = vmax.f32 %v2151_v63, 0.0  ;;  %v8959_v0 = vld [vmem:[%s11033_s12 + $0x118] sm:$0xff]   ;;  %v8961_v10 = vld [vmem:[%s11033_s12 + $0x160] sm:$0xff]  }
 0xae7   :  { %v2349_v25 = vmax.f32 %v2110_v4, 0.0  ;;  %v2351_v26 = vmax.f32 %v2153_v5, 0.0  ;;  %8320 = vmatprep.subr.bf16.mxu1 %v8949_v59  ;;  %8342 = vmatprep.subr.bf16.mxu0 %v8950_v60  ;;  %v1793_v54 = vrot.slane %v9848_v44, %v9833_v8  ;;  %v1801_v59 = vrot.slane %v9848_v44, %v9835_v9 }
 0xae8   :  { %v2350_v32 = vmax.f32 %v2112_v14, 0.0  ;;  %v2352_v33 = vmax.f32 %v2155_v17, 0.0  ;;  %v1797_v60 = vrot.slane %v9848_v44, %v9837_v12  ;;  %v1805_v2 = vrot.slane %v9848_v44, %v9839_v13 }
 0xae9   :  { %v9882_v34 = vpack.c.bf16 %v2349_v25, %v2333_v22  ;;  %v9884_v35 = vpack.c.bf16 %v2351_v26, %v2335_v24 }
 0xaea   :  { %v2366_v20 = vpack.c.bf16 %v2350_v32, %v2334_v30  ;;  %v2368_v36 = vpack.c.bf16 %v2352_v33, %v2336_v31  ;;  %8321 = vmatpush3.bf16.msra.mxu1 %v8951_v18  ;;  %8343 = vmatpush3.bf16.msra.mxu0 %v8952_v19  ;;  %v2191_v37 = vpop.f32.mrb[28].mxu1  ;;  %v2234_v38 = vpop.f32.mrb[32].mxu0 }
 0xaeb   :  { %v2192_v41 = vadd.f32 %v2191_v37, %v1777_v61  ;;  %v2235_v42 = vadd.f32 %v2234_v38, %v1785_v15  ;;  %v2193_v43 = vpop.f32.mrb[29].mxu1  ;;  %v2236_v45 = vpop.f32.mrb[33].mxu0  ;;  %8322 = vmatprep.subr.bf16.mxu1 %v8953_v28  ;;  %8344 = vmatprep.subr.bf16.mxu0 %v8954_v29  ;;  %v8963_v28 = vld [vmem:[%s11033_s12 + $0x120] sm:$0xff]  }
 0xaec   :  { %v2194_v48 = vadd.f32 %v2193_v43, %v1781_v11  ;;  %v2237_v49 = vadd.f32 %v2236_v45, %v1789_v21  ;;  %v2195_v52 = vpop.f32.mrb[30].mxu1  ;;  %v2238_v53 = vpop.f32.mrb[34].mxu0  ;;  %3522 = vmatprep.mubr.bf16.mxu1 %v2366_v20  ;;  %3563 = vmatprep.mubr.bf16.mxu0 %v2368_v36  ;;  %v8964_v29 = vld [vmem:[%s11033_s12 + $0x1a0] sm:$0xff]   ;;  %v8965_v20 = vld [vmem:[%s11033_s12 + $0x168] sm:$0xff]  }
 0xaed   :  { %v2196_v55 = vadd.f32 %v2195_v52, %v1777_v61  ;;  %v2239_v56 = vadd.f32 %v2238_v53, %v1785_v15  ;;  %v2197_v57 = vpop.f32.mrb[31].mxu1  ;;  %v2240_v58 = vpop.f32.mrb[35].mxu0  ;;  %v8960_v61 = vld [vmem:[%s11033_s12 + $0x198] sm:$0xff]   ;;  %v2337_v15 = vmax.f32 %v2192_v41, 0.0  ;;  %v2339_v4 = vmax.f32 %v2235_v42, 0.0  ;;  %v8966_v36 = vld [vmem:[%s11033_s12 + $0x1e8] sm:$0xff]  }
 0xaee   :  { %v2198_v62 = vadd.f32 %v2197_v57, %v1781_v11  ;;  %v2241_v63 = vadd.f32 %v2240_v58, %v1789_v21  ;;  %8323 = vmatpush3.bf16.msra.mxu1 %v8955_v39  ;;  %8345 = vmatpush3.bf16.msra.mxu0 %v8956_v40  ;;  %v8962_v11 = vld [vmem:[%s11033_s12 + $0x1e0] sm:$0xff]   ;;  %v2338_v14 = vmax.f32 %v2194_v48, 0.0  ;;  %v2340_v17 = vmax.f32 %v2237_v49, 0.0  ;;  %v8967_v48 = vld [vmem:[%s11033_s12 + $0x128] sm:$0xff]   ;;  %v8970_v57 = vld [vmem:[%s11033_s12 + $0x1f0] sm:$0xff]  }
 0xaef   :  { %v2353_v5 = vmax.f32 %v2196_v55, 0.0  ;;  %v2355_v7 = vmax.f32 %v2239_v56, 0.0  ;;  %8324 = vmatprep.subr.bf16.mxu1 %v8957_v46  ;;  %8346 = vmatprep.subr.bf16.mxu0 %v8958_v47  ;;  %v8968_v49 = vld [vmem:[%s11033_s12 + $0x1a8] sm:$0xff]  }
 0xaf0   :  { %v2354_v18 = vmax.f32 %v2198_v62, 0.0  ;;  %v2356_v19 = vmax.f32 %v2241_v63, 0.0 }
 0xaf1   :  { %v9918_v21 = vpack.c.bf16 %v2353_v5, %v2337_v15  ;;  %v9920_v44 = vpack.c.bf16 %v2355_v7, %v2339_v4  ;;  %v8971_v15 = vld [vmem:[%s11033_s12 + $0x130] sm:$0xff]   ;;  %v8973_v5 = vld [vmem:[%s11033_s12 + $0x178] sm:$0xff]  }
 0xaf2   :  { %v9922_v22 = vpack.c.bf16 %v2354_v18, %v2338_v14  ;;  %v9924_v24 = vpack.c.bf16 %v2356_v19, %v2340_v17  ;;  %8325 = vmatpush3.bf16.msra.mxu1 %v8959_v0  ;;  %8347 = vmatpush3.bf16.msra.mxu0 %v8960_v61  ;;  %v2277_v25 = vpop.f32.mrb[32].mxu1  ;;  %v2320_v26 = vpop.f32.mrb[36].mxu0  ;;  %v8972_v4 = vld [vmem:[%s11033_s12 + $0x1b0] sm:$0xff]   ;;  %v8974_v7 = vld [vmem:[%s11033_s12 + $0x1f8] sm:$0xff]   ;;  %v8977_v14 = vld [vmem:[%s11033_s12 + $0x240] sm:$0xff]  }
 0xaf3   :  { %v2278_v30 = vadd.f32 %v2277_v25, %v1793_v54  ;;  %v2321_v31 = vadd.f32 %v2320_v26, %v1801_v59  ;;  %v2279_v32 = vpop.f32.mrb[33].mxu1  ;;  %v2322_v33 = vpop.f32.mrb[37].mxu0  ;;  %8326 = vmatprep.subr.bf16.mxu1 %v8961_v10  ;;  %8348 = vmatprep.subr.bf16.mxu0 %v8962_v11  ;;  %v8975_v10 = vld [vmem:[%s11033_s12 + $0x138] sm:$0xff]   ;;  %v8978_v17 = vld [vmem:[%s11033_s12 + $0x2c0] sm:$0xff]   ;;  %v8981_v25 = vld [vmem:[%s11033_s12 + $0x248] sm:$0xff]  }
 0xaf4   :  { %v2280_v37 = vadd.f32 %v2279_v32, %v1797_v60  ;;  %v2323_v38 = vadd.f32 %v2322_v33, %v1805_v2  ;;  %v2281_v39 = vpop.f32.mrb[34].mxu1  ;;  %v2324_v40 = vpop.f32.mrb[38].mxu0  ;;  %v8976_v11 = vld [vmem:[%s11033_s12 + $0x1b8] sm:$0xff]   ;;  %v8979_v18 = vld [vmem:[%s11033_s12 + $0x200] sm:$0xff]   ;;  %v8982_v26 = vld [vmem:[%s11033_s12 + $0x2c8] sm:$0xff]  }
 0xaf5   :  { %v2282_v41 = vadd.f32 %v2281_v39, %v1793_v54  ;;  %v2325_v42 = vadd.f32 %v2324_v40, %v1801_v59  ;;  %v2283_v43 = vpop.f32.mrb[35].mxu1  ;;  %v2326_v45 = vpop.f32.mrb[39].mxu0  ;;  %v2341_v52 = vmax.f32 %v2278_v30, 0.0  ;;  %v2343_v53 = vmax.f32 %v2321_v31, 0.0  ;;  %v8969_v54 = vld [vmem:[%s11033_s12 + $0x170] sm:$0xff]   ;;  %v8980_v19 = vld [vmem:[%s11033_s12 + $0x280] sm:$0xff]  }
 0xaf6   :  { %v2284_v46 = vadd.f32 %v2283_v43, %v1797_v60  ;;  %v2327_v47 = vadd.f32 %v2326_v45, %v1805_v2  ;;  %8327 = vmatpush3.bf16.msra.mxu1 %v8963_v28  ;;  %8349 = vmatpush3.bf16.msra.mxu0 %v8964_v29  ;;  %v2342_v58 = vmax.f32 %v2280_v37, 0.0  ;;  %v2344_v59 = vmax.f32 %v2323_v38, 0.0  ;;  %v8983_v28 = vld [vmem:[%s11033_s12 + $0x208] sm:$0xff]   ;;  %v8989_v30 = vld [vmem:[%s11033_s12 + $0x258] sm:$0xff]   ;;  %v8995_v37 = vld [vmem:[%s11033_s12 + $0x220] sm:$0xff]  }
 0xaf7   :  { %v2357_v55 = vmax.f32 %v2282_v41, 0.0  ;;  %v2359_v56 = vmax.f32 %v2325_v42, 0.0  ;;  %8328 = vmatprep.subr.bf16.mxu1 %v8965_v20  ;;  %8350 = vmatprep.subr.bf16.mxu0 %v8966_v36  ;;  %v8984_v29 = vld [vmem:[%s11033_s12 + $0x288] sm:$0xff]   ;;  %v8990_v31 = vld [vmem:[%s11033_s12 + $0x2d8] sm:$0xff]   ;;  %v8993_v20 = vld [vmem:[%s11033_s12 + $0x260] sm:$0xff]  }
 0xaf8   :  { %v2358_v60 = vmax.f32 %v2284_v46, 0.0  ;;  %v2360_v62 = vmax.f32 %v2327_v47, 0.0  ;;  %v8991_v32 = vld [vmem:[%s11033_s12 + $0x218] sm:$0xff]   ;;  %v8994_v36 = vld [vmem:[%s11033_s12 + $0x2e0] sm:$0xff]   ;;  %v8997_v39 = vld [vmem:[%s11033_s12 + $0x268] sm:$0xff]  }
 0xaf9   :  { %v9950_v63 = vpack.c.bf16 %v2357_v55, %v2341_v52  ;;  %v9952_v0 = vpack.c.bf16 %v2359_v56, %v2343_v53  ;;  %v8992_v33 = vld [vmem:[%s11033_s12 + $0x298] sm:$0xff]   ;;  %v8996_v38 = vld [vmem:[%s11033_s12 + $0x2a0] sm:$0xff]   ;;  %v8998_v40 = vld [vmem:[%s11033_s12 + $0x2e8] sm:$0xff]  }
 0xafa   :  { %v9954_v61 = vpack.c.bf16 %v2358_v60, %v2342_v58  ;;  %v9956_v2 = vpack.c.bf16 %v2360_v62, %v2344_v59  ;;  %8329 = vmatpush3.bf16.msra.mxu1 %v8967_v48  ;;  %8351 = vmatpush3.bf16.msra.mxu0 %v8968_v49  ;;  %v8999_v41 = vld [vmem:[%s11033_s12 + $0x228] sm:$0xff]   ;;  %v9001_v43 = vld [vmem:[%s11033_s12 + $0x270] sm:$0xff]   ;;  %v9005_v48 = vld [vmem:[%s11033_s12 + $0x278] sm:$0xff]  }
 0xafb   :  { %8330 = vmatprep.subr.bf16.mxu1 %v8969_v54  ;;  %8352 = vmatprep.subr.bf16.mxu0 %v8970_v57  ;;  %v9000_v42 = vld [vmem:[%s11033_s12 + $0x2a8] sm:$0xff]   ;;  %v9002_v45 = vld [vmem:[%s11033_s12 + $0x2f0] sm:$0xff]   ;;  %v9006_v49 = vld [vmem:[%s11033_s12 + $0x2f8] sm:$0xff]  }
 0xafc   :  { %v9003_v46 = vld [vmem:[%s11033_s12 + $0x230] sm:$0xff]   ;;  %v9007_v52 = vld [vmem:[%s11033_s12 + $0x238] sm:$0xff]   ;;  %v9009_v55 = vld [vmem:[%s11033_s12 + $0x340] sm:$0xff]  }
 0xafd   :  { %v9004_v47 = vld [vmem:[%s11033_s12 + $0x2b0] sm:$0xff]   ;;  %v9008_v53 = vld [vmem:[%s11033_s12 + $0x2b8] sm:$0xff]   ;;  %v9010_v56 = vld [vmem:[%s11033_s12 + $0x3c0] sm:$0xff]  }
 0xafe   :  { %8331 = vmatpush3.bf16.msra.mxu1 %v8971_v15  ;;  %8353 = vmatpush3.bf16.msra.mxu0 %v8972_v4  ;;  %v9011_v54 = vld [vmem:[%s11033_s12 + $0x300] sm:$0xff]   ;;  %v9013_v58 = vld [vmem:[%s11033_s12 + $0x348] sm:$0xff]   ;;  %v9020_v15 = vld [vmem:[%s11033_s12 + $0x390] sm:$0xff]  }
 0xaff   :  { %8332 = vmatprep.subr.bf16.mxu1 %v8973_v5  ;;  %8354 = vmatprep.subr.bf16.mxu0 %v8974_v7  ;;  %v9012_v57 = vld [vmem:[%s11033_s12 + $0x380] sm:$0xff]   ;;  %v9014_v59 = vld [vmem:[%s11033_s12 + $0x3c8] sm:$0xff]   ;;  %v9022_v4 = vld [vmem:[%s11033_s12 + $0x3d8] sm:$0xff]  }
 0xb00   :  { %v9015_v60 = vld [vmem:[%s11033_s12 + $0x308] sm:$0xff]   ;;  %v9023_v5 = vld [vmem:[%s11033_s12 + $0x318] sm:$0xff]  }
 0xb01   :  { %v9016_v62 = vld [vmem:[%s11033_s12 + $0x388] sm:$0xff]   ;;  %v9024_v7 = vld [vmem:[%s11033_s12 + $0x398] sm:$0xff]  }
 0xb02   :  { %8333 = vmatpush3.bf16.msra.mxu1 %v8975_v10  ;;  %8355 = vmatpush3.bf16.msra.mxu0 %v8976_v11  ;;  %v9025_v10 = vld [vmem:[%s11033_s12 + $0x360] sm:$0xff]  }
 0xb03   :  { %8362 = vmatprep.subr.bf16.mxu1 %v8977_v14  ;;  %8384 = vmatprep.subr.bf16.mxu0 %v8978_v17  ;;  %v9026_v11 = vld [vmem:[%s11033_s12 + $0x3e0] sm:$0xff]  }
 0xb04   :  { %v9027_v14 = vld [vmem:[%s11033_s12 + $0x320] sm:$0xff]  }
 0xb05   :  { %3523 = vmatmul.mubr.bf16.vlgmr.msra.gmra.mrb[40].mxu1 %v9882_v34  ;;  %3564 = vmatmul.mubr.bf16.vlgmr.msra.gmra.mrb[44].mxu0 %v9884_v35  ;;  %v8985_v34 = vld [vmem:[%s11033_s12 + $0x250] sm:$0xff]   ;;  %v9028_v17 = vld [vmem:[%s11033_s12 + $0x3a0] sm:$0xff]  }
 0xb06   :  { %8363 = vmatpush3.bf16.msra.mxu1 %v8979_v18  ;;  %3604 = vmatprep.mubr.bf16.mxu1 %v9922_v22  ;;  %v8986_v35 = vld [vmem:[%s11033_s12 + $0x2d0] sm:$0xff]   ;;  %v9029_v18 = vld [vmem:[%s11033_s12 + $0x368] sm:$0xff]  }
 0xb07   :  { %8385 = vmatpush3.bf16.msra.mxu0 %v8980_v19  ;;  %3645 = vmatprep.mubr.bf16.mxu0 %v9924_v24  ;;  %v8987_v22 = vld [vmem:[%s11033_s12 + $0x210] sm:$0xff]   ;;  %v9030_v19 = vld [vmem:[%s11033_s12 + $0x3e8] sm:$0xff]  }
 0xb08   :  { %8364 = vmatprep.subr.bf16.mxu1 %v8981_v25  ;;  %8386 = vmatprep.subr.bf16.mxu0 %v8982_v26  ;;  %v8988_v24 = vld [vmem:[%s11033_s12 + $0x290] sm:$0xff]   ;;  %v9031_v25 = vld [vmem:[%s11033_s12 + $0x328] sm:$0xff]  }
 0xb09   :  { %v9032_v26 = vld [vmem:[%s11033_s12 + $0x3a8] sm:$0xff]  }
 0xb0a   :  { %8365 = vmatpush3.bf16.msra.mxu1 %v8983_v28  ;;  %v9033_v28 = vld [vmem:[%s11033_s12 + $0x370] sm:$0xff]  }
 0xb0b   :  { %8387 = vmatpush3.bf16.msra.mxu0 %v8984_v29  ;;  %8366 = vmatprep.subr.bf16.mxu1 %v8985_v34  ;;  %v9034_v29 = vld [vmem:[%s11033_s12 + $0x3f0] sm:$0xff]  }
 0xb0c   :  { %8388 = vmatprep.subr.bf16.mxu0 %v8986_v35  ;;  %v9035_v34 = vld [vmem:[%s11033_s12 + $0x330] sm:$0xff]  }
 0xb0d   :  { %v9036_v35 = vld [vmem:[%s11033_s12 + $0x3b0] sm:$0xff]  }
 0xb0e   :  { %8367 = vmatpush3.bf16.msra.mxu1 %v8987_v22  ;;  %v9037_v22 = vld [vmem:[%s11033_s12 + $0x378] sm:$0xff]  }
 0xb0f   :  { %8389 = vmatpush3.bf16.msra.mxu0 %v8988_v24  ;;  %8368 = vmatprep.subr.bf16.mxu1 %v8989_v30  ;;  %v9038_v24 = vld [vmem:[%s11033_s12 + $0x3f8] sm:$0xff]  }
 0xb10   :  { %8390 = vmatprep.subr.bf16.mxu0 %v8990_v31  ;;  %v9039_v30 = vld [vmem:[%s11033_s12 + $0x338] sm:$0xff]  }
 0xb11   :  { %v9040_v31 = vld [vmem:[%s11033_s12 + $0x3b8] sm:$0xff]  }
 0xb12   :  { %8369 = vmatpush3.bf16.msra.mxu1 %v8991_v32 }
 0xb13   :  { %8391 = vmatpush3.bf16.msra.mxu0 %v8992_v33  ;;  %8370 = vmatprep.subr.bf16.mxu1 %v8993_v20  ;;  %v7588_v20 = vld [vmem:[%s11037_s13] ss:$0 sm:$0xff] }
 0xb14   :  { %8392 = vmatprep.subr.bf16.mxu0 %v8994_v36 }
 0xb16   :  { %8371 = vmatpush3.bf16.msra.mxu1 %v8995_v37 }
 0xb17   :  { %8393 = vmatpush3.bf16.msra.mxu0 %v8996_v38  ;;  %8372 = vmatprep.subr.bf16.mxu1 %v8997_v39 }
 0xb18   :  { %8394 = vmatprep.subr.bf16.mxu0 %v8998_v40 }
 0xb1a   :  { %8373 = vmatpush3.bf16.msra.mxu1 %v8999_v41 }
 0xb1b   :  { %8395 = vmatpush3.bf16.msra.mxu0 %v9000_v42  ;;  %8374 = vmatprep.subr.bf16.mxu1 %v9001_v43 }
 0xb1c   :  { %8396 = vmatprep.subr.bf16.mxu0 %v9002_v45 }
 0xb1e   :  { %8375 = vmatpush3.bf16.msra.mxu1 %v9003_v46 }
 0xb1f   :  { %8397 = vmatpush3.bf16.msra.mxu0 %v9004_v47  ;;  %8376 = vmatprep.subr.bf16.mxu1 %v9005_v48 }
 0xb20   :  { %8398 = vmatprep.subr.bf16.mxu0 %v9006_v49 }
 0xb22   :  { %8377 = vmatpush3.bf16.msra.mxu1 %v9007_v52 }
 0xb23   :  { %8399 = vmatpush3.bf16.msra.mxu0 %v9008_v53  ;;  %8406 = vmatprep.subr.bf16.mxu1 %v9009_v55 }
 0xb24   :  { %8428 = vmatprep.subr.bf16.mxu0 %v9010_v56 }
 0xb25   :  { %3605 = vmatmul.mubr.bf16.vlgmr.msra.gmra.mrb[44].mxu1 %v9918_v21  ;;  %v9017_v21 = vld [vmem:[%s11033_s12 + $0x350] sm:$0xff]  }
 0xb26   :  { %3646 = vmatmul.mubr.bf16.vlgmr.msra.gmra.mrb[48].mxu0 %v9920_v44  ;;  %8407 = vmatpush3.bf16.msra.mxu1 %v9011_v54  ;;  %v9018_v44 = vld [vmem:[%s11033_s12 + $0x3d0] sm:$0xff]  }
 0xb27   :  { %3686 = vmatprep.mubr.bf16.mxu1 %v9954_v61  ;;  %8429 = vmatpush3.bf16.msra.mxu0 %v9012_v57  ;;  %v9019_v61 = vld [vmem:[%s11033_s12 + $0x310] sm:$0xff]  }
 0xb28   :  { %3727 = vmatprep.mubr.bf16.mxu0 %v9956_v2  ;;  %8408 = vmatprep.subr.bf16.mxu1 %v9013_v58  ;;  %v9021_v2 = vld [vmem:[%s11033_s12 + $0x358] sm:$0xff]  }
 0xb29   :  { %8430 = vmatprep.subr.bf16.mxu0 %v9014_v59 }
 0xb2a   :  { %8409 = vmatpush3.bf16.msra.mxu1 %v9015_v60 }
 0xb2b   :  { %8431 = vmatpush3.bf16.msra.mxu0 %v9016_v62  ;;  %8410 = vmatprep.subr.bf16.mxu1 %v9017_v21 }
 0xb2c   :  { %8432 = vmatprep.subr.bf16.mxu0 %v9018_v44 }
 0xb2e   :  { %8411 = vmatpush3.bf16.msra.mxu1 %v9019_v61 }
 0xb2f   :  { %8433 = vmatpush3.bf16.msra.mxu0 %v9020_v15  ;;  %8412 = vmatprep.subr.bf16.mxu1 %v9021_v2 }
 0xb30   :  { %8434 = vmatprep.subr.bf16.mxu0 %v9022_v4 }
 0xb32   :  { %8413 = vmatpush3.bf16.msra.mxu1 %v9023_v5 }
 0xb33   :  { %8435 = vmatpush3.bf16.msra.mxu0 %v9024_v7  ;;  %8414 = vmatprep.subr.bf16.mxu1 %v9025_v10 }
 0xb34   :  { %8436 = vmatprep.subr.bf16.mxu0 %v9026_v11 }
 0xb36   :  { %8415 = vmatpush3.bf16.msra.mxu1 %v9027_v14 }
 0xb37   :  { %8437 = vmatpush3.bf16.msra.mxu0 %v9028_v17  ;;  %8416 = vmatprep.subr.bf16.mxu1 %v9029_v18 }
 0xb38   :  { %8438 = vmatprep.subr.bf16.mxu0 %v9030_v19 }
 0xb3a   :  { %8417 = vmatpush3.bf16.msra.mxu1 %v9031_v25 }
 0xb3b   :  { %8439 = vmatpush3.bf16.msra.mxu0 %v9032_v26  ;;  %8418 = vmatprep.subr.bf16.mxu1 %v9033_v28 }
 0xb3c   :  { %8440 = vmatprep.subr.bf16.mxu0 %v9034_v29 }
 0xb3e   :  { %8419 = vmatpush3.bf16.msra.mxu1 %v9035_v34 }
 0xb3f   :  { %8441 = vmatpush3.bf16.msra.mxu0 %v9036_v35  ;;  %8420 = vmatprep.subr.bf16.mxu1 %v9037_v22 }
 0xb40   :  { %8442 = vmatprep.subr.bf16.mxu0 %v9038_v24 }
 0xb42   :  { %8421 = vmatpush3.bf16.msra.mxu1 %v9039_v30 }
 0xb43   :  { %8443 = vmatpush3.bf16.msra.mxu0 %v9040_v31  ;;  %8773 = vmatprep.subr.bf16.mxu1 %v9253_v6 }
 0xb44   :  { %8781 = vmatprep.subr.mxu0 %v9253_v6 }
 0xb45   :  { %3687 = vmatmul.mubr.bf16.vlgmr.msra.gmra.mrb[48].mxu1 %v9950_v63 }
 0xb46   :  { %3728 = vmatmul.mubr.bf16.vlgmr.msra.gmra.mrb[52].mxu0 %v9952_v0  ;;  %8777 = vmatprep.mubr.msk.bf16.mxu1 %vm9254_vm1, %v9253_v6 }
 0xb47   :  { %8783 = vmatprep.mubr.msk.f32.mxu0 %vm9254_vm1, %v9253_v6 }
 0xbb8   :  { %v8290_v32 = vpop.f32.mrb[36].mxu1  ;;  %v8312_v33 = vpop.f32.mrb[40].mxu0 }
 0xbb9   :  { %v8291_v36 = vpop.f32.mrb[37].mxu1  ;;  %v8313_v37 = vpop.f32.mrb[41].mxu0 }
 0xbba   :  { %v8292_v38 = vadd.f32 %v8291_v36, %v8290_v32  ;;  %v8314_v39 = vadd.f32 %v8313_v37, %v8312_v33  ;;  %v8293_v40 = vpop.f32.mrb[38].mxu1  ;;  %v8315_v63 = vpop.f32.mrb[42].mxu0 }
 0xbbb   :  { %v8294_v41 = vpop.f32.mrb[39].mxu1  ;;  %v8316_v0 = vpop.f32.mrb[43].mxu0 }
 0xbbc   :  { %v3443_v42 = vadd.f32 %v8292_v38, %v7588_v20  ;;  %v8295_v43 = vadd.f32 %v8294_v41, %v8293_v40  ;;  %v8317_v45 = vadd.f32 %v8316_v0, %v8315_v63 }
 0xbbe   :  { %v3484_v46 = vadd.f32 %v8314_v39, %v3443_v42  ;;  %v3446_v47 = vadd.f32 %v8295_v43, %v7588_v20 }
 0xbc0   :  { %v3487_v48 = vadd.f32 %v8317_v45, %v3446_v47 }
 0xbd8   :  { %v8334_v49 = vpop.f32.mrb[40].mxu1  ;;  %v8356_v52 = vpop.f32.mrb[44].mxu0 }
 0xbd9   :  { %v8335_v53 = vpop.f32.mrb[41].mxu1  ;;  %v8357_v55 = vpop.f32.mrb[45].mxu0 }
 0xbda   :  { %v8336_v56 = vadd.f32 %v8335_v53, %v8334_v49  ;;  %v8358_v54 = vadd.f32 %v8357_v55, %v8356_v52  ;;  %v8337_v57 = vpop.f32.mrb[42].mxu1  ;;  %v8359_v58 = vpop.f32.mrb[46].mxu0 }
 0xbdb   :  { %v8338_v59 = vpop.f32.mrb[43].mxu1  ;;  %v8360_v60 = vpop.f32.mrb[47].mxu0 }
 0xbdc   :  { %v3525_v62 = vadd.f32 %v8336_v56, %v3484_v46  ;;  %v8339_v21 = vadd.f32 %v8338_v59, %v8337_v57  ;;  %v8361_v44 = vadd.f32 %v8360_v60, %v8359_v58  ;;  %v9042_v60 = vld [vmem:[%s11067_s24 + $0x18] sm:$0xff]  }
 0xbde   :  { %v3566_v61 = vadd.f32 %v8358_v54, %v3525_v62  ;;  %v3528_v15 = vadd.f32 %v8339_v21, %v3487_v48 }
 0xbe0   :  { %v3569_v2 = vadd.f32 %v8361_v44, %v3528_v15 }
 0xbf8   :  { %v8378_v4 = vpop.f32.mrb[44].mxu1 }
 0xbf9   :  { %v8400_v5 = vpop.f32.mrb[48].mxu0  ;;  %v8379_v7 = vpop.f32.mrb[45].mxu1 }
 0xbfa   :  { %v8380_v10 = vadd.f32 %v8379_v7, %v8378_v4  ;;  %v8401_v11 = vpop.f32.mrb[49].mxu0  ;;  %v8381_v14 = vpop.f32.mrb[46].mxu1 }
 0xbfb   :  { %v8402_v17 = vadd.f32 %v8401_v11, %v8400_v5  ;;  %v8403_v18 = vpop.f32.mrb[50].mxu0  ;;  %v8382_v19 = vpop.f32.mrb[47].mxu1  ;;  %v7717_v5 = vld [vmem:[%s11038_s14] ss:$0 sm:$0xff] }
 0xbfc   :  { %v3607_v25 = vadd.f32 %v8380_v10, %v3566_v61  ;;  %v8383_v26 = vadd.f32 %v8382_v19, %v8381_v14  ;;  %v8404_v28 = vpop.f32.mrb[51].mxu0 }
 0xbfd   :  { %v8405_v29 = vadd.f32 %v8404_v28, %v8403_v18  ;;  %v7724_v28 = vld [vmem:[%s11029_s5 + $0x1] ss:$0 sm:$0xff]  ;;  %s11068_s5 = smov 72  }
 0xbfe   :  { %v3648_v34 = vadd.f32 %v8402_v17, %v3607_v25  ;;  %v3610_v35 = vadd.f32 %v8383_v26, %v3569_v2  ;;  %v7718_v17 = vld [vmem:[%s11039_s15] ss:$0 sm:$0xff] }
 0xc00   :  { %v3651_v22 = vadd.f32 %v8405_v29, %v3610_v35 }
 0xc18   :  { %v8422_v24 = vpop.f32.mrb[48].mxu1 }
 0xc19   :  { %v8444_v30 = vpop.f32.mrb[52].mxu0  ;;  %v8423_v31 = vpop.f32.mrb[49].mxu1 }
 0xc1a   :  { %v8424_v32 = vadd.f32 %v8423_v31, %v8422_v24  ;;  %v8445_v33 = vpop.f32.mrb[53].mxu0  ;;  %v8425_v20 = vpop.f32.mrb[50].mxu1 }
 0xc1b   :  { %v8446_v36 = vadd.f32 %v8445_v33, %v8444_v30  ;;  %v8447_v37 = vpop.f32.mrb[54].mxu0  ;;  %v8426_v38 = vpop.f32.mrb[51].mxu1 }
 0xc1c   :  { %v3689_v39 = vadd.f32 %v8424_v32, %v3648_v34  ;;  %v8427_v40 = vadd.f32 %v8426_v38, %v8425_v20  ;;  %v8448_v63 = vpop.f32.mrb[55].mxu0 }
 0xc1d   :  { %v8449_v41 = vadd.f32 %v8448_v63, %v8447_v37 }
 0xc1e   :  { %v3730_v0 = vadd.f32 %v8446_v36, %v3689_v39  ;;  %v3692_v42 = vadd.f32 %v8427_v40, %v3651_v22 }
 0xc20   :  { %v3733_v43 = vadd.f32 %v8449_v41, %v3692_v42  ;;  %v3736_v45 = vadd.f32 %v3730_v0, %v9638_v50 }
 0xc22   :  { %v3740_v46 = vsel %vm181_vm2, %v3736_v45, 0.0  ;;  %v3737_v47 = vadd.f32 %v3733_v43, %v9640_v51  ;;  %v9041_v51 = vld [vmem:[%s11067_s24 + $0x10] sm:$0xff]  }
 0xc23   :  { %3741 = vadd.xlane.f32.xlu1 %v3740_v46  ;;  %8774 = vmatpush3.bf16.msra.mxu1 %v9041_v51 }
 0xc24   :  { %v3743_v48 = vsel %vm181_vm2, %v3737_v47, 0.0  ;;  %8775 = vmatprep.subr.bf16.mxu1 %v9253_v6 }
 0xc25   :  { %3744 = vadd.xlane.f32.xlu0 %v3743_v48 }
 0xc27   :  { %8776 = vmatpush3.bf16.msra.mxu1 %v9042_v60 }
 0xc28   :  { %8786 = vmatprep.subr.mxu1 %v9253_v6 }
 0xcb0   :  { %v3742_v49 = vpop.xlane.xlu1 %3741 }
 0xcb1   :  { %v3746_v52 = vmul.f32 0.03125, %v3742_v49 }
 0xcb2   :  { %v3745_v53 = vpop.xlane.xlu0 %3744 }
 0xcb3   :  { %v3748_v55 = vsub.f32 %v3736_v45, %v3746_v52  ;;  %v3747_v56 = vmul.f32 0.03125, %v3745_v53 }
 0xcb5   :  { %v3749_v54 = vsub.f32 %v3737_v47, %v3747_v56  ;;  %v3750_v57 = vmul.f32 %v3748_v55, %v3748_v55 }
 0xcb7   :  { %v3752_v58 = vsel %vm181_vm2, %v3750_v57, 0.0  ;;  %v3751_v59 = vmul.f32 %v3749_v54, %v3749_v54 }
 0xcb8   :  { %3753 = vadd.xlane.f32.xlu1 %v3752_v58 }
 0xcb9   :  { %v3755_v50 = vsel %vm181_vm2, %v3751_v59, 0.0 }
 0xcba   :  { %3756 = vadd.xlane.f32.xlu0 %v3755_v50 }
 0xd45   :  { %v3754_v62 = vpop.xlane.xlu1 %3753 }
 0xd46   :  { %v3758_v21 = vmul.f32 0.03125, %v3754_v62 }
 0xd47   :  { %v3757_v44 = vpop.xlane.xlu0 %3756 }
 0xd48   :  { %v3760_v61 = vadd.f32 1e-05, %v3758_v21  ;;  %v3759_v15 = vmul.f32 0.03125, %v3757_v44 }
 0xd4a   :  { %9209 = vrsqrt.f32 %v3760_v61  ;;  %v3761_v2 = vadd.f32 1e-05, %v3759_v15 }
 0xd4c   :  { %9211 = vrsqrt.f32 %v3761_v2 }
 0xd54   :  { %v9210_v4 = vpop.eup %9209 }
 0xd55   :  { %v3764_v7 = vmul.f32 %v9210_v4, %v3748_v55 }
 0xd56   :  { %v9212_v10 = vpop.eup %9211 }
 0xd57   :  { %v3772_v11 = vmul.f32 %v7717_v5, %v3764_v7  ;;  %v3765_v14 = vmul.f32 %v9212_v10, %v3749_v54 }
 0xd59   :  { %v3773_v18 = vmul.f32 %v7717_v5, %v3765_v14  ;;  %v10207_v19 = vadd.f32 %v7718_v17, %v3772_v11 }
 0xd5b   :  { %v10209_v25 = vadd.f32 %v7718_v17, %v3773_v18 }
 0xd5d   :  { %v3782_v26 = vpack.c.bf16 %v10209_v25, %v10207_v19 }
 0xd5f   :  { %8778 = vmatmul.mubr.msk.bf16.vlgmr.msra.gmra.mrb[52].mxu1 %vm181_vm2, %v3782_v26 }
 0xd60   :  { %8788 = vmatprep.mubr.msk.f32.mxu1 %vm9254_vm1, %v9253_v6 }
 0xe32   :  { %v3845_v29 = vpop.f32.mrb[52].mxu1 }
 0xe33   :  { %v10219_v34 = vadd.f32 %v7724_v28, %v3845_v29  ;;  %v8779_v35 = vpop.f32.mrb[53].mxu1 }
 0xe34   :  { %v3848_v22 = vpop.f32.mrb[54].mxu1 }
 0xe35   :  { %4020 = vrot.lane.b32.xlu0 %v10219_v34, %s9257_s21  ;;  %3853 = vrot.lane.b32.xlu1 %v10219_v34, %s9256_s20  ;;  %v8780_v24 = vpop.f32.mrb[55].mxu1  ;;  %v10233_v30 = vadd.f32 %v7724_v28, %v3848_v22 }
 0xe39   :  { %4189 = vrot.lane.b32.xlu0 %v10219_v34, %s9260_s23  ;;  %4018 = vrot.lane.b32.xlu1 %v10219_v34, %s9258_s22 }
 0xe3d   :  { %4360 = vrot.lane.b32.xlu0 %v10219_v34, %s9261_s25  ;;  %4191 = vrot.lane.b32.xlu1 %v10219_v34, %s9259_s4 }
 0xe41   :  { %4362 = vrot.lane.b32.xlu1 %v10219_v34, %s11068_s5  ;;  %4699 = vrot.lane.b32.xlu0 %v10233_v30, %s9257_s21  ;;  %s11070_s21 = smov 56  }
 0xe45   :  { %4870 = vrot.lane.b32.xlu0 %v10233_v30, %s9259_s4  ;;  %4532 = vrot.lane.b32.xlu1 %v10233_v30, %s9256_s20  ;;  %s11071_s20 = smov 40   ;;  %s11073_s4 = smov 8  }
 0xe49   :  { %5041 = vrot.lane.b32.xlu0 %v10233_v30, %s11068_s5  ;;  %4697 = vrot.lane.b32.xlu1 %v10233_v30, %s9258_s22  ;;  %s11072_s22 = smov 48  }
 0xe4d   :  { %3941 = vrot.lane.b32.xlu0 %v10219_v34, %s11069_s19  ;;  %4868 = vrot.lane.b32.xlu1 %v10233_v30, %s9260_s23  ;;  %s11074_s23 = smov 16  }
 0xe51   :  { %5039 = vrot.lane.b32.xlu1 %v10233_v30, %s9261_s25  ;;  %s11075_s25 = smov 24  }
 0xe55   :  { %4108 = vrot.lane.b32.xlu1 %v10219_v34, %s11070_s21 }
 0xea7   :  { %v4021_v31 = vpop.permute.xlu0 %4020  ;;  %v3854_v32 = vpop.permute.xlu1 %3853 }
 0xea8   :  { %8782 = vmatpush3.xpose.msk.msra.mxu0 %vm229_vm3, %v3854_v32 }
 0xea9   :  { %8791 = vmatprep.subr.mxu0 %v9253_v6 }
 0xeab   :  { %v4190_v33 = vpop.permute.xlu0 %4189  ;;  %8784 = vmatmul.mubr.msk.f32.vlgmr.msra.gmra.mrb[56].mxu0 %vm229_vm3, %v10219_v34  ;;  %v4019_v20 = vpop.permute.xlu1 %4018 }
 0xeac   :  { %8792 = vmatpush3.xpose.msk.msra.mxu0 %vm229_vm3, %v4021_v31  ;;  %8793 = vmatprep.mubr.msk.f32.mxu0 %vm9254_vm1, %v9253_v6 }
 0xead   :  { %8801 = vmatprep.subr.mxu0 %v9253_v6 }
 0xeaf   :  { %v4361_v36 = vpop.permute.xlu0 %4360  ;;  %8794 = vmatmul.mubr.msk.f32.vlgmr.msra.gmra.mrb[58].mxu0 %vm229_vm3, %v4019_v20  ;;  %v4192_v37 = vpop.permute.xlu1 %4191 }
 0xeb0   :  { %8802 = vmatpush3.xpose.msk.msra.mxu0 %vm229_vm3, %v4192_v37  ;;  %8803 = vmatprep.mubr.msk.f32.mxu0 %vm9254_vm1, %v9253_v6 }
 0xeb1   :  { %8811 = vmatprep.subr.mxu0 %v9253_v6 }
 0xeb3   :  { %8804 = vmatmul.mubr.msk.f32.vlgmr.msra.gmra.mrb[60].mxu0 %vm229_vm3, %v4190_v33  ;;  %v4363_v38 = vpop.permute.xlu1 %4362  ;;  %v4700_v39 = vpop.permute.xlu0 %4699 }
 0xeb4   :  { %8812 = vmatpush3.xpose.msk.msra.mxu0 %vm229_vm3, %v4363_v38  ;;  %8813 = vmatprep.mubr.msk.f32.mxu0 %vm9254_vm1, %v9253_v6 }
 0xeb5   :  { %8821 = vmatprep.subr.mxu0 %v9253_v6 }
 0xeb7   :  { %8814 = vmatmul.mubr.msk.f32.vlgmr.msra.gmra.mrb[62].mxu0 %vm229_vm3, %v4361_v36  ;;  %v4871_v40 = vpop.permute.xlu0 %4870  ;;  %v4533_v63 = vpop.permute.xlu1 %4532 }
 0xeb8   :  { %8822 = vmatpush3.xpose.msk.msra.mxu0 %vm229_vm3, %v4533_v63  ;;  %8823 = vmatprep.mubr.msk.f32.mxu0 %vm9254_vm1, %v9253_v6 }
 0xeb9   :  { %8831 = vmatprep.subr.mxu0 %v9253_v6 }
 0xebb   :  { %v5042_v41 = vpop.permute.xlu0 %5041  ;;  %8824 = vmatmul.mubr.msk.f32.vlgmr.msra.gmra.mrb[64].mxu0 %vm229_vm3, %v10233_v30  ;;  %v4698_v0 = vpop.permute.xlu1 %4697 }
 0xebc   :  { %8832 = vmatpush3.xpose.msk.msra.mxu0 %vm229_vm3, %v4700_v39  ;;  %8833 = vmatprep.mubr.msk.f32.mxu0 %vm9254_vm1, %v9253_v6 }
 0xebd   :  { %8841 = vmatprep.subr.mxu0 %v9253_v6 }
 0xebf   :  { %v3942_v42 = vpop.permute.xlu0 %3941  ;;  %8834 = vmatmul.mubr.msk.f32.vlgmr.msra.gmra.mrb[66].mxu0 %vm229_vm3, %v4698_v0  ;;  %v4869_v43 = vpop.permute.xlu1 %4868 }
 0xec0   :  { %8787 = vmatpush3.msra.mxu1 %v3942_v42  ;;  %8842 = vmatpush3.xpose.msk.msra.mxu0 %vm229_vm3, %v4871_v40 }
 0xec1   :  { %8843 = vmatprep.mubr.msk.f32.mxu0 %vm9254_vm1, %v9253_v6  ;;  %8851 = vmatprep.subr.mxu0 %v9253_v6 }
 0xec2   :  { %8796 = vmatprep.subr.mxu1 %v9253_v6 }
 0xec3   :  { %8844 = vmatmul.mubr.msk.f32.vlgmr.msra.gmra.mrb[68].mxu0 %vm229_vm3, %v4869_v43  ;;  %v5040_v45 = vpop.permute.xlu1 %5039 }
 0xec4   :  { %8852 = vmatpush3.xpose.msk.msra.mxu0 %vm229_vm3, %v5042_v41  ;;  %8853 = vmatprep.mubr.msk.f32.mxu0 %vm9254_vm1, %v9253_v6 }
 0xec5   :  { %8861 = vmatprep.subr.bf16.mxu0 %v9253_v6 }
 0xec7   :  { %8854 = vmatmul.mubr.msk.f32.vlgmr.msra.gmra.mrb[70].mxu0 %vm229_vm3, %v5040_v45  ;;  %v10310_v35 = vpop.permute.xlu1 %4108 }
 0xec8   :  { %8865 = vmatprep.mubr.msk.bf16.mxu0 %vm9254_vm1, %v9253_v6 }
 0xf7e   :  { %v3925_v46 = vpop.f32.mrb[56].mxu0 }
 0xf7f   :  { %v3929_v47 = vmul.f32 0.35355338, %v3925_v46  ;;  %v8785_v48 = vpop.f32.mrb[57].mxu0 }
 0xf81   :  { %v3930_v49 = vsel %vm229_vm3, %v3929_v47, -inf }
 0xf82   :  { %v4092_v52 = vpop.f32.mrb[58].mxu0  ;;  %3931 = vmax.xlane.f32.xlu0 %v3930_v49 }
 0xf83   :  { %v4096_v53 = vmul.f32 0.35355338, %v4092_v52  ;;  %v8795_v55 = vpop.f32.mrb[59].mxu0 }
 0xf85   :  { %v4097_v56 = vsel %vm229_vm3, %v4096_v53, -inf }
 0xf86   :  { %v4263_v54 = vpop.f32.mrb[60].mxu0  ;;  %4098 = vmax.xlane.f32.xlu1 %v4097_v56 }
 0xf87   :  { %v4267_v57 = vmul.f32 0.35355338, %v4263_v54  ;;  %v8805_v58 = vpop.f32.mrb[61].mxu0 }
 0xf89   :  { %v4268_v59 = vsel %vm229_vm3, %v4267_v57, -inf }
 0xf8a   :  { %v4434_v50 = vpop.f32.mrb[62].mxu0  ;;  %4269 = vmax.xlane.f32.xlu0 %v4268_v59 }
 0xf8b   :  { %v4438_v51 = vmul.f32 0.35355338, %v4434_v50  ;;  %v8815_v60 = vpop.f32.mrb[63].mxu0 }
 0xf8d   :  { %v4439_v62 = vsel %vm229_vm3, %v4438_v51, -inf }
 0xf8e   :  { %4440 = vmax.xlane.f32.xlu0 %v4439_v62  ;;  %v4604_v21 = vpop.f32.mrb[64].mxu0 }
 0xf8f   :  { %v4608_v44 = vmul.f32 0.35355338, %v4604_v21  ;;  %v8825_v61 = vpop.f32.mrb[65].mxu0 }
 0xf91   :  { %v4609_v15 = vsel %vm229_vm3, %v4608_v44, -inf }
 0xf92   :  { %4610 = vmax.xlane.f32.xlu1 %v4609_v15  ;;  %v4771_v2 = vpop.f32.mrb[66].mxu0 }
 0xf93   :  { %v4775_v4 = vmul.f32 0.35355338, %v4771_v2  ;;  %v8835_v5 = vpop.f32.mrb[67].mxu0 }
 0xf95   :  { %v4776_v7 = vsel %vm229_vm3, %v4775_v4, -inf }
 0xf96   :  { %4777 = vmax.xlane.f32.xlu0 %v4776_v7  ;;  %v4942_v10 = vpop.f32.mrb[68].mxu0 }
 0xf97   :  { %v4946_v11 = vmul.f32 0.35355338, %v4942_v10  ;;  %v8845_v14 = vpop.f32.mrb[69].mxu0 }
 0xf99   :  { %v4947_v17 = vsel %vm229_vm3, %v4946_v11, -inf }
 0xf9a   :  { %4948 = vmax.xlane.f32.xlu1 %v4947_v17  ;;  %v5113_v18 = vpop.f32.mrb[70].mxu0 }
 0xf9b   :  { %v5117_v26 = vmul.f32 0.35355338, %v5113_v18  ;;  %v8855_v28 = vpop.f32.mrb[71].mxu0 }
 0xf9d   :  { %v5118_v29 = vsel %vm229_vm3, %v5117_v26, -inf }
 0xf9e   :  { %5119 = vmax.xlane.f32.xlu0 %v5118_v29 }
 0xfab   :  { %4450 = vrot.lane.b32.xlu1 %v10219_v34, %s11071_s20 }
 0xfb4   :  { %4279 = vrot.lane.b32.xlu0 %v10219_v34, %s11072_s22 }
0x100f   :  { %v3932_v22 = vpop.xlane.xlu0 %3931 }
0x1010   :  { %v3933_v24 = vsub.f32 %v3929_v47, %v3932_v22 }
0x1012   :  { %v3934_v31 = vmul.f32 1.442695, %v3933_v24 }
0x1013   :  { %v4099_v32 = vpop.xlane.xlu1 %4098 }
0x1014   :  { %9213 = vpow2.f32 %v3934_v31  ;;  %v4100_v33 = vsub.f32 %v4096_v53, %v4099_v32 }
0x1016   :  { %v4101_v20 = vmul.f32 1.442695, %v4100_v33 }
0x1017   :  { %v4270_v36 = vpop.xlane.xlu0 %4269 }
0x1018   :  { %9215 = vpow2.f32 %v4101_v20  ;;  %v4271_v37 = vsub.f32 %v4267_v57, %v4270_v36 }
0x101a   :  { %v4272_v38 = vmul.f32 1.442695, %v4271_v37 }
0x101b   :  { %v4441_v39 = vpop.xlane.xlu0 %4440 }
0x101c   :  { %9217 = vpow2.f32 %v4272_v38  ;;  %v4442_v40 = vsub.f32 %v4438_v51, %v4441_v39 }
0x101e   :  { %v9214_v63 = vpop.eup %9213  ;;  %v4443_v41 = vmul.f32 1.442695, %v4442_v40 }
0x101f   :  { %v3936_v34 = vsel %vm229_vm3, %v9214_v63, 0.0  ;;  %v4611_v48 = vpop.xlane.xlu1 %4610 }
0x1020   :  { %9219 = vpow2.f32 %v4443_v41  ;;  %3937 = vadd.xlane.f32.xlu1 %v3936_v34  ;;  %v4612_v49 = vsub.f32 %v4608_v44, %v4611_v48 }
0x1022   :  { %v9216_v0 = vpop.eup %9215  ;;  %v4613_v56 = vmul.f32 1.442695, %v4612_v49 }
0x1023   :  { %v4103_v42 = vsel %vm229_vm3, %v9216_v0, 0.0  ;;  %v4778_v52 = vpop.xlane.xlu0 %4777 }
0x1024   :  { %4104 = vadd.xlane.f32.xlu0 %v4103_v42  ;;  %v4779_v55 = vsub.f32 %v4775_v4, %v4778_v52  ;;  %9221 = vpow2.f32 %v4613_v56 }
0x1026   :  { %v9218_v43 = vpop.eup %9217  ;;  %v4780_v58 = vmul.f32 1.442695, %v4779_v55 }
0x1027   :  { %v4274_v45 = vsel %vm229_vm3, %v9218_v43, 0.0  ;;  %v4949_v53 = vpop.xlane.xlu1 %4948 }
0x1028   :  { %4275 = vadd.xlane.f32.xlu1 %v4274_v45  ;;  %v4950_v54 = vsub.f32 %v4946_v11, %v4949_v53  ;;  %9223 = vpow2.f32 %v4780_v58 }
0x102a   :  { %v10315_v46 = vpop.eup %9219  ;;  %v4951_v59 = vmul.f32 1.442695, %v4950_v54 }
0x102b   :  { %v4445_v47 = vsel %vm229_vm3, %v10315_v46, 0.0  ;;  %v5120_v57 = vpop.xlane.xlu0 %5119  ;;  %v4451_v5 = vpop.permute.xlu1 %4450 }
0x102c   :  { %4446 = vadd.xlane.f32.xlu0 %v4445_v47  ;;  %v5121_v50 = vsub.f32 %v5117_v26, %v5120_v57  ;;  %9225 = vpow2.f32 %v4951_v59  ;;  %v9043_v57 = vld [vmem:[%s11030_s6 + $0x10] sm:$0xff]   ;;  %v9044_v59 = vld [vmem:[%s11030_s6 + $0x18] sm:$0xff]  }
0x102d   :  { %8862 = vmatpush3.bf16.msra.mxu0 %v9043_v57  ;;  %v7767_v57 = vld [vmem:[%s11032_s10 + $0x110] sm:$0xff] }
0x102e   :  { %v5122_v51 = vmul.f32 1.442695, %v5121_v50  ;;  %v9222_v60 = vpop.eup %9221  ;;  %8863 = vmatprep.subr.bf16.mxu0 %v9253_v6 }
0x102f   :  { %v4615_v21 = vsel %vm229_vm3, %v9222_v60, 0.0  ;;  %v4280_v7 = vpop.permute.xlu0 %4279 }
0x1030   :  { %9227 = vpow2.f32 %v5122_v51 }
0x1031   :  { %8864 = vmatpush3.bf16.msra.mxu0 %v9044_v59  ;;  %v7768_v59 = vld [vmem:[%s11032_s10 + $0x118] sm:$0xff] }
0x1032   :  { %v10323_v62 = vpop.eup %9223 }
0x1033   :  { %v4782_v61 = vsel %vm229_vm3, %v10323_v62, 0.0 }
0x1036   :  { %v10326_v44 = vpop.eup %9225 }
0x1037   :  { %v4953_v15 = vsel %vm229_vm3, %v10326_v44, 0.0 }
0x1039   :  { %4787 = vrot.lane.b32.xlu1 %v10233_v30, %s11070_s21 }
0x103a   :  { %v10332_v2 = vpop.eup %9227 }
0x103b   :  { %v5124_v4 = vsel %vm229_vm3, %v10332_v2, 0.0 }
0x1042   :  { %4620 = vrot.lane.b32.xlu0 %v10233_v30, %s11069_s19 }
0x105d   :  { %4616 = vadd.xlane.f32.xlu1 %v4615_v21 }
0x1061   :  { %4783 = vadd.xlane.f32.xlu0 %v4782_v61  ;;  %4954 = vadd.xlane.f32.xlu1 %v4953_v15 }
0x1065   :  { %5125 = vadd.xlane.f32.xlu1 %v5124_v4 }
0x1076   :  { %5129 = vrot.lane.b32.xlu1 %v10233_v30, %s11071_s20 }
0x1077   :  { %4958 = vrot.lane.b32.xlu0 %v10233_v30, %s11072_s22 }
0x10ad   :  { %v3938_v10 = vpop.xlane.xlu1 %3937 }
0x10ae   :  { %9229 = vrcp.f32 %v3938_v10 }
0x10b1   :  { %v4105_v11 = vpop.xlane.xlu0 %4104 }
0x10b2   :  { %9231 = vrcp.f32 %v4105_v11 }
0x10b5   :  { %v4276_v14 = vpop.xlane.xlu1 %4275 }
0x10b6   :  { %9233 = vrcp.f32 %v4276_v14  ;;  %v7757_v14 = vld [vmem:[%s11031_s7 + $0x1] ss:$0 sm:$0xff] }
0x10b8   :  { %v9230_v17 = vpop.eup %9229 }
0x10b9   :  { %v3940_v18 = vmul.f32 %v9230_v17, %v9214_v63  ;;  %v4447_v26 = vpop.xlane.xlu0 %4446  ;;  %v4788_v32 = vpop.permute.xlu1 %4787 }
0x10ba   :  { %9235 = vrcp.f32 %v4447_v26 }
0x10bb   :  { %8789 = vmatmul.mubr.msk.f32.vlgmr.msra.gmra.mrb[18].mxu1 %vm229_vm3, %v3940_v18 }
0x10bc   :  { %v9232_v28 = vpop.eup %9231  ;;  %8797 = vmatpush3.msra.mxu1 %v10310_v35  ;;  %8798 = vmatprep.mubr.msk.f32.mxu1 %vm9254_vm1, %v9253_v6 }
0x10bd   :  { %v4107_v30 = vmul.f32 %v9232_v28, %v9216_v0  ;;  %8806 = vmatprep.subr.mxu1 %v9253_v6  ;;  %v4621_v31 = vpop.permute.xlu0 %4620 }
0x10bf   :  { %8799 = vmatmul.mubr.msk.f32.vlgmr.msra.gmra.mrb[56].mxu1 %vm229_vm3, %v4107_v30 }
0x10c0   :  { %v9234_v29 = vpop.eup %9233  ;;  %8807 = vmatpush3.msra.mxu1 %v4280_v7  ;;  %8808 = vmatprep.mubr.msk.f32.mxu1 %vm9254_vm1, %v9253_v6 }
0x10c1   :  { %v4278_v22 = vmul.f32 %v9234_v29, %v9218_v43  ;;  %8816 = vmatprep.subr.mxu1 %v9253_v6 }
0x10c3   :  { %8809 = vmatmul.mubr.msk.f32.vlgmr.msra.gmra.mrb[58].mxu1 %vm229_vm3, %v4278_v22 }
0x10c4   :  { %v9236_v24 = vpop.eup %9235  ;;  %8817 = vmatpush3.msra.mxu1 %v4451_v5  ;;  %8818 = vmatprep.mubr.msk.f32.mxu1 %vm9254_vm1, %v9253_v6 }
0x10c5   :  { %v4449_v35 = vmul.f32 %v9236_v24, %v10315_v46  ;;  %8826 = vmatprep.subr.mxu1 %v9253_v6 }
0x10c7   :  { %8819 = vmatmul.mubr.msk.f32.vlgmr.msra.gmra.mrb[60].mxu1 %vm229_vm3, %v4449_v35 }
0x10c8   :  { %8827 = vmatpush3.msra.mxu1 %v4621_v31  ;;  %8828 = vmatprep.mubr.msk.f32.mxu1 %vm9254_vm1, %v9253_v6 }
0x10c9   :  { %8836 = vmatprep.subr.mxu1 %v9253_v6 }
0x10ea   :  { %v4617_v33 = vpop.xlane.xlu1 %4616 }
0x10eb   :  { %9237 = vrcp.f32 %v4617_v33 }
0x10ee   :  { %v4784_v20 = vpop.xlane.xlu0 %4783  ;;  %v4955_v36 = vpop.xlane.xlu1 %4954 }
0x10ef   :  { %9239 = vrcp.f32 %v4784_v20 }
0x10f0   :  { %9241 = vrcp.f32 %v4955_v36 }
0x10f2   :  { %v5126_v37 = vpop.xlane.xlu1 %5125  ;;  %v4959_v34 = vpop.permute.xlu0 %4958 }
0x10f3   :  { %9243 = vrcp.f32 %v5126_v37 }
0x10f5   :  { %v9238_v38 = vpop.eup %9237 }
0x10f6   :  { %v4619_v39 = vmul.f32 %v9238_v38, %v9222_v60  ;;  %v5130_v43 = vpop.permute.xlu1 %5129 }
0x10f8   :  { %8829 = vmatmul.mubr.msk.f32.vlgmr.msra.gmra.mrb[62].mxu1 %vm229_vm3, %v4619_v39 }
0x10f9   :  { %v9240_v40 = vpop.eup %9239  ;;  %8837 = vmatpush3.msra.mxu1 %v4788_v32  ;;  %8838 = vmatprep.mubr.msk.f32.mxu1 %vm9254_vm1, %v9253_v6 }
0x10fa   :  { %v4786_v63 = vmul.f32 %v9240_v40, %v10323_v62  ;;  %8846 = vmatprep.subr.mxu1 %v9253_v6  ;;  %v9242_v41 = vpop.eup %9241 }
0x10fb   :  { %v4957_v0 = vmul.f32 %v9242_v41, %v10326_v44  ;;  %v7773_v41 = vld [vmem:[%s11032_s10 + $0x140] sm:$0xff] }
0x10fc   :  { %8839 = vmatmul.mubr.msk.f32.vlgmr.msra.gmra.mrb[64].mxu1 %vm229_vm3, %v4786_v63 }
0x10fd   :  { %8847 = vmatpush3.msra.mxu1 %v4959_v34  ;;  %8848 = vmatprep.mubr.msk.f32.mxu1 %vm9254_vm1, %v9253_v6  ;;  %v9244_v42 = vpop.eup %9243  ;;  %v7766_v34 = vld [vmem:[%s11032_s10 + $0x108] sm:$0xff] }
0x10fe   :  { %8856 = vmatprep.subr.mxu1 %v9253_v6  ;;  %v5128_v45 = vmul.f32 %v9244_v42, %v10332_v2  ;;  %v7774_v42 = vld [vmem:[%s11032_s10 + $0x148] sm:$0xff] }
0x1100   :  { %8849 = vmatmul.mubr.msk.f32.vlgmr.msra.gmra.mrb[66].mxu1 %vm229_vm3, %v4957_v0 }
0x1101   :  { %8857 = vmatpush3.msra.mxu1 %v5130_v43  ;;  %8858 = vmatprep.mubr.msk.f32.mxu1 %vm9254_vm1, %v9253_v6 }
0x1104   :  { %8859 = vmatmul.mubr.msk.f32.vlgmr.msra.gmra.mrb[68].mxu1 %vm229_vm3, %v5128_v45  ;;  %v7801_v45 = vcombine.low %v7766_v34, %v7774_v42 }
0x1105   :  { %5644 = vmatprep.mubr.bf16.mxu1 %v9269_v27 }
0x118e   :  { %v4013_v46 = vpop.f32.mrb[18].mxu1 }
0x118f   :  { %4017 = vst.msk [vmem:[#allocation2] sm:$0xff] %vm229_vm3, %v4013_v46  ;;  %v8790_v47 = vpop.f32.mrb[19].mxu1  ;;  %v7802_v46 = vcombine.high %v7766_v34, %v7774_v42  ;;  %v7786_v34 = vld [vmem:[%s11032_s10 + $0x1a8] sm:$0xff] }
0x1190   :  { %v7781_v47 = vld [vmem:[%s11032_s10 + $0x180] sm:$0xff] }
0x1191   :  { %5655 = vmatprep.subr.bf16.mxu0 %v7802_v46 }
0x1192   :  { %v4180_v48 = vpop.f32.mrb[56].mxu1 }
0x1193   :  { %4185 = vrot.lane.b32.xlu0 %v4180_v48, %s11073_s4  ;;  %v8800_v49 = vpop.f32.mrb[57].mxu1  ;;  %v7789_v48 = vld [vmem:[%s11032_s10 + $0x1c0] sm:$0xff] }
0x1194   :  { %v7782_v49 = vld [vmem:[%s11032_s10 + $0x188] sm:$0xff] }
0x1196   :  { %v4351_v52 = vpop.f32.mrb[58].mxu1 }
0x1197   :  { %4356 = vrot.lane.b32.xlu0 %v4351_v52, %s11074_s23  ;;  %v8810_v53 = vpop.f32.mrb[59].mxu1  ;;  %v7816_v52 = vcombine.high %v7781_v47, %v7789_v48 }
0x1198   :  { %v7790_v53 = vld [vmem:[%s11032_s10 + $0x1c8] sm:$0xff] }
0x119a   :  { %v4522_v55 = vpop.f32.mrb[60].mxu1 }
0x119b   :  { %4527 = vrot.lane.b32.xlu0 %v4522_v55, %s11075_s25  ;;  %v8820_v56 = vpop.f32.mrb[61].mxu1  ;;  %v7815_v55 = vcombine.low %v7781_v47, %v7789_v48  ;;  %v7771_v47 = vld [vmem:[%s11032_s10 + $0x130] sm:$0xff] }
0x119c   :  { %v7817_v56 = vcombine.low %v7782_v49, %v7790_v53  ;;  %v7779_v48 = vld [vmem:[%s11032_s10 + $0x170] sm:$0xff] }
0x11cb   :  { %v4692_v54 = vpop.f32.mrb[62].mxu1 }
0x11cc   :  { %4696 = vst.msk [vmem:[#allocation2 + $0x8] sm:$0xff] %vm229_vm3, %v4692_v54  ;;  %v8830_v58 = vpop.f32.mrb[63].mxu1  ;;  %v7818_v54 = vcombine.high %v7782_v49, %v7790_v53  ;;  %v7772_v49 = vld [vmem:[%s11032_s10 + $0x138] sm:$0xff] }
0x11cd   :  { %v7775_v58 = vld [vmem:[%s11032_s10 + $0x150] sm:$0xff] }
0x11cf   :  { %v4859_v50 = vpop.f32.mrb[64].mxu1 }
0x11d0   :  { %4864 = vrot.lane.b32.xlu1 %v4859_v50, %s11073_s4  ;;  %v8840_v51 = vpop.f32.mrb[65].mxu1  ;;  %v7803_v50 = vcombine.low %v7767_v57, %v7775_v58 }
0x11d1   :  { %v7804_v51 = vcombine.high %v7767_v57, %v7775_v58  ;;  %v7787_v57 = vld [vmem:[%s11032_s10 + $0x1b0] sm:$0xff] }
0x11d2   :  { %v7795_v58 = vld [vmem:[%s11032_s10 + $0x1f0] sm:$0xff] }
0x11d3   :  { %v5030_v60 = vpop.f32.mrb[66].mxu1 }
0x11d4   :  { %5035 = vrot.lane.b32.xlu1 %v5030_v60, %s11074_s23  ;;  %v8850_v62 = vpop.f32.mrb[67].mxu1  ;;  %v7776_v60 = vld [vmem:[%s11032_s10 + $0x158] sm:$0xff] }
0x11d5   :  { %v7805_v62 = vcombine.low %v7768_v59, %v7776_v60 }
0x11d7   :  { %v5201_v21 = vpop.f32.mrb[68].mxu1 }
0x11d8   :  { %5206 = vrot.lane.b32.xlu1 %v5201_v21, %s11075_s25  ;;  %v8860_v44 = vpop.f32.mrb[69].mxu1  ;;  %v7806_v21 = vcombine.high %v7768_v59, %v7776_v60  ;;  %v7788_v59 = vld [vmem:[%s11032_s10 + $0x1b8] sm:$0xff] }
0x1205   :  { %v4186_v61 = vpop.permute.xlu0 %4185 }
0x1206   :  { %4188 = vst.msk [vmem:[#allocation2] sm:$0xff] %vm563_vm4, %v4186_v61 }
0x1209   :  { %v4357_v15 = vpop.permute.xlu0 %4356 }
0x120a   :  { %4359 = vst.msk [vmem:[#allocation2] sm:$0xff] %vm735_vm5, %v4357_v15 }
0x120d   :  { %v4528_v6 = vpop.permute.xlu0 %4527 }
0x120e   :  { %4530 = vst.msk [vmem:[#allocation2] sm:$0xff] %vm907_vm6, %v4528_v6 }
0x1215   :  { %v5210_v7 = vld [vmem:[#allocation2] sm:$0xff] }
0x1242   :  { %v4865_v2 = vpop.permute.xlu1 %4864 }
0x1243   :  { %4867 = vst.msk [vmem:[#allocation2 + $0x8] sm:$0xff] %vm563_vm4, %v4865_v2 }
0x1246   :  { %v5036_v4 = vpop.permute.xlu1 %5035 }
0x1247   :  { %5038 = vst.msk [vmem:[#allocation2 + $0x8] sm:$0xff] %vm735_vm5, %v5036_v4 }
0x124a   :  { %v5207_v5 = vpop.permute.xlu1 %5206 }
0x124b   :  { %5209 = vst.msk [vmem:[#allocation2 + $0x8] sm:$0xff] %vm907_vm6, %v5207_v5 }
0x1252   :  { %v5211_v10 = vld [vmem:[#allocation2 + $0x8] sm:$0xff] }
0x1253   :  { %v5212_v11 = vpack.c.bf16 %v5211_v10, %v5210_v7  ;;  %v7763_v10 = vld [vmem:[%s11034_s8 + $0x1] ss:$0 sm:$0xff] }
0x1255   :  { %8866 = vmatmul.mubr.msk.bf16.vlgmr.msra.gmra.mrb[72].mxu0 %vm181_vm2, %v5212_v11 }
0x1256   :  { %5687 = vmatprep.mubr.bf16.mxu0 %v9269_v27  ;;  %5656 = vmatpush1.bf16.msra.mxu0 %v7801_v45 }
0x1257   :  { %5657 = vmatprep.subr.bf16.mxu0 %v7818_v54 }
0x125a   :  { %5658 = vmatpush1.bf16.msra.mxu0 %v7817_v56  ;;  %v7812_v56 = vcombine.high %v7771_v47, %v7779_v48 }
0x125b   :  { %5741 = vmatprep.subr.bf16.mxu0 %v7806_v21 }
0x1328   :  { %v5275_v17 = vpop.f32.mrb[72].mxu0 }
0x1329   :  { %v5276_v18 = vadd.f32 %v7757_v14, %v5275_v17  ;;  %v8867_v26 = vpop.f32.mrb[73].mxu0 }
0x132a   :  { %v5278_v28 = vpop.f32.mrb[74].mxu0 }
0x132b   :  { %v5279_v30 = vadd.f32 %v7757_v14, %v5278_v28  ;;  %v8868_v29 = vpop.f32.mrb[75].mxu0  ;;  %v5282_v22 = vadd.f32 %v5276_v18, %v10207_v19  ;;  %v7764_v18 = vld [vmem:[%s11035_s9 + $0x1] ss:$0 sm:$0xff]  ;;  %v7783_v28 = vld [vmem:[%s11032_s10 + $0x190] sm:$0xff] }
0x132c   :  { %v7784_v29 = vld [vmem:[%s11032_s10 + $0x198] sm:$0xff] }
0x132d   :  { %v5283_v24 = vadd.f32 %v5279_v30, %v10209_v25  ;;  %v5288_v35 = vsel %vm181_vm2, %v5282_v22, 0.0  ;;  %v7765_v25 = vld [vmem:[%s11032_s10 + $0x100] sm:$0xff]  ;;  %v7791_v30 = vld [vmem:[%s11032_s10 + $0x1d0] sm:$0xff] }
0x132e   :  { %5289 = vadd.xlane.f32.xlu0 %v5288_v35  ;;  %v7800_v0 = vcombine.high %v7765_v25, %v7773_v41  ;;  %v7799_v43 = vcombine.low %v7765_v25, %v7773_v41  ;;  %v7785_v25 = vld [vmem:[%s11032_s10 + $0x1a0] sm:$0xff] }
0x132f   :  { %v5291_v31 = vsel %vm181_vm2, %v5283_v24, 0.0  ;;  %v7793_v41 = vld [vmem:[%s11032_s10 + $0x1e0] sm:$0xff] }
0x1330   :  { %5292 = vadd.xlane.f32.xlu1 %v5291_v31  ;;  %5612 = vmatprep.subr.bf16.mxu1 %v7800_v0  ;;  %v7794_v0 = vld [vmem:[%s11032_s10 + $0x1e8] sm:$0xff]  ;;  %v7824_v45 = vcombine.high %v7785_v25, %v7793_v41  ;;  %v7823_v53 = vcombine.low %v7785_v25, %v7793_v41  ;;  %v9073_v25 = vld [vmem:[%s11033_s12 + $0x478] sm:$0xff]  }
0x1331   :  { %5613 = vmatpush1.bf16.msra.mxu1 %v7799_v43  ;;  %v7826_v46 = vcombine.high %v7786_v34, %v7794_v0  ;;  %v9074_v41 = vld [vmem:[%s11033_s12 + $0x4f8] sm:$0xff]  }
0x1332   :  { %5614 = vmatprep.subr.bf16.mxu1 %v7816_v52  ;;  %v7780_v52 = vld [vmem:[%s11032_s10 + $0x178] sm:$0xff] }
0x1333   :  { %v7814_v54 = vcombine.high %v7772_v49, %v7780_v52  ;;  %v7813_v60 = vcombine.low %v7772_v49, %v7780_v52 }
0x1335   :  { %5615 = vmatpush1.bf16.msra.mxu1 %v7815_v55  ;;  %v7825_v55 = vcombine.low %v7786_v34, %v7794_v0  ;;  %v9075_v34 = vld [vmem:[%s11033_s12 + $0x438] sm:$0xff]  }
0x1336   :  { %5698 = vmatprep.subr.bf16.mxu1 %v7804_v51  ;;  %v7811_v51 = vcombine.low %v7771_v47, %v7779_v48  ;;  %v9076_v0 = vld [vmem:[%s11033_s12 + $0x4b8] sm:$0xff]  }
0x13bb   :  { %v5290_v32 = vpop.xlane.xlu0 %5289 }
0x13bc   :  { %v5294_v33 = vmul.f32 0.03125, %v5290_v32  ;;  %v7820_v32 = vcombine.high %v7783_v28, %v7791_v30 }
0x13bd   :  { %v5293_v20 = vpop.xlane.xlu1 %5292 }
0x13be   :  { %v5296_v36 = vsub.f32 %v5282_v22, %v5294_v33  ;;  %v5295_v37 = vmul.f32 0.03125, %v5293_v20  ;;  %v7792_v22 = vld [vmem:[%s11032_s10 + $0x1d8] sm:$0xff]  ;;  %v7769_v20 = vld [vmem:[%s11032_s10 + $0x120] sm:$0xff] }
0x13bf   :  { %v7822_v33 = vcombine.high %v7784_v29, %v7792_v22 }
0x13c0   :  { %v5297_v38 = vsub.f32 %v5283_v24, %v5295_v37  ;;  %v5298_v39 = vmul.f32 %v5296_v36, %v5296_v36  ;;  %v7770_v37 = vld [vmem:[%s11032_s10 + $0x128] sm:$0xff] }
0x13c2   :  { %v5300_v40 = vsel %vm181_vm2, %v5298_v39, 0.0  ;;  %v5299_v63 = vmul.f32 %v5297_v38, %v5297_v38  ;;  %v7819_v39 = vcombine.low %v7783_v28, %v7791_v30  ;;  %v9058_v28 = vld [vmem:[%s11033_s12 + $0x4d8] sm:$0xff]  }
0x13c3   :  { %5301 = vadd.xlane.f32.xlu0 %v5300_v40  ;;  %v7821_v40 = vcombine.low %v7784_v29, %v7792_v22  ;;  %v9059_v30 = vld [vmem:[%s11033_s12 + $0x418] sm:$0xff]   ;;  %v9061_v22 = vld [vmem:[%s11033_s12 + $0x460] sm:$0xff]  }
0x13c4   :  { %v5303_v19 = vsel %vm181_vm2, %v5299_v63, 0.0  ;;  %v9060_v29 = vld [vmem:[%s11033_s12 + $0x498] sm:$0xff]  }
0x13c7   :  { %5304 = vadd.xlane.f32.xlu0 %v5303_v19 }
0x1450   :  { %v5302_v44 = vpop.xlane.xlu0 %5301 }
0x1451   :  { %v5306_v61 = vmul.f32 0.03125, %v5302_v44  ;;  %v7827_v44 = vcombine.low %v7787_v57, %v7795_v58 }
0x1453   :  { %v5308_v15 = vadd.f32 1e-05, %v5306_v61 }
0x1454   :  { %v5305_v6 = vpop.xlane.xlu0 %5304 }
0x1455   :  { %9245 = vrsqrt.f32 %v5308_v15  ;;  %v5307_v2 = vmul.f32 0.03125, %v5305_v6  ;;  %v9045_v15 = vld [vmem:[%s11033_s12 + $0x440] sm:$0xff]  }
0x1456   :  { %v9046_v6 = vld [vmem:[%s11033_s12 + $0x4c0] sm:$0xff]  }
0x1457   :  { %v5309_v4 = vadd.f32 1e-05, %v5307_v2  ;;  %v9047_v2 = vld [vmem:[%s11033_s12 + $0x400] sm:$0xff]  }
0x1459   :  { %9247 = vrsqrt.f32 %v5309_v4  ;;  %v9048_v4 = vld [vmem:[%s11033_s12 + $0x480] sm:$0xff]  }
0x145f   :  { %v9246_v5 = vpop.eup %9245 }
0x1460   :  { %v5312_v7 = vmul.f32 %v9246_v5, %v5296_v36  ;;  %v7777_v36 = vld [vmem:[%s11032_s10 + $0x160] sm:$0xff]  ;;  %v9049_v5 = vld [vmem:[%s11033_s12 + $0x448] sm:$0xff]  }
0x1461   :  { %v7808_v63 = vcombine.high %v7769_v20, %v7777_v36  ;;  %v7807_v42 = vcombine.low %v7769_v20, %v7777_v36  ;;  %v9065_v20 = vld [vmem:[%s11033_s12 + $0x468] sm:$0xff]  }
0x1462   :  { %v5320_v14 = vmul.f32 %v7763_v10, %v5312_v7  ;;  %v9051_v7 = vld [vmem:[%s11033_s12 + $0x408] sm:$0xff]  }
0x1463   :  { %v9248_v11 = vpop.eup %9247  ;;  %v9066_v36 = vld [vmem:[%s11033_s12 + $0x4e8] sm:$0xff]  }
0x1464   :  { %v5313_v17 = vmul.f32 %v9248_v11, %v5297_v38  ;;  %v10460_v24 = vadd.f32 %v7764_v18, %v5320_v14  ;;  %v7778_v38 = vld [vmem:[%s11032_s10 + $0x168] sm:$0xff]  ;;  %v9053_v11 = vld [vmem:[%s11033_s12 + $0x450] sm:$0xff]  }
0x1465   :  { %v7810_v19 = vcombine.high %v7770_v37, %v7778_v38  ;;  %v7809_v43 = vcombine.low %v7770_v37, %v7778_v38  ;;  %v9054_v14 = vld [vmem:[%s11033_s12 + $0x4d0] sm:$0xff]   ;;  %v9067_v37 = vld [vmem:[%s11033_s12 + $0x428] sm:$0xff]  }
0x1466   :  { %v5321_v26 = vmul.f32 %v7763_v10, %v5313_v17  ;;  %v9052_v10 = vld [vmem:[%s11033_s12 + $0x488] sm:$0xff]   ;;  %v9055_v17 = vld [vmem:[%s11033_s12 + $0x410] sm:$0xff]  }
0x1467   :  { %v9068_v38 = vld [vmem:[%s11033_s12 + $0x4a8] sm:$0xff]  }
0x1468   :  { %v10462_v35 = vadd.f32 %v7764_v18, %v5321_v26  ;;  %v9056_v18 = vld [vmem:[%s11033_s12 + $0x490] sm:$0xff]   ;;  %v9057_v26 = vld [vmem:[%s11033_s12 + $0x458] sm:$0xff]  }
0x146a   :  { %v10466_v31 = vpack.c.bf16 %v10462_v35, %v10460_v24 }
0x146c   :  { %7831 = vmatmul.mubr.msk.bf16.vlgmr.msra.gmra.mrb[72].mxu1 %vm181_vm2, %v10466_v31  ;;  %7832 = vmatmul.mubr.msk.bf16.vlgmr.msra.gmra.mrb[76].mxu0 %vm181_vm2, %v10466_v31 }
0x146d   :  { %5699 = vmatpush1.bf16.msra.mxu1 %v7803_v50  ;;  %5742 = vmatpush1.bf16.msra.mxu0 %v7805_v62  ;;  %v7796_v50 = vld [vmem:[%s11032_s10 + $0x1f8] sm:$0xff]  ;;  %v7828_v62 = vcombine.high %v7787_v57, %v7795_v58 }
0x146e   :  { %5700 = vmatprep.subr.bf16.mxu1 %v7820_v32  ;;  %5743 = vmatprep.subr.bf16.mxu0 %v7822_v33  ;;  %v7830_v21 = vcombine.high %v7788_v59, %v7796_v50  ;;  %v7829_v61 = vcombine.low %v7788_v59, %v7796_v50  ;;  %v9063_v32 = vld [vmem:[%s11033_s12 + $0x420] sm:$0xff]  }
0x146f   :  { %5730 = vmatprep.mubr.bf16.mxu1 %v9269_v27  ;;  %5773 = vmatprep.mubr.bf16.mxu0 %v9269_v27  ;;  %v9064_v33 = vld [vmem:[%s11033_s12 + $0x4a0] sm:$0xff]  }
0x1471   :  { %5701 = vmatpush1.bf16.msra.mxu1 %v7819_v39  ;;  %5744 = vmatpush1.bf16.msra.mxu0 %v7821_v40  ;;  %v9069_v39 = vld [vmem:[%s11033_s12 + $0x470] sm:$0xff]  }
0x1472   :  { %5784 = vmatprep.subr.bf16.mxu1 %v7808_v63  ;;  %5827 = vmatprep.subr.bf16.mxu0 %v7810_v19  ;;  %v9070_v40 = vld [vmem:[%s11033_s12 + $0x4f0] sm:$0xff]  }
0x1473   :  { %v9071_v63 = vld [vmem:[%s11033_s12 + $0x430] sm:$0xff]  }
0x1474   :  { %7833 = vmatmul.mubr.msk.bf16.vlgmr.msra.gmra.mrb[76].mxu1 %vm181_vm2, %v10466_v31  ;;  %7834 = vmatmul.mubr.msk.bf16.vlgmr.msra.gmra.mrb[80].mxu0 %vm181_vm2, %v10466_v31  ;;  %v9072_v19 = vld [vmem:[%s11033_s12 + $0x4b0] sm:$0xff]  }
0x1475   :  { %5785 = vmatpush1.bf16.msra.mxu1 %v7807_v42  ;;  %5828 = vmatpush1.bf16.msra.mxu0 %v7809_v43  ;;  %v9077_v42 = vld [vmem:[%s11033_s12 + $0x540] sm:$0xff]  }
0x1476   :  { %5786 = vmatprep.subr.bf16.mxu1 %v7824_v45  ;;  %5829 = vmatprep.subr.bf16.mxu0 %v7826_v46  ;;  %v9078_v43 = vld [vmem:[%s11033_s12 + $0x5c0] sm:$0xff]   ;;  %v7797_v45 = vld [vmem:[%s11036_s11 + $0x10] sm:$0xff] }
0x1477   :  { %5816 = vmatprep.mubr.bf16.mxu1 %v9269_v27  ;;  %5859 = vmatprep.mubr.bf16.mxu0 %v9269_v27  ;;  %v5372_v46 = vrot.slane %v7797_v45, %v9818_v1  ;;  %v5380_v47 = vrot.slane %v7797_v45, %v9820_v23  ;;  %v5376_v48 = vrot.slane %v7797_v45, %v9825_v3 }
0x1478   :  { %v5384_v49 = vrot.slane %v7797_v45, %v9827_v16 }
0x1479   :  { %5787 = vmatpush1.bf16.msra.mxu1 %v7823_v53  ;;  %5830 = vmatpush1.bf16.msra.mxu0 %v7825_v55 }
0x147a   :  { %5870 = vmatprep.subr.bf16.mxu1 %v7812_v56  ;;  %5913 = vmatprep.subr.bf16.mxu0 %v7814_v54 }
0x147c   :  { %7835 = vmatmul.mubr.msk.bf16.vlgmr.msra.gmra.mrb[80].mxu1 %vm181_vm2, %v10466_v31  ;;  %7836 = vmatmul.mubr.msk.bf16.vlgmr.msra.gmra.mrb[84].mxu0 %vm181_vm2, %v10466_v31 }
0x147d   :  { %5871 = vmatpush1.bf16.msra.mxu1 %v7811_v51  ;;  %5914 = vmatpush1.bf16.msra.mxu0 %v7813_v60 }
0x147e   :  { %5872 = vmatprep.subr.bf16.mxu1 %v7828_v62  ;;  %5915 = vmatprep.subr.bf16.mxu0 %v7830_v21 }
0x147f   :  { %5902 = vmatprep.mubr.bf16.mxu1 %v9269_v27  ;;  %5945 = vmatprep.mubr.bf16.mxu0 %v9269_v27  ;;  %v9050_v27 = vld [vmem:[%s11033_s12 + $0x4c8] sm:$0xff]  }
0x1481   :  { %5873 = vmatpush1.bf16.msra.mxu1 %v7827_v44  ;;  %5916 = vmatpush1.bf16.msra.mxu0 %v7829_v61  ;;  %v5388_v61 = vrot.slane %v7797_v45, %v9833_v8 }
0x1482   :  { %8488 = vmatprep.subr.bf16.mxu1 %v9045_v15  ;;  %8510 = vmatprep.subr.bf16.mxu0 %v9046_v6  ;;  %v5396_v15 = vrot.slane %v7797_v45, %v9835_v9 }
0x1484   :  { %7837 = vmatmul.mubr.msk.bf16.vlgmr.msra.gmra.mrb[84].mxu1 %vm181_vm2, %v10466_v31  ;;  %7838 = vmatmul.mubr.msk.bf16.vlgmr.msra.gmra.mrb[88].mxu0 %vm181_vm2, %v10466_v31  ;;  %v9062_v31 = vld [vmem:[%s11033_s12 + $0x4e0] sm:$0xff]  }
0x1485   :  { %8489 = vmatpush3.bf16.msra.mxu1 %v9047_v2  ;;  %8511 = vmatpush3.bf16.msra.mxu0 %v9048_v4  ;;  %v5392_v4 = vrot.slane %v7797_v45, %v9837_v12 }
0x1486   :  { %8490 = vmatprep.subr.bf16.mxu1 %v9049_v5  ;;  %8512 = vmatprep.subr.bf16.mxu0 %v9050_v27  ;;  %v5400_v5 = vrot.slane %v7797_v45, %v9839_v13 }
0x1489   :  { %8491 = vmatpush3.bf16.msra.mxu1 %v9051_v7  ;;  %8513 = vmatpush3.bf16.msra.mxu0 %v9052_v10 }
0x148a   :  { %8492 = vmatprep.subr.bf16.mxu1 %v9053_v11  ;;  %8514 = vmatprep.subr.bf16.mxu0 %v9054_v14 }
0x148d   :  { %8493 = vmatpush3.bf16.msra.mxu1 %v9055_v17  ;;  %8515 = vmatpush3.bf16.msra.mxu0 %v9056_v18 }
0x148e   :  { %8494 = vmatprep.subr.bf16.mxu1 %v9057_v26  ;;  %8516 = vmatprep.subr.bf16.mxu0 %v9058_v28  ;;  %v10654_v28 = vld [vmem:[%s11036_s11 + $0x18] sm:$0xff] }
0x1491   :  { %8495 = vmatpush3.bf16.msra.mxu1 %v9059_v30  ;;  %8517 = vmatpush3.bf16.msra.mxu0 %v9060_v29 }
0x1492   :  { %8496 = vmatprep.subr.bf16.mxu1 %v9061_v22  ;;  %8518 = vmatprep.subr.bf16.mxu0 %v9062_v31 }
0x1495   :  { %8497 = vmatpush3.bf16.msra.mxu1 %v9063_v32  ;;  %8519 = vmatpush3.bf16.msra.mxu0 %v9064_v33 }
0x1496   :  { %8498 = vmatprep.subr.bf16.mxu1 %v9065_v20  ;;  %8520 = vmatprep.subr.bf16.mxu0 %v9066_v36  ;;  %v9079_v20 = vld [vmem:[%s11033_s12 + $0x500] sm:$0xff]  }
0x1497   :  { %v9080_v36 = vld [vmem:[%s11033_s12 + $0x580] sm:$0xff]  }
0x1499   :  { %8499 = vmatpush3.bf16.msra.mxu1 %v9067_v37  ;;  %8521 = vmatpush3.bf16.msra.mxu0 %v9068_v38 }
0x149a   :  { %8500 = vmatprep.subr.bf16.mxu1 %v9069_v39  ;;  %8522 = vmatprep.subr.bf16.mxu0 %v9070_v40 }
0x149d   :  { %8501 = vmatpush3.bf16.msra.mxu1 %v9071_v63  ;;  %8523 = vmatpush3.bf16.msra.mxu0 %v9072_v19  ;;  %v9081_v63 = vld [vmem:[%s11033_s12 + $0x548] sm:$0xff]  }
0x149e   :  { %8502 = vmatprep.subr.bf16.mxu1 %v9073_v25  ;;  %8524 = vmatprep.subr.bf16.mxu0 %v9074_v41  ;;  %v9082_v19 = vld [vmem:[%s11033_s12 + $0x5c8] sm:$0xff]   ;;  %v5404_v25 = vrot.slane %v10654_v28, %v9818_v1 }
0x14a1   :  { %8503 = vmatpush3.bf16.msra.mxu1 %v9075_v34  ;;  %8525 = vmatpush3.bf16.msra.mxu0 %v9076_v0 }
0x14a2   :  { %8532 = vmatprep.subr.bf16.mxu1 %v9077_v42  ;;  %8554 = vmatprep.subr.bf16.mxu0 %v9078_v43  ;;  %v5412_v43 = vrot.slane %v10654_v28, %v9820_v23  ;;  %v9084_v23 = vld [vmem:[%s11033_s12 + $0x588] sm:$0xff]  }
0x153f   :  { %v5646_v52 = vpop.f32.mrb[72].mxu1  ;;  %v5689_v53 = vpop.f32.mrb[76].mxu0 }
0x1540   :  { %v5647_v55 = vadd.f32 %v5646_v52, %v5372_v46  ;;  %v5690_v56 = vadd.f32 %v5689_v53, %v5380_v47  ;;  %v5648_v54 = vpop.f32.mrb[73].mxu1  ;;  %v5691_v57 = vpop.f32.mrb[77].mxu0  ;;  %v9083_v53 = vld [vmem:[%s11033_s12 + $0x508] sm:$0xff]  }
0x1541   :  { %v5649_v58 = vadd.f32 %v5648_v54, %v5376_v48  ;;  %v5692_v59 = vadd.f32 %v5691_v57, %v5384_v49  ;;  %v5650_v50 = vpop.f32.mrb[74].mxu1  ;;  %v5693_v51 = vpop.f32.mrb[78].mxu0 }
0x1542   :  { %v5651_v60 = vadd.f32 %v5650_v50, %v5372_v46  ;;  %v5694_v62 = vadd.f32 %v5693_v51, %v5380_v47  ;;  %v5652_v21 = vpop.f32.mrb[75].mxu1  ;;  %v5695_v44 = vpop.f32.mrb[79].mxu0  ;;  %v5956_v27 = vmax.f32 %v5647_v55, 0.0  ;;  %v5958_v7 = vmax.f32 %v5690_v56, 0.0 }
0x1543   :  { %v5653_v6 = vadd.f32 %v5652_v21, %v5376_v48  ;;  %v5696_v2 = vadd.f32 %v5695_v44, %v5384_v49  ;;  %v5957_v14 = vmax.f32 %v5649_v58, 0.0  ;;  %v5959_v17 = vmax.f32 %v5692_v59, 0.0  ;;  %v9086_v59 = vld [vmem:[%s11033_s12 + $0x5d0] sm:$0xff]  }
0x1544   :  { %v5972_v10 = vmax.f32 %v5651_v60, 0.0  ;;  %v5974_v11 = vmax.f32 %v5694_v62, 0.0  ;;  %v5408_v49 = vrot.slane %v10654_v28, %v9825_v3  ;;  %v5416_v55 = vrot.slane %v10654_v28, %v9827_v16  ;;  %v9085_v3 = vld [vmem:[%s11033_s12 + $0x550] sm:$0xff]  }
0x1545   :  { %v5973_v18 = vmax.f32 %v5653_v6, 0.0  ;;  %v5975_v26 = vmax.f32 %v5696_v2, 0.0  ;;  %v9087_v2 = vld [vmem:[%s11033_s12 + $0x510] sm:$0xff]  }
0x1546   :  { %v5988_v30 = vpack.c.bf16 %v5972_v10, %v5956_v27  ;;  %v5990_v29 = vpack.c.bf16 %v5974_v11, %v5958_v7  ;;  %v9089_v11 = vld [vmem:[%s11033_s12 + $0x558] sm:$0xff]  }
0x1547   :  { %v5989_v22 = vpack.c.bf16 %v5973_v18, %v5957_v14  ;;  %v5991_v31 = vpack.c.bf16 %v5975_v26, %v5959_v17  ;;  %v5732_v32 = vpop.f32.mrb[76].mxu1  ;;  %v5775_v33 = vpop.f32.mrb[80].mxu0  ;;  %v9090_v14 = vld [vmem:[%s11033_s12 + $0x5d8] sm:$0xff]  }
0x1548   :  { %v5733_v37 = vadd.f32 %v5732_v32, %v5388_v61  ;;  %v5776_v38 = vadd.f32 %v5775_v33, %v5396_v15  ;;  %v5734_v39 = vpop.f32.mrb[77].mxu1  ;;  %v5777_v40 = vpop.f32.mrb[81].mxu0 }
0x1549   :  { %v5735_v41 = vadd.f32 %v5734_v39, %v5392_v4  ;;  %v5778_v34 = vadd.f32 %v5777_v40, %v5400_v5  ;;  %v5736_v0 = vpop.f32.mrb[78].mxu1  ;;  %v5779_v42 = vpop.f32.mrb[82].mxu0  ;;  %7069 = vmatprep.mubr.bf16.mxu1 %v5989_v22  ;;  %7110 = vmatprep.mubr.bf16.mxu0 %v5991_v31  ;;  %v9091_v39 = vld [vmem:[%s11033_s12 + $0x518] sm:$0xff]   ;;  %v5432_v40 = vrot.slane %v10654_v28, %v9839_v13 }
0x154a   :  { %v5737_v45 = vadd.f32 %v5736_v0, %v5388_v61  ;;  %v5780_v46 = vadd.f32 %v5779_v42, %v5396_v15  ;;  %v5738_v47 = vpop.f32.mrb[79].mxu1  ;;  %v5781_v48 = vpop.f32.mrb[83].mxu0  ;;  %7070 = vmatmul.mubr.bf16.vlgmr.msra.gmra.mrb[88].mxu1 %v5988_v30  ;;  %7111 = vmatmul.mubr.bf16.vlgmr.msra.gmra.mrb[92].mxu0 %v5990_v29  ;;  %v5960_v56 = vmax.f32 %v5733_v37, 0.0  ;;  %v5962_v54 = vmax.f32 %v5776_v38, 0.0 }
0x154b   :  { %v5739_v52 = vadd.f32 %v5738_v47, %v5392_v4  ;;  %v5782_v1 = vadd.f32 %v5781_v48, %v5400_v5  ;;  %8533 = vmatpush3.bf16.msra.mxu1 %v9079_v20  ;;  %8555 = vmatpush3.bf16.msra.mxu0 %v9080_v36  ;;  %v5961_v50 = vmax.f32 %v5735_v41, 0.0  ;;  %v5963_v51 = vmax.f32 %v5778_v34, 0.0  ;;  %v9088_v4 = vld [vmem:[%s11033_s12 + $0x590] sm:$0xff]   ;;  %v9094_v41 = vld [vmem:[%s11033_s12 + $0x5e0] sm:$0xff]  }
0x154c   :  { %v5976_v57 = vmax.f32 %v5737_v45, 0.0  ;;  %v5978_v58 = vmax.f32 %v5780_v46, 0.0  ;;  %8534 = vmatprep.subr.bf16.mxu1 %v9081_v63  ;;  %8556 = vmatprep.subr.bf16.mxu0 %v9082_v19  ;;  %v5420_v29 = vrot.slane %v10654_v28, %v9833_v8  ;;  %v5428_v20 = vrot.slane %v10654_v28, %v9835_v9  ;;  %v9092_v8 = vld [vmem:[%s11033_s12 + $0x598] sm:$0xff]  }
0x154d   :  { %v5977_v60 = vmax.f32 %v5739_v52, 0.0  ;;  %v5979_v62 = vmax.f32 %v5782_v1, 0.0  ;;  %v5424_v36 = vrot.slane %v10654_v28, %v9837_v12  ;;  %v9093_v12 = vld [vmem:[%s11033_s12 + $0x560] sm:$0xff]  }
0x154e   :  { %v10688_v21 = vpack.c.bf16 %v5976_v57, %v5960_v56  ;;  %v10690_v16 = vpack.c.bf16 %v5978_v58, %v5962_v54  ;;  %v9096_v52 = vld [vmem:[%s11033_s12 + $0x5a0] sm:$0xff]   ;;  %v9097_v56 = vld [vmem:[%s11033_s12 + $0x568] sm:$0xff]  }
0x154f   :  { %v5993_v44 = vpack.c.bf16 %v5977_v60, %v5961_v50  ;;  %v5995_v61 = vpack.c.bf16 %v5979_v62, %v5963_v51  ;;  %8535 = vmatpush3.bf16.msra.mxu1 %v9083_v53  ;;  %8557 = vmatpush3.bf16.msra.mxu0 %v9084_v23  ;;  %v5818_v15 = vpop.f32.mrb[80].mxu1  ;;  %v5861_v6 = vpop.f32.mrb[84].mxu0  ;;  %v9098_v54 = vld [vmem:[%s11033_s12 + $0x5e8] sm:$0xff]  }
0x1550   :  { %v5819_v5 = vadd.f32 %v5818_v15, %v5404_v25  ;;  %v5862_v27 = vadd.f32 %v5861_v6, %v5412_v43  ;;  %v5820_v7 = vpop.f32.mrb[81].mxu1  ;;  %v5863_v10 = vpop.f32.mrb[85].mxu0  ;;  %8536 = vmatprep.subr.bf16.mxu1 %v9085_v3  ;;  %8558 = vmatprep.subr.bf16.mxu0 %v9086_v59  ;;  %v9099_v15 = vld [vmem:[%s11033_s12 + $0x528] sm:$0xff]  }
0x1551   :  { %v5821_v17 = vadd.f32 %v5820_v7, %v5408_v49  ;;  %v5864_v18 = vadd.f32 %v5863_v10, %v5416_v55  ;;  %v5822_v26 = vpop.f32.mrb[82].mxu1  ;;  %v5865_v30 = vpop.f32.mrb[86].mxu0  ;;  %7151 = vmatprep.mubr.bf16.mxu1 %v5993_v44  ;;  %7192 = vmatprep.mubr.bf16.mxu0 %v5995_v61  ;;  %v9100_v6 = vld [vmem:[%s11033_s12 + $0x5a8] sm:$0xff]   ;;  %v9101_v7 = vld [vmem:[%s11033_s12 + $0x570] sm:$0xff]  }
0x1552   :  { %v5823_v22 = vadd.f32 %v5822_v26, %v5404_v25  ;;  %v5866_v31 = vadd.f32 %v5865_v30, %v5412_v43  ;;  %v5824_v32 = vpop.f32.mrb[83].mxu1  ;;  %v5867_v33 = vpop.f32.mrb[87].mxu0  ;;  %v5964_v63 = vmax.f32 %v5819_v5, 0.0  ;;  %v5966_v9 = vmax.f32 %v5862_v27, 0.0  ;;  %v9102_v10 = vld [vmem:[%s11033_s12 + $0x5f0] sm:$0xff]  }
0x1553   :  { %v5825_v37 = vadd.f32 %v5824_v32, %v5408_v49  ;;  %v5868_v38 = vadd.f32 %v5867_v33, %v5416_v55  ;;  %8537 = vmatpush3.bf16.msra.mxu1 %v9087_v2  ;;  %8559 = vmatpush3.bf16.msra.mxu0 %v9088_v4  ;;  %v5965_v34 = vmax.f32 %v5821_v17, 0.0  ;;  %v5967_v0 = vmax.f32 %v5864_v18, 0.0  ;;  %v9095_v49 = vld [vmem:[%s11033_s12 + $0x520] sm:$0xff]   ;;  %v9104_v32 = vld [vmem:[%s11033_s12 + $0x5b0] sm:$0xff]   ;;  %v9105_v33 = vld [vmem:[%s11033_s12 + $0x578] sm:$0xff]  }
0x1554   :  { %v5980_v19 = vmax.f32 %v5823_v22, 0.0  ;;  %v5982_v25 = vmax.f32 %v5866_v31, 0.0  ;;  %8538 = vmatprep.subr.bf16.mxu1 %v9089_v11  ;;  %8560 = vmatprep.subr.bf16.mxu0 %v9090_v14  ;;  %v9103_v31 = vld [vmem:[%s11033_s12 + $0x530] sm:$0xff]  }
0x1555   :  { %v5981_v42 = vmax.f32 %v5825_v37, 0.0  ;;  %v5983_v43 = vmax.f32 %v5868_v38, 0.0  ;;  %v9108_v37 = vld [vmem:[%s11033_s12 + $0x5b8] sm:$0xff]   ;;  %v9109_v38 = vld [vmem:[%s11033_s12 + $0x640] sm:$0xff]  }
0x1556   :  { %v10724_v45 = vpack.c.bf16 %v5980_v19, %v5964_v63  ;;  %v10726_v13 = vpack.c.bf16 %v5982_v25, %v5966_v9  ;;  %v9113_v63 = vld [vmem:[%s11033_s12 + $0x648] sm:$0xff]  }
0x1557   :  { %v10728_v28 = vpack.c.bf16 %v5981_v42, %v5965_v34  ;;  %v10730_v46 = vpack.c.bf16 %v5983_v43, %v5967_v0  ;;  %8539 = vmatpush3.bf16.msra.mxu1 %v9091_v39  ;;  %8561 = vmatpush3.bf16.msra.mxu0 %v9092_v8  ;;  %v5904_v47 = vpop.f32.mrb[84].mxu1  ;;  %v5947_v48 = vpop.f32.mrb[88].mxu0  ;;  %v9110_v39 = vld [vmem:[%s11033_s12 + $0x6c0] sm:$0xff]   ;;  %v9114_v9 = vld [vmem:[%s11033_s12 + $0x6c8] sm:$0xff]   ;;  %v9121_v34 = vld [vmem:[%s11033_s12 + $0x658] sm:$0xff]  }
0x1558   :  { %v5905_v1 = vadd.f32 %v5904_v47, %v5420_v29  ;;  %v5948_v53 = vadd.f32 %v5947_v48, %v5428_v20  ;;  %v5906_v23 = vpop.f32.mrb[85].mxu1  ;;  %v5949_v55 = vpop.f32.mrb[89].mxu0  ;;  %8540 = vmatprep.subr.bf16.mxu1 %v9093_v12  ;;  %8562 = vmatprep.subr.bf16.mxu0 %v9094_v41  ;;  %v9111_v8 = vld [vmem:[%s11033_s12 + $0x600] sm:$0xff]   ;;  %v9115_v19 = vld [vmem:[%s11033_s12 + $0x608] sm:$0xff]   ;;  %v9119_v12 = vld [vmem:[%s11033_s12 + $0x610] sm:$0xff]  }
0x1559   :  { %v5907_v57 = vadd.f32 %v5906_v23, %v5424_v36  ;;  %v5950_v58 = vadd.f32 %v5949_v55, %v5432_v40  ;;  %v5908_v3 = vpop.f32.mrb[86].mxu1  ;;  %v5951_v59 = vpop.f32.mrb[90].mxu0  ;;  %v9116_v25 = vld [vmem:[%s11033_s12 + $0x688] sm:$0xff]   ;;  %v9120_v41 = vld [vmem:[%s11033_s12 + $0x690] sm:$0xff]   ;;  %v9122_v0 = vld [vmem:[%s11033_s12 + $0x6d8] sm:$0xff]  }
0x155a   :  { %v5909_v50 = vadd.f32 %v5908_v3, %v5420_v29  ;;  %v5952_v51 = vadd.f32 %v5951_v59, %v5428_v20  ;;  %v5910_v60 = vpop.f32.mrb[87].mxu1  ;;  %v5953_v62 = vpop.f32.mrb[91].mxu0  ;;  %v5968_v2 = vmax.f32 %v5905_v1, 0.0  ;;  %v5970_v4 = vmax.f32 %v5948_v53, 0.0  ;;  %v9106_v20 = vld [vmem:[%s11033_s12 + $0x5f8] sm:$0xff]   ;;  %v9127_v47 = vld [vmem:[%s11033_s12 + $0x620] sm:$0xff]  }
0x155b   :  { %v5911_v44 = vadd.f32 %v5910_v60, %v5424_v36  ;;  %v5954_v61 = vadd.f32 %v5953_v62, %v5432_v40  ;;  %8541 = vmatpush3.bf16.msra.mxu1 %v9095_v49  ;;  %8563 = vmatpush3.bf16.msra.mxu0 %v9096_v52  ;;  %v5969_v11 = vmax.f32 %v5907_v57, 0.0  ;;  %v5971_v14 = vmax.f32 %v5950_v58, 0.0  ;;  %v9107_v36 = vld [vmem:[%s11033_s12 + $0x538] sm:$0xff]   ;;  %v9112_v40 = vld [vmem:[%s11033_s12 + $0x680] sm:$0xff]   ;;  %v9129_v49 = vld [vmem:[%s11033_s12 + $0x668] sm:$0xff]  }
0x155c   :  { %v5984_v5 = vmax.f32 %v5909_v50, 0.0  ;;  %v5986_v27 = vmax.f32 %v5952_v51, 0.0  ;;  %8542 = vmatprep.subr.bf16.mxu1 %v9097_v56  ;;  %8564 = vmatprep.subr.bf16.mxu0 %v9098_v54  ;;  %v9123_v42 = vld [vmem:[%s11033_s12 + $0x618] sm:$0xff]   ;;  %v9128_v48 = vld [vmem:[%s11033_s12 + $0x6a0] sm:$0xff]   ;;  %v9130_v52 = vld [vmem:[%s11033_s12 + $0x6e8] sm:$0xff]  }
0x155d   :  { %v5985_v17 = vmax.f32 %v5911_v44, 0.0  ;;  %v5987_v18 = vmax.f32 %v5954_v61, 0.0  ;;  %v9124_v43 = vld [vmem:[%s11033_s12 + $0x698] sm:$0xff]   ;;  %v9131_v1 = vld [vmem:[%s11033_s12 + $0x628] sm:$0xff]   ;;  %v9133_v23 = vld [vmem:[%s11033_s12 + $0x670] sm:$0xff]  }
0x155e   :  { %v10756_v26 = vpack.c.bf16 %v5984_v5, %v5968_v2  ;;  %v10758_v30 = vpack.c.bf16 %v5986_v27, %v5970_v4  ;;  %v9132_v53 = vld [vmem:[%s11033_s12 + $0x6a8] sm:$0xff]   ;;  %v9134_v55 = vld [vmem:[%s11033_s12 + $0x6f0] sm:$0xff]   ;;  %v9137_v57 = vld [vmem:[%s11033_s12 + $0x678] sm:$0xff]  }
0x155f   :  { %v10760_v29 = vpack.c.bf16 %v5985_v17, %v5969_v11  ;;  %v10762_v22 = vpack.c.bf16 %v5987_v18, %v5971_v14  ;;  %8543 = vmatpush3.bf16.msra.mxu1 %v9099_v15  ;;  %8565 = vmatpush3.bf16.msra.mxu0 %v9100_v6  ;;  %v9135_v56 = vld [vmem:[%s11033_s12 + $0x630] sm:$0xff]   ;;  %v9138_v58 = vld [vmem:[%s11033_s12 + $0x6f8] sm:$0xff]   ;;  %v9141_v50 = vld [vmem:[%s11033_s12 + $0x740] sm:$0xff]  }
0x1560   :  { %8544 = vmatprep.subr.bf16.mxu1 %v9101_v7  ;;  %8566 = vmatprep.subr.bf16.mxu0 %v9102_v10  ;;  %v9136_v54 = vld [vmem:[%s11033_s12 + $0x6b0] sm:$0xff]   ;;  %v9139_v3 = vld [vmem:[%s11033_s12 + $0x638] sm:$0xff]   ;;  %v9142_v51 = vld [vmem:[%s11033_s12 + $0x7c0] sm:$0xff]  }
0x1561   :  { %v9140_v59 = vld [vmem:[%s11033_s12 + $0x6b8] sm:$0xff]   ;;  %v9143_v60 = vld [vmem:[%s11033_s12 + $0x700] sm:$0xff]   ;;  %v9145_v44 = vld [vmem:[%s11033_s12 + $0x748] sm:$0xff]  }
0x1562   :  { %v9144_v62 = vld [vmem:[%s11033_s12 + $0x780] sm:$0xff]   ;;  %v9146_v61 = vld [vmem:[%s11033_s12 + $0x7c8] sm:$0xff]   ;;  %v9151_v2 = vld [vmem:[%s11033_s12 + $0x710] sm:$0xff]  }
0x1563   :  { %8545 = vmatpush3.bf16.msra.mxu1 %v9103_v31  ;;  %8567 = vmatpush3.bf16.msra.mxu0 %v9104_v32  ;;  %v9147_v15 = vld [vmem:[%s11033_s12 + $0x708] sm:$0xff]   ;;  %v9152_v4 = vld [vmem:[%s11033_s12 + $0x790] sm:$0xff]   ;;  %v9153_v5 = vld [vmem:[%s11033_s12 + $0x758] sm:$0xff]  }
0x1564   :  { %8546 = vmatprep.subr.bf16.mxu1 %v9105_v33  ;;  %8568 = vmatprep.subr.bf16.mxu0 %v9106_v20  ;;  %v9148_v6 = vld [vmem:[%s11033_s12 + $0x788] sm:$0xff]   ;;  %v9154_v27 = vld [vmem:[%s11033_s12 + $0x7d8] sm:$0xff]   ;;  %v9157_v11 = vld [vmem:[%s11033_s12 + $0x760] sm:$0xff]  }
0x1565   :  { %v9155_v7 = vld [vmem:[%s11033_s12 + $0x718] sm:$0xff]   ;;  %v9158_v14 = vld [vmem:[%s11033_s12 + $0x7e0] sm:$0xff]   ;;  %v9163_v31 = vld [vmem:[%s11033_s12 + $0x728] sm:$0xff]  }
0x1566   :  { %v9156_v10 = vld [vmem:[%s11033_s12 + $0x798] sm:$0xff]   ;;  %v9159_v17 = vld [vmem:[%s11033_s12 + $0x720] sm:$0xff]   ;;  %v9164_v32 = vld [vmem:[%s11033_s12 + $0x7a8] sm:$0xff]  }
0x1567   :  { %8547 = vmatpush3.bf16.msra.mxu1 %v9107_v36  ;;  %8569 = vmatpush3.bf16.msra.mxu0 %v9108_v37  ;;  %v9160_v18 = vld [vmem:[%s11033_s12 + $0x7a0] sm:$0xff]   ;;  %v9165_v33 = vld [vmem:[%s11033_s12 + $0x770] sm:$0xff]  }
0x1568   :  { %8576 = vmatprep.subr.bf16.mxu1 %v9109_v38  ;;  %8598 = vmatprep.subr.bf16.mxu0 %v9110_v39  ;;  %v9166_v20 = vld [vmem:[%s11033_s12 + $0x7f0] sm:$0xff]   ;;  %v9169_v38 = vld [vmem:[%s11033_s12 + $0x778] sm:$0xff]  }
0x1569   :  { %v9167_v36 = vld [vmem:[%s11033_s12 + $0x730] sm:$0xff]   ;;  %v9170_v39 = vld [vmem:[%s11033_s12 + $0x7f8] sm:$0xff]  }
0x156a   :  { %7152 = vmatmul.mubr.bf16.vlgmr.msra.gmra.mrb[92].mxu1 %v10688_v21  ;;  %7193 = vmatmul.mubr.bf16.vlgmr.msra.gmra.mrb[96].mxu0 %v10690_v16  ;;  %v9117_v21 = vld [vmem:[%s11033_s12 + $0x650] sm:$0xff]  }
0x156b   :  { %8577 = vmatpush3.bf16.msra.mxu1 %v9111_v8  ;;  %7233 = vmatprep.mubr.bf16.mxu1 %v10728_v28  ;;  %v9118_v16 = vld [vmem:[%s11033_s12 + $0x6d0] sm:$0xff]   ;;  %v9125_v28 = vld [vmem:[%s11033_s12 + $0x660] sm:$0xff]   ;;  %v9171_v8 = vld [vmem:[%s11033_s12 + $0x738] sm:$0xff]  }
0x156c   :  { %8599 = vmatpush3.bf16.msra.mxu0 %v9112_v40  ;;  %7274 = vmatprep.mubr.bf16.mxu0 %v10730_v46  ;;  %v9126_v46 = vld [vmem:[%s11033_s12 + $0x6e0] sm:$0xff]   ;;  %v9168_v37 = vld [vmem:[%s11033_s12 + $0x7b0] sm:$0xff]   ;;  %v9172_v40 = vld [vmem:[%s11033_s12 + $0x7b8] sm:$0xff]  }
0x156d   :  { %8578 = vmatprep.subr.bf16.mxu1 %v9113_v63  ;;  %8600 = vmatprep.subr.bf16.mxu0 %v9114_v9 }
0x156f   :  { %8579 = vmatpush3.bf16.msra.mxu1 %v9115_v19  ;;  %v8096_v19 = vld [vmem:[%s11037_s13 + $0x1] ss:$0 sm:$0xff] }
0x1570   :  { %8601 = vmatpush3.bf16.msra.mxu0 %v9116_v25  ;;  %8580 = vmatprep.subr.bf16.mxu1 %v9117_v21 }
0x1571   :  { %8602 = vmatprep.subr.bf16.mxu0 %v9118_v16 }
0x1573   :  { %8581 = vmatpush3.bf16.msra.mxu1 %v9119_v12 }
0x1574   :  { %8603 = vmatpush3.bf16.msra.mxu0 %v9120_v41  ;;  %8582 = vmatprep.subr.bf16.mxu1 %v9121_v34 }
0x1575   :  { %8604 = vmatprep.subr.bf16.mxu0 %v9122_v0 }
0x1577   :  { %8583 = vmatpush3.bf16.msra.mxu1 %v9123_v42 }
0x1578   :  { %8605 = vmatpush3.bf16.msra.mxu0 %v9124_v43  ;;  %8584 = vmatprep.subr.bf16.mxu1 %v9125_v28 }
0x1579   :  { %8606 = vmatprep.subr.bf16.mxu0 %v9126_v46 }
0x157b   :  { %8585 = vmatpush3.bf16.msra.mxu1 %v9127_v47 }
0x157c   :  { %8607 = vmatpush3.bf16.msra.mxu0 %v9128_v48  ;;  %8586 = vmatprep.subr.bf16.mxu1 %v9129_v49 }
0x157d   :  { %8608 = vmatprep.subr.bf16.mxu0 %v9130_v52 }
0x157f   :  { %8587 = vmatpush3.bf16.msra.mxu1 %v9131_v1 }
0x1580   :  { %8609 = vmatpush3.bf16.msra.mxu0 %v9132_v53  ;;  %8588 = vmatprep.subr.bf16.mxu1 %v9133_v23 }
0x1581   :  { %8610 = vmatprep.subr.bf16.mxu0 %v9134_v55 }
0x1583   :  { %8589 = vmatpush3.bf16.msra.mxu1 %v9135_v56 }
0x1584   :  { %8611 = vmatpush3.bf16.msra.mxu0 %v9136_v54  ;;  %8590 = vmatprep.subr.bf16.mxu1 %v9137_v57 }
0x1585   :  { %8612 = vmatprep.subr.bf16.mxu0 %v9138_v58 }
0x1587   :  { %8591 = vmatpush3.bf16.msra.mxu1 %v9139_v3 }
0x1588   :  { %8613 = vmatpush3.bf16.msra.mxu0 %v9140_v59  ;;  %8620 = vmatprep.subr.bf16.mxu1 %v9141_v50 }
0x1589   :  { %8642 = vmatprep.subr.bf16.mxu0 %v9142_v51 }
0x158a   :  { %7234 = vmatmul.mubr.bf16.vlgmr.msra.gmra.mrb[96].mxu1 %v10724_v45  ;;  %v9149_v45 = vld [vmem:[%s11033_s12 + $0x750] sm:$0xff]  }
0x158b   :  { %7275 = vmatmul.mubr.bf16.vlgmr.msra.gmra.mrb[100].mxu0 %v10726_v13  ;;  %8621 = vmatpush3.bf16.msra.mxu1 %v9143_v60  ;;  %v9150_v13 = vld [vmem:[%s11033_s12 + $0x7d0] sm:$0xff]  }
0x158c   :  { %7315 = vmatprep.mubr.bf16.mxu1 %v10760_v29  ;;  %8643 = vmatpush3.bf16.msra.mxu0 %v9144_v62  ;;  %v9161_v29 = vld [vmem:[%s11033_s12 + $0x768] sm:$0xff]  }
0x158d   :  { %7356 = vmatprep.mubr.bf16.mxu0 %v10762_v22  ;;  %8622 = vmatprep.subr.bf16.mxu1 %v9145_v44  ;;  %v9162_v22 = vld [vmem:[%s11033_s12 + $0x7e8] sm:$0xff]  }
0x158e   :  { %8644 = vmatprep.subr.bf16.mxu0 %v9146_v61 }
0x158f   :  { %8623 = vmatpush3.bf16.msra.mxu1 %v9147_v15 }
0x1590   :  { %8645 = vmatpush3.bf16.msra.mxu0 %v9148_v6  ;;  %8624 = vmatprep.subr.bf16.mxu1 %v9149_v45 }
0x1591   :  { %8646 = vmatprep.subr.bf16.mxu0 %v9150_v13 }
0x1593   :  { %8625 = vmatpush3.bf16.msra.mxu1 %v9151_v2 }
0x1594   :  { %8647 = vmatpush3.bf16.msra.mxu0 %v9152_v4  ;;  %8626 = vmatprep.subr.bf16.mxu1 %v9153_v5 }
0x1595   :  { %8648 = vmatprep.subr.bf16.mxu0 %v9154_v27 }
0x1597   :  { %8627 = vmatpush3.bf16.msra.mxu1 %v9155_v7 }
0x1598   :  { %8649 = vmatpush3.bf16.msra.mxu0 %v9156_v10  ;;  %8628 = vmatprep.subr.bf16.mxu1 %v9157_v11 }
0x1599   :  { %8650 = vmatprep.subr.bf16.mxu0 %v9158_v14 }
0x159b   :  { %8629 = vmatpush3.bf16.msra.mxu1 %v9159_v17 }
0x159c   :  { %8651 = vmatpush3.bf16.msra.mxu0 %v9160_v18  ;;  %8630 = vmatprep.subr.bf16.mxu1 %v9161_v29 }
0x159d   :  { %8652 = vmatprep.subr.bf16.mxu0 %v9162_v22 }
0x159f   :  { %8631 = vmatpush3.bf16.msra.mxu1 %v9163_v31 }
0x15a0   :  { %8653 = vmatpush3.bf16.msra.mxu0 %v9164_v32  ;;  %8632 = vmatprep.subr.bf16.mxu1 %v9165_v33 }
0x15a1   :  { %8654 = vmatprep.subr.bf16.mxu0 %v9166_v20 }
0x15a3   :  { %8633 = vmatpush3.bf16.msra.mxu1 %v9167_v36 }
0x15a4   :  { %8655 = vmatpush3.bf16.msra.mxu0 %v9168_v37  ;;  %8634 = vmatprep.subr.bf16.mxu1 %v9169_v38 }
0x15a5   :  { %8656 = vmatprep.subr.bf16.mxu0 %v9170_v39 }
0x15a7   :  { %8635 = vmatpush3.bf16.msra.mxu1 %v9171_v8 }
0x15a8   :  { %8657 = vmatpush3.bf16.msra.mxu0 %v9172_v40 }
0x15aa   :  { %7316 = vmatmul.mubr.bf16.vlgmr.msra.gmra.mrb[100].mxu1 %v10756_v26 }
0x15ab   :  { %7357 = vmatmul.mubr.bf16.vlgmr.msra.gmra.mrb[104].mxu0 %v10758_v30 }
0x161d   :  { %v8504_v63 = vpop.f32.mrb[88].mxu1  ;;  %v8526_v9 = vpop.f32.mrb[92].mxu0 }
0x161e   :  { %v8505_v25 = vpop.f32.mrb[89].mxu1  ;;  %v8527_v21 = vpop.f32.mrb[93].mxu0 }
0x161f   :  { %v8506_v16 = vadd.f32 %v8505_v25, %v8504_v63  ;;  %v8528_v12 = vadd.f32 %v8527_v21, %v8526_v9  ;;  %v8507_v41 = vpop.f32.mrb[90].mxu1  ;;  %v8529_v34 = vpop.f32.mrb[94].mxu0 }
0x1620   :  { %v8508_v0 = vpop.f32.mrb[91].mxu1  ;;  %v8530_v42 = vpop.f32.mrb[95].mxu0 }
0x1621   :  { %v7072_v43 = vadd.f32 %v8506_v16, %v8096_v19  ;;  %v8509_v28 = vadd.f32 %v8508_v0, %v8507_v41  ;;  %v8531_v46 = vadd.f32 %v8530_v42, %v8529_v34 }
0x1623   :  { %v7113_v26 = vadd.f32 %v8528_v12, %v7072_v43  ;;  %v7075_v47 = vadd.f32 %v8509_v28, %v8096_v19 }
0x1625   :  { %v7116_v30 = vadd.f32 %v8531_v46, %v7075_v47 }
0x163d   :  { %v8548_v48 = vpop.f32.mrb[92].mxu1  ;;  %v8570_v49 = vpop.f32.mrb[96].mxu0 }
0x163e   :  { %v8549_v52 = vpop.f32.mrb[93].mxu1  ;;  %v8571_v1 = vpop.f32.mrb[97].mxu0 }
0x163f   :  { %v8550_v53 = vadd.f32 %v8549_v52, %v8548_v48  ;;  %v8572_v23 = vadd.f32 %v8571_v1, %v8570_v49  ;;  %v8551_v55 = vpop.f32.mrb[94].mxu1  ;;  %v8573_v56 = vpop.f32.mrb[98].mxu0  ;;  %v7415_v49 = vld [vmem:[%s11040_s16 + $0x10] sm:$0xff]  ;;  %v7416_v52 = vld [vmem:[%s11040_s16 + $0x18] sm:$0xff] }
0x1640   :  { %v8552_v54 = vpop.f32.mrb[95].mxu1  ;;  %v8574_v57 = vpop.f32.mrb[99].mxu0  ;;  %v8888_v1 = vpack.c.bf16 %v7416_v52, %v7415_v49 }
0x1641   :  { %v7154_v58 = vadd.f32 %v8550_v53, %v7113_v26  ;;  %v8553_v3 = vadd.f32 %v8552_v54, %v8551_v55  ;;  %v8575_v59 = vadd.f32 %v8574_v57, %v8573_v56 }
0x1643   :  { %v7195_v50 = vadd.f32 %v8572_v23, %v7154_v58  ;;  %v7157_v51 = vadd.f32 %v8553_v3, %v7116_v30  ;;  %v7414_v30 = vld [vmem:[%s11040_s16 + $0x8] sm:$0xff]  ;;  %v8227_v3 = vld [vmem:[%s11038_s14 + $0x1] ss:$0 sm:$0xff] }
0x1645   :  { %v7198_v60 = vadd.f32 %v8575_v59, %v7157_v51  ;;  %v8228_v51 = vld [vmem:[%s11039_s15 + $0x1] ss:$0 sm:$0xff] }
0x165d   :  { %v8592_v62 = vpop.f32.mrb[96].mxu1 }
0x165e   :  { %v8614_v44 = vpop.f32.mrb[100].mxu0  ;;  %v8593_v61 = vpop.f32.mrb[97].mxu1 }
0x165f   :  { %v8594_v15 = vadd.f32 %v8593_v61, %v8592_v62  ;;  %v8615_v6 = vpop.f32.mrb[101].mxu0  ;;  %v8595_v45 = vpop.f32.mrb[98].mxu1 }
0x1660   :  { %v8616_v13 = vadd.f32 %v8615_v6, %v8614_v44  ;;  %v8617_v2 = vpop.f32.mrb[102].mxu0  ;;  %v8596_v4 = vpop.f32.mrb[99].mxu1  ;;  %v8229_v6 = vld [vmem:[%s11041_s17] ss:$0 sm:$0xff] }
0x1661   :  { %v7236_v5 = vadd.f32 %v8594_v15, %v7195_v50  ;;  %v8597_v27 = vadd.f32 %v8596_v4, %v8595_v45  ;;  %v8618_v7 = vpop.f32.mrb[103].mxu0 }
0x1662   :  { %v8619_v10 = vadd.f32 %v8618_v7, %v8617_v2 }
0x1663   :  { %v7277_v11 = vadd.f32 %v8616_v13, %v7236_v5  ;;  %v7239_v14 = vadd.f32 %v8597_v27, %v7198_v60 }
0x1665   :  { %v7280_v17 = vadd.f32 %v8619_v10, %v7239_v14 }
0x167d   :  { %v8636_v18 = vpop.f32.mrb[100].mxu1 }
0x167e   :  { %v8658_v29 = vpop.f32.mrb[104].mxu0  ;;  %v8637_v22 = vpop.f32.mrb[101].mxu1 }
0x167f   :  { %v8638_v31 = vadd.f32 %v8637_v22, %v8636_v18  ;;  %v8659_v32 = vpop.f32.mrb[105].mxu0  ;;  %v8639_v33 = vpop.f32.mrb[102].mxu1 }
0x1680   :  { %v8660_v20 = vadd.f32 %v8659_v32, %v8658_v29  ;;  %v8661_v36 = vpop.f32.mrb[106].mxu0  ;;  %v8640_v37 = vpop.f32.mrb[103].mxu1 }
0x1681   :  { %v7318_v38 = vadd.f32 %v8638_v31, %v7277_v11  ;;  %v8641_v39 = vadd.f32 %v8640_v37, %v8639_v33  ;;  %v8662_v8 = vpop.f32.mrb[107].mxu0 }
0x1682   :  { %v8663_v40 = vadd.f32 %v8662_v8, %v8661_v36 }
0x1683   :  { %v7359_v63 = vadd.f32 %v8660_v20, %v7318_v38  ;;  %v7321_v9 = vadd.f32 %v8641_v39, %v7280_v17 }
0x1685   :  { %v7362_v19 = vadd.f32 %v8663_v40, %v7321_v9  ;;  %v7365_v25 = vadd.f32 %v7359_v63, %v10460_v24 }
0x1687   :  { %v7371_v21 = vsel %vm181_vm2, %v7365_v25, 0.0  ;;  %v7366_v16 = vadd.f32 %v7362_v19, %v10462_v35  ;;  %v7413_v35 = vld [vmem:[%s11040_s16] sm:$0xff] }
0x1688   :  { %7372 = vadd.xlane.f32.xlu1 %v7371_v21  ;;  %v8884_v48 = vpack.c.bf16 %v7414_v30, %v7413_v35 }
0x1689   :  { %v7374_v12 = vsel %vm181_vm2, %v7366_v16, 0.0 }
0x168a   :  { %7375 = vadd.xlane.f32.xlu0 %v7374_v12  ;;  %8885 = vmatprep.subr.bf16.mxu1 %v8884_v48 }
0x168b   :  { %8887 = vmatpush3.bf16.msra.mxu1 %v8884_v48 }
0x168c   :  { %8889 = vmatprep.subr.bf16.mxu1 %v8888_v1 }
0x168f   :  { %8891 = vmatpush3.bf16.msra.mxu1 %v8888_v1 }
0x1715   :  { %v7373_v41 = vpop.xlane.xlu1 %7372 }
0x1716   :  { %v7377_v34 = vmul.f32 0.03125, %v7373_v41 }
0x1717   :  { %v7376_v0 = vpop.xlane.xlu0 %7375 }
0x1718   :  { %v7379_v42 = vsub.f32 %v7365_v25, %v7377_v34  ;;  %v7378_v43 = vmul.f32 0.03125, %v7376_v0 }
0x171a   :  { %v7380_v28 = vsub.f32 %v7366_v16, %v7378_v43  ;;  %v7381_v46 = vmul.f32 %v7379_v42, %v7379_v42 }
0x171c   :  { %v7383_v26 = vsel %vm181_vm2, %v7381_v46, 0.0  ;;  %v7382_v47 = vmul.f32 %v7380_v28, %v7380_v28 }
0x171d   :  { %7384 = vadd.xlane.f32.xlu1 %v7383_v26 }
0x171e   :  { %v7386_v24 = vsel %vm181_vm2, %v7382_v47, 0.0 }
0x171f   :  { %7387 = vadd.xlane.f32.xlu0 %v7386_v24 }
0x17aa   :  { %v7385_v53 = vpop.xlane.xlu1 %7384 }
0x17ab   :  { %v7389_v23 = vmul.f32 0.03125, %v7385_v53 }
0x17ac   :  { %v7388_v55 = vpop.xlane.xlu0 %7387 }
0x17ad   :  { %v7391_v56 = vadd.f32 1e-05, %v7389_v23  ;;  %v7390_v54 = vmul.f32 0.03125, %v7388_v55 }
0x17af   :  { %9249 = vrsqrt.f32 %v7391_v56  ;;  %v7392_v57 = vadd.f32 1e-05, %v7390_v54 }
0x17b1   :  { %9251 = vrsqrt.f32 %v7392_v57 }
0x17b9   :  { %v9250_v58 = vpop.eup %9249 }
0x17ba   :  { %v7395_v59 = vmul.f32 %v9250_v58, %v7379_v42 }
0x17bb   :  { %v9252_v50 = vpop.eup %9251 }
0x17bc   :  { %v7396_v60 = vmul.f32 %v9252_v50, %v7380_v28  ;;  %v7403_v62 = vmul.f32 %v8227_v3, %v7395_v59 }
0x17be   :  { %v7404_v44 = vmul.f32 %v8227_v3, %v7396_v60  ;;  %v7411_v61 = vadd.f32 %v8228_v51, %v7403_v62 }
0x17c0   :  { %v7412_v15 = vadd.f32 %v8228_v51, %v7404_v44  ;;  %8877 = vmatprep.mubr.msk.f32.mxu1 %vm181_vm2, %v7411_v61 }
0x17c2   :  { %8878 = vmatmul.mubr.msk.f32.vlgmr.msra.gmra.mrb[70].mxu1 %vm181_vm2, %v7412_v15 }
0x1895   :  { %v8879_v45 = vpop.f32.mrb[70].mxu1 }
0x1896   :  { %v7502_v13 = vadd.f32 %v8879_v45, %v8229_v6  ;;  %v7496_v2 = vpop.f32.mrb[71].mxu1 }
0x1897   :  { %v7497_v4 = vadd.f32 %v8229_v6, %v7496_v2 }
0x1898   :  { %7506 = vst.msk [vmem:[%s11042_s18 + $0x8] sm:$0xff] %vm229_vm3, %v7502_v13 }
0x1899   :  { %7505 = vst.msk [vmem:[%s11042_s18] sm:$0xff] %vm229_vm3, %v7497_v4 }

</bundles_post_ra>
